<compile_context>
chip_gen: v7x
topology: tpu7x:2x2x1
jax: 0.10.0
libtpu: 0.0.40
codegen_flags: <defaults>
</compile_context>

<pallas_src>
import functools

import jax
import jax.numpy as jnp
from jax import lax
from jax.experimental import pallas as pl
from jax.experimental.pallas import tpu as pltpu


_HAS_BUFFERED = hasattr(pl, "Buffered")


def _round_up(v, m):
    return -(-v // m) * m


def _resident_spec(block_shape, rank):
    """BlockSpec with a constant index map; single-buffered when supported."""
    index_map = lambda b, i, _r=rank: (0,) * _r
    if _HAS_BUFFERED:
        try:
            return pl.BlockSpec(block_shape, index_map, pipeline_mode=pl.Buffered(1))
        except TypeError:
            pass
    return pl.BlockSpec(block_shape, index_map)


# ----------------------------- Pallas kernel ------------------------------


def _seq2seq_head_kernel(x_ref, xh_ref, scale_ref, shift_ref,
                         w1_ref, b1_ref, w2_ref, b2_ref, out_ref, *, l_valid):
    """One (batch, L-tile) step: folded-BN affine + Conv1d(k=5,pad=2) + ReLU + Conv1d(k=3,pad=1).

    x_ref     : (1, T, Cin)          current L-tile of the raw input (streamed once)
    xh_ref    : (1, 1, 2*HP, Cin)    halo rows: HP rows before + HP rows after the tile
    scale_ref : (1, Cin)             gamma * rstd          (BN folded)
    shift_ref : (1, Cin)             beta - mean * gamma * rstd
    w1_ref    : (K1, Cin, Hid)       conv1 weight, tap-major (mm_dtype)
    b1_ref    : (1, Hid)
    w2_ref    : (Hid, K2*NLp)        conv2 weight, taps concatenated along output lanes
    b2_ref    : (1, NLp)
    out_ref   : (1, T, NLp)
    """
    i = pl.program_id(1)
    T = x_ref.shape[1]
    K1 = w1_ref.shape[0]
    Hid = w1_ref.shape[2]
    NLp = b2_ref.shape[1]
    K2 = w2_ref.shape[1] // NLp
    pad1 = (K1 - 1) // 2            # 2
    pad2 = (K2 - 1) // 2            # 1
    halo = pad1 + pad2              # 3 input rows needed on each side of the tile

    # ---- assemble the haloed input window (T + 2*halo, Cin): one x stream + tiny halo ----
    cur = x_ref[0]                  # (T, Cin)
    hal = xh_ref[0, 0]              # (2*HP, Cin)
    hp = hal.shape[0] // 2
    window = jnp.concatenate([hal[hp - halo:hp, :], cur, hal[hp:hp + halo, :]], axis=0)

    # ---- BatchNorm1d folded into scale/shift (one VPU mul + one add, f32) ----
    xn = window.astype(jnp.float32) * scale_ref[...] + shift_ref[...]
    # zero rows outside the true sequence (Conv1d zero padding is applied AFTER BN)
    gx = i * T - halo + lax.broadcasted_iota(jnp.int32, (T + 2 * halo, 1), 0)
    xn = jnp.where((gx >= 0) & (gx < l_valid), xn, 0.0)
    xw = xn.astype(w1_ref.dtype)

    # ---- Conv1d #1 (k=5, pad=2) as per-tap matmuls, then bias + ReLU -------------
    # TODO(synk): per-tap slices at sublane offsets 1..4 may lower to retile copies;
    # verified-hidden under MXU time at ESM sizes, revisit only if the bundle shows
    # vld/vst slot saturation.
    Lh = T + 2 * pad2               # rows of the hidden activation needed by conv2
    acc1 = jnp.zeros((Lh, Hid), jnp.float32)
    for k in range(K1):
        acc1 += jnp.dot(xw[k:k + Lh, :], w1_ref[k],
                        preferred_element_type=jnp.float32)
    h = jnp.maximum(acc1 + b1_ref[...], 0.0)
    # zero the hidden rows outside the sequence (conv2's zero padding)
    gh = i * T - pad2 + lax.broadcasted_iota(jnp.int32, (Lh, 1), 0)
    h = jnp.where((gh >= 0) & (gh < l_valid), h, 0.0)
    hw = h.astype(w2_ref.dtype)

    # ---- Conv1d #2 (k=3, pad=1): single matmul over tap-concatenated weights --------
    res = jnp.dot(hw, w2_ref[...], preferred_element_type=jnp.float32)   # (Lh, K2*NLp)
    acc2 = res[0:T, 0:NLp]
    for k in range(1, K2):
        acc2 = acc2 + res[k:k + T, k * NLp:(k + 1) * NLp]
    out_ref[0] = (acc2 + b2_ref[...]).astype(out_ref.dtype)


# ------------------------------ wrapper ------------------------------------


def _effective_weight_norm(v, g):
    """weight_norm with dim=None: w = g * v / ||v||_F (scalar g)."""
    return g * v / jnp.sqrt(jnp.sum(v * v))


def _forward_padded_impl(x, params, num_labels, tile_l, mm_dtype, vmem_limit):
    """Returns padded logits (B, Lp, NLp) float32."""
    B, L, Cin = x.shape
    eps = 1e-5

    # ---- BatchNorm batch statistics: ONE fused pass over x (sum + sum of squares) ----
    # NOTE: training-mode batch stats; inference against a PyTorch checkpoint would use
    # running_mean / running_var instead.
    xf = x.astype(jnp.float32)
    n = B * L
    s1 = jnp.sum(xf, axis=(0, 1))
    s2 = jnp.sum(xf * xf, axis=(0, 1))
    mean = s1 / n
    var = jnp.maximum(s2 / n - mean * mean, 0.0)      # biased variance
    rstd = lax.rsqrt(var + eps)
    gamma = params["bn_gamma"].astype(jnp.float32)
    beta = params["bn_beta"].astype(jnp.float32)
    scale = (gamma * rstd).reshape(1, Cin)
    shift = (beta - mean * gamma * rstd).reshape(1, Cin)

    # ---- weight_norm reparameterization + re-layout to tap-major ----------------
    w1 = _effective_weight_norm(params["conv1_v"], params["conv1_g"])    # (Hid, Cin, 5)
    w2 = _effective_weight_norm(params["conv2_v"], params["conv2_g"])    # (NL, Hid, 3)
    w1 = jnp.transpose(w1, (2, 1, 0)).astype(mm_dtype)                   # (K1, Cin, Hid)
    w2 = jnp.transpose(w2, (2, 1, 0))                                    # (K2, Hid, NL)
    K1, _, Hid = w1.shape
    K2 = w2.shape[0]

    # pad num_labels to a full lane (128) and concatenate the K2 taps along the
    # output dim -> one (Hid, K2*NLp) matmul fills the 256-wide MXU columns.
    NLp = ((num_labels + 127) // 128) * 128
    w2 = jnp.pad(w2, ((0, 0), (0, 0), (0, NLp - num_labels)))            # (K2, Hid, NLp)
    w2cat = jnp.transpose(w2, (1, 0, 2)).reshape(Hid, K2 * NLp).astype(mm_dtype)
    b2 = jnp.pad(params["conv2_b"].astype(jnp.float32),
                 (0, NLp - num_labels)).reshape(1, NLp)
    b1 = params["conv1_b"].reshape(1, Hid).astype(jnp.float32)

    # ---- tile the length axis; pad L up to a multiple of the tile ---------------
    T = int(tile_l)
    assert T % 8 == 0 and T >= 8, "tile_l must be a multiple of 8"
    n_tiles = -(-L // T)
    Lp = n_tiles * T
    xpad = jnp.pad(xf, ((0, 0), (0, Lp - L), (0, 0)))                    # (B, Lp, Cin)

    # ---- per-tile halo tensor (rows before/after each tile), so x is streamed once ----
    halo = (K1 - 1) // 2 + (K2 - 1) // 2
    HP = _round_up(halo, 4)                       # 2*HP rows per tile -> sublane aligned
    assert T >= HP
    xpp = jnp.pad(xpad, ((0, 0), (HP, HP), (0, 0)))
    left = xpp[:, :Lp, :].reshape(B, n_tiles, T, Cin)[:, :, :HP, :]       # rows [iT-HP, iT)
    right = xpp[:, 2 * HP:, :].reshape(B, n_tiles, T, Cin)[:, :, T - HP:, :]  # rows [iT+T, iT+T+HP)
    xhalo = jnp.concatenate([left, right], axis=2)                        # (B, n_tiles, 2*HP, Cin)

    kernel = functools.partial(_seq2seq_head_kernel, l_valid=L)

    wbytes = jnp.dtype(mm_dtype).itemsize
    flops = 2 * B * Lp * (K1 * Cin * Hid + K2 * Hid * NLp)
    bytes_accessed = int((xpad.size + xhalo.size) * 4
                         + w1.size * wbytes + w2cat.size * wbytes
                         + B * Lp * NLp * 4)

    logits = pl.pallas_call(
        kernel,
        out_shape=jax.ShapeDtypeStruct((B, Lp, NLp), jnp.float32),
        grid=(B, n_tiles),
        in_specs=[
            pl.BlockSpec((1, T, Cin), lambda b, i: (b, i, 0)),            # x (single stream)
            pl.BlockSpec((1, 1, 2 * HP, Cin), lambda b, i: (b, i, 0, 0)),  # halo rows
            _resident_spec((1, Cin), 2),               # BN scale
            _resident_spec((1, Cin), 2),               # BN shift
            _resident_spec((K1, Cin, Hid), 3),         # w1 (resident, single-buffered)
            _resident_spec((1, Hid), 2),               # b1
            _resident_spec((Hid, K2 * NLp), 2),        # w2 tap-concatenated
            _resident_spec((1, NLp), 2),               # b2
        ],
        out_specs=pl.BlockSpec((1, T, NLp), lambda b, i: (b, i, 0)),
        compiler_params=pltpu.CompilerParams(
            dimension_semantics=("parallel", "parallel"),
            vmem_limit_bytes=int(vmem_limit)),
        cost_estimate=pl.CostEstimate(flops=flops, transcendentals=0,
                                      bytes_accessed=bytes_accessed),
    )(xpad, xhalo, scale, shift, w1, b1, w2cat, b2)
    return logits


def _resolve_tiling(L, tile_l):
    """Pick (tile_l, vmem_limit_bytes). v5e/v6e (128 MiB VMEM) -> 512; v7x (64 MiB) -> 256."""
    if tile_l is None:
        cap = 64 * 1024 * 1024
        try:
            cap = int(getattr(pltpu.get_tpu_info(), "vmem_capacity_bytes", cap))
        except Exception:
            pass
        target, vlim = (512, 96 * 1024 * 1024) if cap >= 100 * 1024 * 1024 \
            else (256, 52 * 1024 * 1024)
        T = max(8, min(target, _round_up(L, 8)))
    else:
        T = int(tile_l)
        vlim = 96 * 1024 * 1024 if T > 256 else 52 * 1024 * 1024
    assert T % 8 == 0 and T >= 8, "tile_l must be a multiple of 8"
    return T, vlim


@functools.partial(jax.jit,
                   static_argnames=("num_labels", "tile_l", "mm_dtype", "vmem_limit"))
def _forward_jit(x, params, num_labels, tile_l, mm_dtype, vmem_limit):
    padded = _forward_padded_impl(x, params, num_labels, tile_l, mm_dtype, vmem_limit)
    L = x.shape[1]
    return padded[:, :L, :num_labels]


@functools.partial(jax.jit,
                   static_argnames=("num_labels", "ignore_index", "tile_l",
                                    "mm_dtype", "vmem_limit"))
def _forward_loss_jit(x, params, targets, num_labels, ignore_index, tile_l,
                      mm_dtype, vmem_limit):
    """Fused forward + loss so the sliced logits are materialized exactly once."""
    padded = _forward_padded_impl(x, params, num_labels, tile_l, mm_dtype, vmem_limit)
    L = x.shape[1]
    logits = padded[:, :L, :num_labels]
    flat_logits = logits.reshape(-1, num_labels).astype(jnp.float32)
    flat_t = targets.reshape(-1)
    mask = flat_t != ignore_index
    safe_t = jnp.where(mask, flat_t, 0)
    logp = jax.nn.log_softmax(flat_logits, axis=-1)
    nll = -jnp.take_along_axis(logp, safe_t[:, None], axis=1)[:, 0]
    loss = jnp.sum(nll * mask) / jnp.maximum(jnp.sum(mask), 1)
    preds = jnp.argmax(flat_logits, axis=-1)
    # (matches reference Accuracy: divides by total rows, ignore_index unused there)
    acc = jnp.sum(preds == flat_t).astype(jnp.float32) / flat_logits.shape[0]
    return loss, acc, logits


def seq2seq_head_forward(x, params, num_labels, tile_l=None, mm_dtype=jnp.bfloat16):
    """x: (B, L, hidden) float32 -> logits (B, L, num_labels) float32."""
    _, L, _ = x.shape
    T, vlim = _resolve_tiling(L, tile_l)
    return _forward_jit(x, params, num_labels, T, mm_dtype, vlim)


def seq2seq_head(x, params, num_labels, targets=None, ignore_index=-100,
                 tile_l=None, mm_dtype=jnp.bfloat16):
    """Mirrors SequenceToSequenceClassificationHead.forward."""
    _, L, _ = x.shape
    T, vlim = _resolve_tiling(L, tile_l)
    if targets is None:
        return (_forward_jit(x, params, num_labels, T, mm_dtype, vlim),)
    loss, acc, logits = _forward_loss_jit(x, params, targets, num_labels,
                                          ignore_index, T, mm_dtype, vlim)
    return ((loss, {"accuracy": acc}), logits)


# --------------------------- pure-JAX reference -----------------------------


def _ref_forward(x, params):
    """Reference using lax.conv_general_dilated (f32), for correctness checking."""
    eps = 1e-5
    xt = jnp.transpose(x, (0, 2, 1))                                    # (B, C, L)
    mean = jnp.mean(xt, axis=(0, 2), keepdims=True)
    var = jnp.mean((xt - mean) ** 2, axis=(0, 2), keepdims=True)
    g = params["bn_gamma"].reshape(1, -1, 1)
    b = params["bn_beta"].reshape(1, -1, 1)
    xn = (xt - mean) * lax.rsqrt(var + eps) * g + b

    w1 = _effective_weight_norm(params["conv1_v"], params["conv1_g"])
    w2 = _effective_weight_norm(params["conv2_v"], params["conv2_g"])
    dn = ("NCH", "OIH", "NCH")
    h = lax.conv_general_dilated(xn, w1, (1,), [(2, 2)], dimension_numbers=dn)
    h = h + params["conv1_b"].reshape(1, -1, 1)
    h = jnp.maximum(h, 0.0)
    o = lax.conv_general_dilated(h, w2, (1,), [(1, 1)], dimension_numbers=dn)
    o = o + params["conv2_b"].reshape(1, -1, 1)
    return jnp.transpose(o, (0, 2, 1))


# --------------------------------- main -------------------------------------


def init_params(key, hidden_size, num_labels, hid_dim=1280):
    ks = jax.random.split(key, 6)
    return {
        "bn_gamma": 1.0 + 0.05 * jax.random.normal(ks[0], (hidden_size,), jnp.float32),
        "bn_beta": 0.05 * jax.random.normal(ks[1], (hidden_size,), jnp.float32),
        "conv1_v": 0.1 * jax.random.normal(ks[2], (hid_dim, hidden_size, 5), jnp.float32),
        "conv1_g": jnp.float32(1.5),
        "conv1_b": 0.05 * jax.random.normal(ks[3], (hid_dim,), jnp.float32),
        "conv2_v": 0.1 * jax.random.normal(ks[4], (num_labels, hid_dim, 3), jnp.float32),
        "conv2_g": jnp.float32(0.8),
        "conv2_b": 0.05 * jax.random.normal(ks[5], (num_labels,), jnp.float32),
    }


if __name__ == "__main__":
    B, L, HIDDEN, NUM_LABELS = 2, 16, 32, 8
    TILE_L = 8   # small tile so the test exercises multiple L-tiles + halo masking

    key = jax.random.PRNGKey(0)
    k_x, k_p, k_t = jax.random.split(key, 3)
    x = jax.random.normal(k_x, (B, L, HIDDEN), jnp.float32)
    params = init_params(k_p, HIDDEN, NUM_LABELS)
    targets = jax.random.randint(k_t, (B, L), 0, NUM_LABELS)
    targets = targets.at[0, :3].set(-100)   # exercise ignore_index path

    ref = jax.block_until_ready(_ref_forward(x, params))

    # exact-layout check with f32 matmuls (verifies tiling / halo / masking logic)
    logits_f32 = jax.block_until_ready(
        seq2seq_head_forward(x, params, NUM_LABELS, tile_l=TILE_L,
                             mm_dtype=jnp.float32))
    assert jnp.allclose(logits_f32, ref, rtol=1e-4, atol=1e-4), (
        float(jnp.max(jnp.abs(logits_f32 - ref))))

    # auto-selected tile (exercises the per-chip tile/vmem selection, single-tile path)
    logits_auto = jax.block_until_ready(
        seq2seq_head_forward(x, params, NUM_LABELS, mm_dtype=jnp.float32))
    assert jnp.allclose(logits_auto, ref, rtol=1e-4, atol=1e-4), (
        float(jnp.max(jnp.abs(logits_auto - ref))))

    # production path: bf16 matmul operands, f32 accumulation, fused loss glue
    (loss, metrics), logits = seq2seq_head(x, params, NUM_LABELS, targets=targets,
                                           tile_l=TILE_L, mm_dtype=jnp.bfloat16)
    logits = jax.block_until_ready(logits)
    loss = jax.block_until_ready(loss)
    acc = jax.block_until_ready(metrics["accuracy"])

    assert logits.shape == (B, L, NUM_LABELS)
    assert jnp.isfinite(loss) and jnp.isfinite(acc)
    assert jnp.allclose(logits, ref, rtol=2e-2, atol=2e-2), (
        float(jnp.max(jnp.abs(logits - ref))))

    print("KERNEL_OK")
</pallas_src>

<mosaic_0001>
module attributes {stable_mosaic.version = 11 : i64} {
  func.func @_seq2seq_head_kernel(%arg0: i32, %arg1: i32, %arg2: memref<1x8x32xf32, #tpu.memory_space<vmem>>, %arg3: memref<1x1x8x32xf32, #tpu.memory_space<vmem>>, %arg4: memref<1x32xf32, #tpu.memory_space<vmem>>, %arg5: memref<1x32xf32, #tpu.memory_space<vmem>>, %arg6: memref<5x32x1280xf32, #tpu.memory_space<vmem>>, %arg7: memref<1x1280xf32, #tpu.memory_space<vmem>>, %arg8: memref<1280x384xf32, #tpu.memory_space<vmem>>, %arg9: memref<1x128xf32, #tpu.memory_space<vmem>>, %arg10: memref<1x8x128xf32, #tpu.memory_space<vmem>>) attributes {dimension_semantics = [#tpu.dimension_semantics<parallel>, #tpu.dimension_semantics<parallel>], iteration_bounds = array<i64: 2, 2>, scalar_prefetch = 0 : i64, scratch_operands = 0 : i64, tpu.core_type = #tpu.core_type<tc>, window_params = [{transform_indices = @transform_0, window_bounds = array<i64: 1, 8, 32>}, {transform_indices = @transform_1, window_bounds = array<i64: 1, 1, 8, 32>}, {pipeline_mode = #tpu.pipeline_mode<synchronous>, transform_indices = @transform_2, window_bounds = array<i64: 1, 32>}, {pipeline_mode = #tpu.pipeline_mode<synchronous>, transform_indices = @transform_3, window_bounds = array<i64: 1, 32>}, {pipeline_mode = #tpu.pipeline_mode<synchronous>, transform_indices = @transform_4, window_bounds = array<i64: 5, 32, 1280>}, {pipeline_mode = #tpu.pipeline_mode<synchronous>, transform_indices = @transform_5, window_bounds = array<i64: 1, 1280>}, {pipeline_mode = #tpu.pipeline_mode<synchronous>, transform_indices = @transform_6, window_bounds = array<i64: 1280, 384>}, {pipeline_mode = #tpu.pipeline_mode<synchronous>, transform_indices = @transform_7, window_bounds = array<i64: 1, 128>}, {transform_indices = @transform_8, window_bounds = array<i64: 1, 8, 128>}]} {
    %c0 = arith.constant 0 : index
    %c0_0 = arith.constant 0 : index
    %c0_1 = arith.constant 0 : index
    %0 = vector.load %arg2[%c0, %c0_0, %c0_1] : memref<1x8x32xf32, #tpu.memory_space<vmem>>, vector<1x8x32xf32>
    %1 = vector.shape_cast %0 : vector<1x8x32xf32> to vector<8x32xf32>
    %c0_2 = arith.constant 0 : index
    %c0_3 = arith.constant 0 : index
    %c0_4 = arith.constant 0 : index
    %c0_5 = arith.constant 0 : index
    %2 = vector.load %arg3[%c0_2, %c0_3, %c0_4, %c0_5] : memref<1x1x8x32xf32, #tpu.memory_space<vmem>>, vector<1x1x8x32xf32>
    %3 = vector.shape_cast %2 : vector<1x1x8x32xf32> to vector<8x32xf32>
    %4 = vector.extract_strided_slice %3 {offsets = [1, 0], sizes = [3, 32], strides = [1, 1]} : vector<8x32xf32> to vector<3x32xf32>
    %5 = vector.extract_strided_slice %3 {offsets = [4, 0], sizes = [3, 32], strides = [1, 1]} : vector<8x32xf32> to vector<3x32xf32>
    %6 = tpu.concatenate %4, %1, %5 in 0 : vector<3x32xf32>, vector<8x32xf32>, vector<3x32xf32> -> vector<14x32xf32>
    %c0_6 = arith.constant 0 : index
    %c0_7 = arith.constant 0 : index
    %7 = vector.load %arg4[%c0_6, %c0_7] : memref<1x32xf32, #tpu.memory_space<vmem>>, vector<1x32xf32>
    %8 = vector.broadcast %7 : vector<1x32xf32> to vector<14x32xf32>
    %9 = arith.mulf %6, %8 : vector<14x32xf32>
    %c0_8 = arith.constant 0 : index
    %c0_9 = arith.constant 0 : index
    %10 = vector.load %arg5[%c0_8, %c0_9] : memref<1x32xf32, #tpu.memory_space<vmem>>, vector<1x32xf32>
    %11 = vector.broadcast %10 : vector<1x32xf32> to vector<14x32xf32>
    %12 = arith.addf %9, %11 : vector<14x32xf32>
    %c8_i32 = arith.constant 8 : i32
    %13 = arith.muli %arg1, %c8_i32 : i32
    %c3_i32 = arith.constant 3 : i32
    %14 = arith.subi %13, %c3_i32 : i32
    %15 = tpu.iota {dimensions = array<i32: 0>} : vector<14x1xi32>
    %16 = vector.broadcast %14 : i32 to vector<14x1xi32>
    %17 = arith.addi %16, %15 : vector<14x1xi32>
    %c0_i32 = arith.constant 0 : i32
    %18 = vector.broadcast %c0_i32 : i32 to vector<14x1xi32>
    %19 = arith.cmpi sge, %17, %18 : vector<14x1xi32>
    %c16_i32 = arith.constant 16 : i32
    %20 = vector.broadcast %c16_i32 : i32 to vector<14x1xi32>
    %21 = arith.cmpi slt, %17, %20 : vector<14x1xi32>
    %22 = arith.andi %19, %21 : vector<14x1xi1>
    %cst = arith.constant 0.000000e+00 : f32
    %23 = vector.shape_cast %22 : vector<14x1xi1> to vector<14x1xi1>
    %24 = vector.broadcast %23 : vector<14x1xi1> to vector<14x32xi1>
    %25 = vector.broadcast %cst : f32 to vector<14x32xf32>
    %26 = arith.select %24, %12, %25 : vector<14x32xi1>, vector<14x32xf32>
    %cst_10 = arith.constant 0.000000e+00 : f32
    %27 = vector.broadcast %cst_10 : f32 to vector<10x1280xf32>
    %28 = vector.extract_strided_slice %26 {offsets = [0, 0], sizes = [10, 32], strides = [1, 1]} : vector<14x32xf32> to vector<10x32xf32>
    %c0_11 = arith.constant 0 : index
    %c0_12 = arith.constant 0 : index
    %c0_13 = arith.constant 0 : index
    %29 = vector.load %arg6[%c0_11, %c0_12, %c0_13] : memref<5x32x1280xf32, #tpu.memory_space<vmem>>, vector<1x32x1280xf32>
    %30 = vector.shape_cast %29 : vector<1x32x1280xf32> to vector<32x1280xf32>
    %cst_14 = arith.constant dense<0.000000e+00> : vector<10x1280xf32>
    %31 = tpu.matmul %28, %30, %cst_14 {dimension_numbers = #tpu.dot_dimension_numbers<[1], [0], [0], [1], [0, 0, 1, 1], [], []>} : vector<10x32xf32>, vector<32x1280xf32>, vector<10x1280xf32> -> vector<10x1280xf32>
    %32 = arith.addf %27, %31 : vector<10x1280xf32>
    %33 = vector.extract_strided_slice %26 {offsets = [1, 0], sizes = [10, 32], strides = [1, 1]} : vector<14x32xf32> to vector<10x32xf32>
    %c1 = arith.constant 1 : index
    %c0_15 = arith.constant 0 : index
    %c0_16 = arith.constant 0 : index
    %34 = vector.load %arg6[%c1, %c0_15, %c0_16] : memref<5x32x1280xf32, #tpu.memory_space<vmem>>, vector<1x32x1280xf32>
    %35 = vector.shape_cast %34 : vector<1x32x1280xf32> to vector<32x1280xf32>
    %cst_17 = arith.constant dense<0.000000e+00> : vector<10x1280xf32>
    %36 = tpu.matmul %33, %35, %cst_17 {dimension_numbers = #tpu.dot_dimension_numbers<[1], [0], [0], [1], [0, 0, 1, 1], [], []>} : vector<10x32xf32>, vector<32x1280xf32>, vector<10x1280xf32> -> vector<10x1280xf32>
    %37 = arith.addf %32, %36 : vector<10x1280xf32>
    %38 = vector.extract_strided_slice %26 {offsets = [2, 0], sizes = [10, 32], strides = [1, 1]} : vector<14x32xf32> to vector<10x32xf32>
    %c2 = arith.constant 2 : index
    %c0_18 = arith.constant 0 : index
    %c0_19 = arith.constant 0 : index
    %39 = vector.load %arg6[%c2, %c0_18, %c0_19] : memref<5x32x1280xf32, #tpu.memory_space<vmem>>, vector<1x32x1280xf32>
    %40 = vector.shape_cast %39 : vector<1x32x1280xf32> to vector<32x1280xf32>
    %cst_20 = arith.constant dense<0.000000e+00> : vector<10x1280xf32>
    %41 = tpu.matmul %38, %40, %cst_20 {dimension_numbers = #tpu.dot_dimension_numbers<[1], [0], [0], [1], [0, 0, 1, 1], [], []>} : vector<10x32xf32>, vector<32x1280xf32>, vector<10x1280xf32> -> vector<10x1280xf32>
    %42 = arith.addf %37, %41 : vector<10x1280xf32>
    %43 = vector.extract_strided_slice %26 {offsets = [3, 0], sizes = [10, 32], strides = [1, 1]} : vector<14x32xf32> to vector<10x32xf32>
    %c3 = arith.constant 3 : index
    %c0_21 = arith.constant 0 : index
    %c0_22 = arith.constant 0 : index
    %44 = vector.load %arg6[%c3, %c0_21, %c0_22] : memref<5x32x1280xf32, #tpu.memory_space<vmem>>, vector<1x32x1280xf32>
    %45 = vector.shape_cast %44 : vector<1x32x1280xf32> to vector<32x1280xf32>
    %cst_23 = arith.constant dense<0.000000e+00> : vector<10x1280xf32>
    %46 = tpu.matmul %43, %45, %cst_23 {dimension_numbers = #tpu.dot_dimension_numbers<[1], [0], [0], [1], [0, 0, 1, 1], [], []>} : vector<10x32xf32>, vector<32x1280xf32>, vector<10x1280xf32> -> vector<10x1280xf32>
    %47 = arith.addf %42, %46 : vector<10x1280xf32>
    %48 = vector.extract_strided_slice %26 {offsets = [4, 0], sizes = [10, 32], strides = [1, 1]} : vector<14x32xf32> to vector<10x32xf32>
    %c4 = arith.constant 4 : index
    %c0_24 = arith.constant 0 : index
    %c0_25 = arith.constant 0 : index
    %49 = vector.load %arg6[%c4, %c0_24, %c0_25] : memref<5x32x1280xf32, #tpu.memory_space<vmem>>, vector<1x32x1280xf32>
    %50 = vector.shape_cast %49 : vector<1x32x1280xf32> to vector<32x1280xf32>
    %cst_26 = arith.constant dense<0.000000e+00> : vector<10x1280xf32>
    %51 = tpu.matmul %48, %50, %cst_26 {dimension_numbers = #tpu.dot_dimension_numbers<[1], [0], [0], [1], [0, 0, 1, 1], [], []>} : vector<10x32xf32>, vector<32x1280xf32>, vector<10x1280xf32> -> vector<10x1280xf32>
    %52 = arith.addf %47, %51 : vector<10x1280xf32>
    %c0_27 = arith.constant 0 : index
    %c0_28 = arith.constant 0 : index
    %53 = vector.load %arg7[%c0_27, %c0_28] : memref<1x1280xf32, #tpu.memory_space<vmem>>, vector<1x1280xf32>
    %54 = vector.broadcast %53 : vector<1x1280xf32> to vector<10x1280xf32>
    %55 = arith.addf %52, %54 : vector<10x1280xf32>
    %cst_29 = arith.constant 0.000000e+00 : f32
    %56 = vector.broadcast %cst_29 : f32 to vector<10x1280xf32>
    %57 = arith.maximumf %55, %56 : vector<10x1280xf32>
    %c8_i32_30 = arith.constant 8 : i32
    %58 = arith.muli %arg1, %c8_i32_30 : i32
    %c1_i32 = arith.constant 1 : i32
    %59 = arith.subi %58, %c1_i32 : i32
    %60 = tpu.iota {dimensions = array<i32: 0>} : vector<10x1xi32>
    %61 = vector.broadcast %59 : i32 to vector<10x1xi32>
    %62 = arith.addi %61, %60 : vector<10x1xi32>
    %c0_i32_31 = arith.constant 0 : i32
    %63 = vector.broadcast %c0_i32_31 : i32 to vector<10x1xi32>
    %64 = arith.cmpi sge, %62, %63 : vector<10x1xi32>
    %c16_i32_32 = arith.constant 16 : i32
    %65 = vector.broadcast %c16_i32_32 : i32 to vector<10x1xi32>
    %66 = arith.cmpi slt, %62, %65 : vector<10x1xi32>
    %67 = arith.andi %64, %66 : vector<10x1xi1>
    %cst_33 = arith.constant 0.000000e+00 : f32
    %68 = vector.shape_cast %67 : vector<10x1xi1> to vector<10x1xi1>
    %69 = vector.broadcast %68 : vector<10x1xi1> to vector<10x1280xi1>
    %70 = vector.broadcast %cst_33 : f32 to vector<10x1280xf32>
    %71 = arith.select %69, %57, %70 : vector<10x1280xi1>, vector<10x1280xf32>
    %c0_34 = arith.constant 0 : index
    %c0_35 = arith.constant 0 : index
    %72 = vector.load %arg8[%c0_34, %c0_35] : memref<1280x384xf32, #tpu.memory_space<vmem>>, vector<1280x384xf32>
    %cst_36 = arith.constant dense<0.000000e+00> : vector<10x384xf32>
    %73 = tpu.matmul %71, %72, %cst_36 {dimension_numbers = #tpu.dot_dimension_numbers<[1], [0], [0], [1], [0, 0, 1, 1], [], []>} : vector<10x1280xf32>, vector<1280x384xf32>, vector<10x384xf32> -> vector<10x384xf32>
    %74 = vector.extract_strided_slice %73 {offsets = [0, 0], sizes = [8, 128], strides = [1, 1]} : vector<10x384xf32> to vector<8x128xf32>
    %75 = vector.extract_strided_slice %73 {offsets = [1, 128], sizes = [8, 128], strides = [1, 1]} : vector<10x384xf32> to vector<8x128xf32>
    %76 = arith.addf %74, %75 : vector<8x128xf32>
    %77 = vector.extract_strided_slice %73 {offsets = [2, 256], sizes = [8, 128], strides = [1, 1]} : vector<10x384xf32> to vector<8x128xf32>
    %78 = arith.addf %76, %77 : vector<8x128xf32>
    %c0_37 = arith.constant 0 : index
    %c0_38 = arith.constant 0 : index
    %79 = vector.load %arg9[%c0_37, %c0_38] : memref<1x128xf32, #tpu.memory_space<vmem>>, vector<1x128xf32>
    %80 = vector.broadcast %79 : vector<1x128xf32> to vector<8x128xf32>
    %81 = arith.addf %78, %80 : vector<8x128xf32>
    %c0_39 = arith.constant 0 : index
    %c0_40 = arith.constant 0 : index
    %c0_41 = arith.constant 0 : index
    %82 = vector.load %arg10[%c0_39, %c0_40, %c0_41] : memref<1x8x128xf32, #tpu.memory_space<vmem>>, vector<1x8x128xf32>
    %83 = vector.shape_cast %82 : vector<1x8x128xf32> to vector<8x128xf32>
    %84 = vector.shape_cast %81 : vector<8x128xf32> to vector<1x8x128xf32>
    tpu.vector_store %arg10[%c0_39, %c0_40, %c0_41], %84 {strides = array<i32>} : memref<1x8x128xf32, #tpu.memory_space<vmem>>, vector<1x8x128xf32>,
    return
  }
  func.func @transform_0(%arg0: i32, %arg1: i32) -> (i32, i32, i32) {
    %c0_i32 = arith.constant 0 : i32
    %c0_i32_0 = arith.constant 0 : i32
    return %arg0, %arg1, %c0_i32 : i32, i32, i32
  }
  func.func @transform_1(%arg0: i32, %arg1: i32) -> (i32, i32, i32, i32) {
    %c0_i32 = arith.constant 0 : i32
    %c0_i32_0 = arith.constant 0 : i32
    %c0_i32_1 = arith.constant 0 : i32
    return %arg0, %arg1, %c0_i32, %c0_i32_0 : i32, i32, i32, i32
  }
  func.func @transform_2(%arg0: i32, %arg1: i32) -> (i32, i32) {
    %c0_i32 = arith.constant 0 : i32
    %c0_i32_0 = arith.constant 0 : i32
    %c0_i32_1 = arith.constant 0 : i32
    return %c0_i32, %c0_i32_0 : i32, i32
  }
  func.func @transform_3(%arg0: i32, %arg1: i32) -> (i32, i32) {
    %c0_i32 = arith.constant 0 : i32
    %c0_i32_0 = arith.constant 0 : i32
    %c0_i32_1 = arith.constant 0 : i32
    return %c0_i32, %c0_i32_0 : i32, i32
  }
  func.func @transform_4(%arg0: i32, %arg1: i32) -> (i32, i32, i32) {
    %c0_i32 = arith.constant 0 : i32
    %c0_i32_0 = arith.constant 0 : i32
    %c0_i32_1 = arith.constant 0 : i32
    %c0_i32_2 = arith.constant 0 : i32
    return %c0_i32, %c0_i32_0, %c0_i32_1 : i32, i32, i32
  }
  func.func @transform_5(%arg0: i32, %arg1: i32) -> (i32, i32) {
    %c0_i32 = arith.constant 0 : i32
    %c0_i32_0 = arith.constant 0 : i32
    %c0_i32_1 = arith.constant 0 : i32
    return %c0_i32, %c0_i32_0 : i32, i32
  }
  func.func @transform_6(%arg0: i32, %arg1: i32) -> (i32, i32) {
    %c0_i32 = arith.constant 0 : i32
    %c0_i32_0 = arith.constant 0 : i32
    %c0_i32_1 = arith.constant 0 : i32
    return %c0_i32, %c0_i32_0 : i32, i32
  }
  func.func @transform_7(%arg0: i32, %arg1: i32) -> (i32, i32) {
    %c0_i32 = arith.constant 0 : i32
    %c0_i32_0 = arith.constant 0 : i32
    %c0_i32_1 = arith.constant 0 : i32
    return %c0_i32, %c0_i32_0 : i32, i32
  }
  func.func @transform_8(%arg0: i32, %arg1: i32) -> (i32, i32, i32) {
    %c0_i32 = arith.constant 0 : i32
    %c0_i32_0 = arith.constant 0 : i32
    return %arg0, %arg1, %c0_i32 : i32, i32, i32
  }
}

</mosaic_0001>

<bundles_post_ra>
// kernel: _forward_jit.1
= control target key start
LH: loop header
LB: loop body
LE: loop exit
PB: predicated region body
PF: predicated region fallthrough
CT: control target
= control target key end

     0   :  { %s5496_s27 = smov 0   ;;  %s5498_s28 = smov 0   ;;  %s8079_s0 = inlined_call_operand.vmem [shape: f32[2,16,32], index: 0, kind: input, shape index: {}]   ;;  %s8080_s1 = inlined_call_operand.vmem [shape: f32[2,2,8,32], index: 1, kind: input, shape index: {}]   ;;  %s8081_s2 = inlined_call_operand.vmem [shape: f32[1,32], index: 2, kind: input, shape index: {}]   ;;  %s8082_s3 = inlined_call_operand.vmem [shape: f32[1,32], index: 3, kind: input, shape index: {}]   ;;  %s8083_s4 = inlined_call_operand.vmem [shape: f32[5,32,1280], index: 4, kind: input, shape index: {}]   ;;  %s8084_s5 = inlined_call_operand.vmem [shape: f32[1,1280], index: 5, kind: input, shape index: {}]   ;;  %s8085_s6 = inlined_call_operand.vmem [shape: f32[1280,384], index: 6, kind: input, shape index: {}]   ;;  %s8086_s7 = inlined_call_operand.vmem [shape: f32[1,128], index: 7, kind: input, shape index: {}]   ;;  %s8087_s8 = inlined_call_operand.vmem [shape: f32[2,16,128], index: 8, kind: output, shape index: {}]  }
   0x1   :  { %s5500_s29 = smov 0   ;;  %s5502_s30 = smov 0  }
   0x2   :  { %s5504_s9 = smov 0  }
   0x3 LB: > { %s27_s10 = sadd.s32 1, %s5440_s29  ;;  %s30_s11 = sadd.s32 1, %s5444_s30  ;;  %s5448_s9 = sphi %s5504_s9, %s18_s9   ;;  %s5444_s30 = sphi %s5502_s30, %s8095_s30   ;;  %s5440_s29 = sphi %s5500_s29, %s8094_s29   ;;  %s5436_s28 = sphi %s5498_s28, %s8093_s28   ;;  %s5432_s27 = sphi %s5496_s27, %s8092_s27  }
   0x4   : > { %p28_p0 = scmp.ge.s32.totalorder %s27_s10, 2  ;;  %p4139_p1 = scmp.ge.s32.totalorder %s5448_s9, 1 }
   0x5   : > { %p296_p2 = scmp.lt.s32.totalorder %s5448_s9, 5 }
   0x6   : > { %s8097_s10 = smov (%p28_p0, %s27_s10), 0  ;;  %s8099_s11 = smov (!%p28_p0, %s30_s11), %s5444_s30 }
   0x7   : > { %p297_p3 = pnand %p4139_p1, %p296_p2  ;;  %p32_p4 = scmp.ge.s32.totalorder %s8099_s11, 2 }
   0x8   : > { %v4151_v0 = vld [vmem:[%s8083_s4 + $0x148] sm:$0xff] (!%p297_p3)  ;;  %v4161_v1 = vld [vmem:[%s8083_s4 + $0x198] sm:$0xff] (!%p297_p3)  ;;  %p344_p5 = scmp.lt.s32.totalorder (!%p297_p3), %s5436_s28, 1  ;;  %p346_p6 = scmp.lt.s32.totalorder (!%p297_p3), %s5432_s27, 1  ;;  %v399_v3 = vlaneseq (!%p297_p3)  ;;  %v4150_v6 = vld [vmem:[%s8083_s4 + $0x140] sm:$0xff] (!%p297_p3)  ;;  %v5450_v8 = vmov (!%p297_p3), 0.0  }
   0x9   : > { %s8101_s11 = smov (%p32_p4, %s8099_s11), 0  ;;  %300 = sbr.rel (%p297_p3) target bundleno = 740 (0x2e4), region = 52 }
   0xa   : > { %v4153_v2 = vld [vmem:[%s8083_s4 + $0x158] sm:$0xff] (!%p297_p3)  ;;  %v4594_v4 = vpack.c.bf16 (!%p297_p3), %v4161_v1, %v4151_v0  ;;  %v4163_v5 = vld [vmem:[%s8083_s4 + $0x1a8] sm:$0xff] (!%p297_p3)  ;;  %v4160_v7 = vld [vmem:[%s8083_s4 + $0x190] sm:$0xff] (!%p297_p3)  ;;  %573 = vmatprep.mubr.f32.mxu0 (!%p297_p3), %v5450_v8  ;;  %650 = vmatprep.mubr.f32.mxu1 (!%p297_p3), %v5450_v8  ;;  %s4148_s24 = sshll.u32 (!%p297_p3), %s5432_s27, 3  ;;  %v5565_v14 = vshrl.u32 (!%p297_p3), %v399_v3, 7  ;;  %vm376_vm0 = vcmask (!%p297_p3), 1042432  }
   0xb   : > { %v4602_v9 = vpack.c.bf16 (!%p297_p3), %v4163_v5, %v4153_v2  ;;  %v4596_v10 = vpack.c.bf16 (!%p297_p3), %v4160_v7, %v4150_v6  ;;  %v4152_v11 = vld [vmem:[%s8083_s4 + $0x150] sm:$0xff] (!%p297_p3)  ;;  %v4162_v12 = vld [vmem:[%s8083_s4 + $0x1a0] sm:$0xff] (!%p297_p3)  ;;  %v4171_v13 = vld [vmem:[%s8083_s4 + $0x1e8] sm:$0xff] (!%p297_p3)  ;;  %s4149_s16 = sadd.s32 (!%p297_p3), 4294967293, %s4148_s24  ;;  %vm500_vm7 = vcmask (!%p297_p3), 1046528   ;;  %vm504_vm8 = vcmask (!%p297_p3), 261120  }
   0xc   : > { %4595 = vmatprep.subr.bf16.mxu0 (!%p297_p3), %v4594_v4  ;;  %v4604_v15 = vpack.c.bf16 (!%p297_p3), %v4162_v12, %v4152_v11  ;;  %v4181_v16 = vld [vmem:[%s8083_s4 + $0x238] sm:$0xff] (!%p297_p3)  ;;  %v4183_v18 = vld [vmem:[%s8083_s4 + $0x248] sm:$0xff] (!%p297_p3)  ;;  %v4170_v21 = vld [vmem:[%s8083_s4 + $0x1e0] sm:$0xff] (!%p297_p3)  ;;  %v401_v24 = vadd.s32 (!%p297_p3), 8, %v5565_v14  ;;  %v402_v29 = vstv (!%p297_p3), %s4149_s16  ;;  %vm2232_vm9 = vcmask (!%p297_p3), 1043456  }
   0xd   : > { %v4173_v17 = vld [vmem:[%s8083_s4 + $0x1f8] sm:$0xff] (!%p297_p3)  ;;  %4603 = vmatprep.subr.bf16.mxu1 (!%p297_p3), %v4602_v9  ;;  %4597 = vmatpush1.bf16.msra.mxu0 (!%p297_p3), %v4596_v10  ;;  %v4598_v19 = vpack.c.bf16 (!%p297_p3), %v4181_v16, %v4171_v13  ;;  %v4180_v22 = vld [vmem:[%s8083_s4 + $0x230] sm:$0xff] (!%p297_p3)  ;;  %v4182_v26 = vld [vmem:[%s8083_s4 + $0x240] sm:$0xff] (!%p297_p3)  ;;  %v403_v34 = vadd.s32 (!%p297_p3), %v402_v29, %v5565_v14  ;;  %vm1324_vm10 = vcmask (!%p297_p3), 1045504   ;;  %vm1778_vm11 = vcmask (!%p297_p3), 1044480  }
   0xe   : > { %v4606_v20 = vpack.c.bf16 (!%p297_p3), %v4183_v18, %v4173_v17  ;;  %v4172_v23 = vld [vmem:[%s8083_s4 + $0x1f0] sm:$0xff] (!%p297_p3)  ;;  %4605 = vmatpush1.bf16.msra.mxu1 (!%p297_p3), %v4604_v15  ;;  %v4600_v25 = vpack.c.bf16 (!%p297_p3), %v4180_v22, %v4170_v21  ;;  %v4155_v27 = vld [vmem:[%s8083_s4 + $0x168] sm:$0xff] (!%p297_p3)  ;;  %v4165_v28 = vld [vmem:[%s8083_s4 + $0x1b8] sm:$0xff] (!%p297_p3)  ;;  %v404_v37 = vadd.s32 (!%p297_p3), %v402_v29, %v401_v24 }
   0xf   : > { %4599 = vmatprep.subr.bf16.mxu0 (!%p297_p3), %v4598_v19  ;;  %v4608_v30 = vpack.c.bf16 (!%p297_p3), %v4182_v26, %v4172_v23  ;;  %v4610_v31 = vpack.c.bf16 (!%p297_p3), %v4165_v28, %v4155_v27  ;;  %v4157_v32 = vld [vmem:[%s8083_s4 + $0x178] sm:$0xff] (!%p297_p3)  ;;  %v4167_v33 = vld [vmem:[%s8083_s4 + $0x1c8] sm:$0xff] (!%p297_p3)  ;;  %v4146_v43 = vld [vmem:[%s8081_s2] ss:$0 sm:$0xff] (!%p297_p3)  ;;  %vm405_vm1 = vcmp.ge.s32.totalorder (!%p297_p3), %v403_v34, 0  ;;  %vm407_vm2 = vcmp.lt.s32.totalorder (!%p297_p3), %v403_v34, 16 }
  0x10   : > { %s8103_s28 = smov (!%p344_p5, %s5436_s28), 1  ;;  %4607 = vmatprep.subr.bf16.mxu1 %v4606_v20  ;;  %v4618_v36 = vpack.c.bf16 %v4167_v33, %v4157_v32  ;;  %vm406_vm3 = vcmp.ge.s32.totalorder %v404_v37, 0  ;;  %vm408_vm4 = vcmp.lt.s32.totalorder %v404_v37, 16  ;;  %v4147_v46 = vld [vmem:[%s8082_s3] ss:$0 sm:$0xff]  ;;  %vm409_vm5 = vmand %vm405_vm1, %vm407_vm2  ;;  %v4164_v52 = vld [vmem:[%s8083_s4 + $0x1b0] sm:$0xff] }
  0x11   : > { %s347_s22 = scalar_select %p346_p6, %s5432_s27, 1  ;;  %4601 = vmatpush1.bf16.msra.mxu0 %v4600_v25  ;;  %vm410_vm6 = vmand %vm406_vm3, %vm408_vm4  ;;  %v4154_v49 = vld [vmem:[%s8083_s4 + $0x160] sm:$0xff]  ;;  %v4156_v53 = vld [vmem:[%s8083_s4 + $0x170] sm:$0xff] }
  0x12   : > { %s4140_s15 = sshll.u32 %s8103_s28, 1  ;;  %s5602_s28 = sadd.s32 4294967295, %s4148_s24  ;;  %4609 = vmatpush1.bf16.msra.mxu1 %v4608_v30  ;;  %4611 = vmatprep.subr.bf16.mxu0 %v4610_v31  ;;  %v4166_v54 = vld [vmem:[%s8083_s4 + $0x1c0] sm:$0xff]  ;;  %v4175_v55 = vld [vmem:[%s8083_s4 + $0x208] sm:$0xff]  ;;  %v4185_v58 = vld [vmem:[%s8083_s4 + $0x258] sm:$0xff]  ;;  %v4612_v63 = vpack.c.bf16 %v4164_v52, %v4154_v49 }
  0x13   : > { %s349_s25 = sadd.s32 %s4140_s15, %s347_s22  ;;  %v2740_v35 = vstv %s5602_s28  ;;  %4619 = vmatprep.subr.bf16.mxu1 %v4618_v36  ;;  %v4177_v59 = vld [vmem:[%s8083_s4 + $0x218] sm:$0xff]  ;;  %v4187_v60 = vld [vmem:[%s8083_s4 + $0x268] sm:$0xff]  ;;  %v4620_v0 = vpack.c.bf16 %v4166_v54, %v4156_v53  ;;  %v4174_v1 = vld [vmem:[%s8083_s4 + $0x200] sm:$0xff]  ;;  %v4614_v6 = vpack.c.bf16 %v4185_v58, %v4175_v55 }
  0x14   : > { %s5610_s17 = sshll.u32 %s349_s25, 3  ;;  %v5624_v38 = vadd.s32 %v2740_v35, %v401_v24  ;;  %v4184_v2 = vld [vmem:[%s8083_s4 + $0x250] sm:$0xff]  ;;  %v4186_v4 = vld [vmem:[%s8083_s4 + $0x260] sm:$0xff]  ;;  %v4622_v7 = vpack.c.bf16 %v4187_v60, %v4177_v59  ;;  %v4159_v9 = vld [vmem:[%s8083_s4 + $0x188] sm:$0xff] }
  0x15   : > { %s351_s22 = scalar_lea.vmem %s8079_s0, %s5610_s17  ;;  %s359_s18 = scalar_lea.vmem %s8080_s1, %s5610_s17  ;;  %v4176_v3 = vld [vmem:[%s8083_s4 + $0x210] sm:$0xff]  ;;  %v4169_v11 = vld [vmem:[%s8083_s4 + $0x1d8] sm:$0xff]  ;;  %v430_v13 = vld [vmem:[%s8083_s4 + $0x68] sm:$0xff]  ;;  %v4616_v16 = vpack.c.bf16 %v4184_v2, %v4174_v1 }
  0x16   : > { %v368_v39 = vld [vmem:[%s351_s22] sm:$0xff]  ;;  %v420_v12 = vld [vmem:[%s8083_s4 + $0x18] sm:$0xff]  ;;  %v4624_v17 = vpack.c.bf16 %v4186_v4, %v4176_v3  ;;  %v4168_v19 = vld [vmem:[%s8083_s4 + $0x1d0] sm:$0xff]  ;;  %v4626_v23 = vpack.c.bf16 %v4169_v11, %v4159_v9  ;;  %vm2744_vm15 = vcmp.ge.s32.totalorder %v5624_v38, 0  ;;  %s367_s16 = scalar_lea.vmem %s8087_s8, %s5610_s17 }
  0x17   : > { %v369_v40 = vld [vmem:[%s359_s18] sm:$0xff]  ;;  %v374_v42 = vrot.slane %v368_v39, 5  ;;  %v419_v20 = vld [vmem:[%s8083_s4 + $0x10] sm:$0xff]  ;;  %v4642_v24 = vpack.c.bf16 %v430_v13, %v420_v12  ;;  %v4179_v25 = vld [vmem:[%s8083_s4 + $0x228] sm:$0xff] }
  0x18   : > { %v371_v41 = vrot.slane %v369_v40, 1  ;;  %v4158_v18 = vld [vmem:[%s8083_s4 + $0x180] sm:$0xff]  ;;  %v4189_v26 = vld [vmem:[%s8083_s4 + $0x278] sm:$0xff]  ;;  %v450_v28 = vld [vmem:[%s8083_s4 + $0x108] sm:$0xff] }
  0x19   : > { %v429_v21 = vld [vmem:[%s8083_s4 + $0x60] sm:$0xff]  ;;  %v440_v27 = vld [vmem:[%s8083_s4 + $0xb8] sm:$0xff]  ;;  %v4628_v29 = vpack.c.bf16 %v4168_v19, %v4158_v18  ;;  %v4188_v32 = vld [vmem:[%s8083_s4 + $0x270] sm:$0xff]  ;;  %v4630_v36 = vpack.c.bf16 %v4189_v26, %v4179_v25 }
  0x1a   : > { %v377_v44 = vsel %vm376_vm0, %v371_v41, %v374_v42  ;;  %v378_v45 = vsel %vm376_vm0, %v374_v42, %v371_v41  ;;  %v4644_v30 = vpack.c.bf16 %v429_v21, %v419_v20  ;;  %v4178_v31 = vld [vmem:[%s8083_s4 + $0x220] sm:$0xff]  ;;  %v439_v33 = vld [vmem:[%s8083_s4 + $0xb0] sm:$0xff]  ;;  %v4646_v37 = vpack.c.bf16 %v450_v28, %v440_v27  ;;  %v418_v39 = vld [vmem:[%s8083_s4 + $0x8] sm:$0xff] }
  0x1b   : > { %v386_v47 = vmul.f32 %v4146_v43, %v377_v44  ;;  %v387_v48 = vmul.f32 %v4146_v43, %v378_v45  ;;  %v449_v34 = vld [vmem:[%s8083_s4 + $0x100] sm:$0xff]  ;;  %v428_v40 = vld [vmem:[%s8083_s4 + $0x58] sm:$0xff]  ;;  %v434_v42 = vld [vmem:[%s8083_s4 + $0x88] sm:$0xff]  ;;  %v4632_v43 = vpack.c.bf16 %v4188_v32, %v4178_v31  ;;  %vm2746_vm0 = vcmp.lt.s32.totalorder %v5624_v38, 16 }
  0x1c   : > { %v424_v41 = vld [vmem:[%s8083_s4 + $0x38] sm:$0xff]  ;;  %v4648_v44 = vpack.c.bf16 %v449_v34, %v439_v33  ;;  %v417_v45 = vld [vmem:[%s8083_s4] sm:$0xff]  ;;  %v454_v54 = vld [vmem:[%s8083_s4 + $0x128] sm:$0xff] }
  0x1d   : > { %v395_v50 = vadd.f32 %v4147_v46, %v386_v47  ;;  %v396_v51 = vadd.f32 %v4147_v46, %v387_v48  ;;  %v4634_v46 = vpack.c.bf16 %v428_v40, %v418_v39  ;;  %v427_v47 = vld [vmem:[%s8083_s4 + $0x50] sm:$0xff]  ;;  %v433_v49 = vld [vmem:[%s8083_s4 + $0x80] sm:$0xff]  ;;  %v448_v52 = vld [vmem:[%s8083_s4 + $0xf8] sm:$0xff] }
  0x1e   : > { %v423_v48 = vld [vmem:[%s8083_s4 + $0x30] sm:$0xff]  ;;  %v444_v53 = vld [vmem:[%s8083_s4 + $0xd8] sm:$0xff]  ;;  %v4636_v55 = vpack.c.bf16 %v427_v47, %v417_v45  ;;  %v437_v59 = vld [vmem:[%s8083_s4 + $0xa0] sm:$0xff] }
  0x1f   : > { %v5647_v56 = vsel %vm409_vm5, %v395_v50, 0.0  ;;  %v5649_v57 = vsel %vm410_vm6, %v396_v51, 0.0  ;;  %v4658_v50 = vpack.c.bf16 %v434_v42, %v424_v41  ;;  %v438_v51 = vld [vmem:[%s8083_s4 + $0xa8] sm:$0xff]  ;;  %v4660_v58 = vpack.c.bf16 %v433_v49, %v423_v48  ;;  %v432_v3 = vld [vmem:[%s8083_s4 + $0x78] sm:$0xff]  ;;  %v431_v11 = vld [vmem:[%s8083_s4 + $0x70] sm:$0xff] }
  0x20   : > { %v501_v61 = vrot.slane %v5647_v56, 1  ;;  %v5662_v62 = vrot.slane %v5649_v57, 1  ;;  %v2233_v10 = vrot.slane %v5647_v56, 4  ;;  %v5698_v15 = vrot.slane %v5649_v57, 4  ;;  %v422_v2 = vld [vmem:[%s8083_s4 + $0x28] sm:$0xff]  ;;  %v4213_v4 = vld [vmem:[%s8083_s4 + $0x298] sm:$0xff]  ;;  %vm6815_vm1 = vmand %vm2744_vm15, %vm2746_vm0 }
  0x21   : > { %v4638_v60 = vpack.c.bf16 %v448_v52, %v438_v51  ;;  %v4662_v1 = vpack.c.bf16 %v454_v54, %v444_v53  ;;  %v4212_v12 = vld [vmem:[%s8083_s4 + $0x290] sm:$0xff]  ;;  %v4222_v13 = vld [vmem:[%s8083_s4 + $0x2e0] sm:$0xff]  ;;  %v452_v18 = vld [vmem:[%s8083_s4 + $0x118] sm:$0xff]  ;;  %v5889_v39 = vrot.slane %v5649_v57, 2 }
  0x22   : > { %v5678_v5 = vsel %vm500_vm7, %v501_v61, %v5662_v62  ;;  %v5716_v22 = vsel %vm2232_vm9, %v2233_v10, %v5698_v15  ;;  %v447_v61 = vld [vmem:[%s8083_s4 + $0xf0] sm:$0xff]  ;;  %v421_v10 = vld [vmem:[%s8083_s4 + $0x20] sm:$0xff]  ;;  %v4233_v19 = vld [vmem:[%s8083_s4 + $0x338] sm:$0xff] }
  0x23   : > { %4190 = vmatmul.mubr.msk.f32.vlgmr.msra.gmra.mrb[0].mxu0 %vm504_vm8, %v5678_v5  ;;  %4192 = vmatmul.mubr.msk.f32.vlgmr.msra.gmra.mrb[0].mxu1 %vm504_vm8, %v5678_v5  ;;  %v4243_v20 = vld [vmem:[%s8083_s4 + $0x388] sm:$0xff]  ;;  %v4652_v21 = vpack.c.bf16 %v431_v11, %v421_v10  ;;  %v451_v25 = vld [vmem:[%s8083_s4 + $0x110] sm:$0xff]  ;;  %v4242_v27 = vld [vmem:[%s8083_s4 + $0x380] sm:$0xff] }
  0x24   : > { %4613 = vmatpush1.bf16.msra.mxu0 %v4612_v63  ;;  %4621 = vmatpush1.bf16.msra.mxu1 %v4620_v0  ;;  %v443_v63 = vld [vmem:[%s8083_s4 + $0xd0] sm:$0xff]  ;;  %v453_v0 = vld [vmem:[%s8083_s4 + $0x120] sm:$0xff]  ;;  %v4686_v28 = vpack.c.bf16 %v4243_v20, %v4233_v19  ;;  %v4217_v31 = vld [vmem:[%s8083_s4 + $0x2b8] sm:$0xff] }
  0x25   : > { %579 = vmatprep.mubr.f32.mxu0 %v5450_v8  ;;  %656 = vmatprep.mubr.f32.mxu1 %v5450_v8  ;;  %v4664_v9 = vpack.c.bf16 %v453_v0, %v443_v63  ;;  %v4232_v26 = vld [vmem:[%s8083_s4 + $0x330] sm:$0xff]  ;;  %v4227_v32 = vld [vmem:[%s8083_s4 + $0x308] sm:$0xff]  ;;  %v4237_v47 = vld [vmem:[%s8083_s4 + $0x358] sm:$0xff] }
  0x26   : > { %4615 = vmatprep.subr.bf16.mxu0 %v4614_v6  ;;  %4623 = vmatprep.subr.bf16.mxu1 %v4622_v7  ;;  %v4223_v6 = vld [vmem:[%s8083_s4 + $0x2e8] sm:$0xff]  ;;  %v4640_v7 = vpack.c.bf16 %v447_v61, %v437_v59  ;;  %v4688_v34 = vpack.c.bf16 %v4242_v27, %v4232_v26  ;;  %v435_v41 = vld [vmem:[%s8083_s4 + $0x90] sm:$0xff]  ;;  %v445_v52 = vld [vmem:[%s8083_s4 + $0xe0] sm:$0xff] }
  0x27   : > { %4191 = vmatmul.mubr.msk.f32.gmra.mrb[2].mxu0 %vm504_vm8, %v5662_v62  ;;  %4193 = vmatmul.mubr.msk.f32.gmra.mrb[2].mxu1 %vm504_vm8, %v5662_v62  ;;  %v4216_v42 = vld [vmem:[%s8083_s4 + $0x2b0] sm:$0xff]  ;;  %v446_v45 = vld [vmem:[%s8083_s4 + $0xe8] sm:$0xff]  ;;  %v4221_v61 = vld [vmem:[%s8083_s4 + $0x2d8] sm:$0xff] }
  0x28   : > { %4617 = vmatpush1.bf16.msra.mxu0 %v4616_v16  ;;  %4625 = vmatpush1.bf16.msra.mxu1 %v4624_v17  ;;  %v4682_v16 = vpack.c.bf16 %v4223_v6, %v4213_v4  ;;  %v442_v17 = vld [vmem:[%s8083_s4 + $0xc8] sm:$0xff]  ;;  %v455_v54 = vld [vmem:[%s8083_s4 + $0x130] sm:$0xff]  ;;  %v4263_v63 = vld [vmem:[%s8083_s4 + $0x3d8] sm:$0xff] }
  0x29   : > { %727 = vmatprep.mubr.f32.mxu0 %v5450_v8  ;;  %804 = vmatprep.mubr.f32.mxu1 %v5450_v8  ;;  %v4247_v48 = vld [vmem:[%s8083_s4 + $0x3a8] sm:$0xff]  ;;  %v4220_v6 = vld [vmem:[%s8083_s4 + $0x2d0] sm:$0xff]  ;;  %v4241_v11 = vld [vmem:[%s8083_s4 + $0x378] sm:$0xff] }
  0x2a   : > { %4627 = vmatprep.subr.bf16.mxu0 %v4626_v23  ;;  %4643 = vmatprep.subr.bf16.mxu1 %v4642_v24  ;;  %v4684_v23 = vpack.c.bf16 %v4222_v13, %v4212_v12  ;;  %v441_v24 = vld [vmem:[%s8083_s4 + $0xc0] sm:$0xff]  ;;  %v4702_v59 = vpack.c.bf16 %v4247_v48, %v4237_v47  ;;  %v4273_v0 = vld [vmem:[%s8083_s4 + $0x428] sm:$0xff]  ;;  %v4283_v12 = vld [vmem:[%s8083_s4 + $0x478] sm:$0xff] }
  0x2b   : > { %4194 = vmatmul.mubr.msk.f32.vlgmr.msra.gmra.mrb[4].mxu0 %vm504_vm8, %v5678_v5  ;;  %4196 = vmatmul.mubr.msk.f32.vlgmr.msra.gmra.mrb[4].mxu1 %vm504_vm8, %v5678_v5  ;;  %v4656_v33 = vpack.c.bf16 %v451_v25, %v441_v24  ;;  %v4722_v10 = vpack.c.bf16 %v4273_v0, %v4263_v63  ;;  %v4293_v13 = vld [vmem:[%s8083_s4 + $0x4c8] sm:$0xff]  ;;  %v4240_v20 = vld [vmem:[%s8083_s4 + $0x370] sm:$0xff]  ;;  %v4225_v25 = vld [vmem:[%s8083_s4 + $0x2f8] sm:$0xff] }
  0x2c   : > { %4629 = vmatpush1.bf16.msra.mxu0 %v4628_v29  ;;  %4645 = vmatpush1.bf16.msra.mxu1 %v4644_v30  ;;  %v426_v29 = vld [vmem:[%s8083_s4 + $0x48] sm:$0xff]  ;;  %v436_v30 = vld [vmem:[%s8083_s4 + $0x98] sm:$0xff]  ;;  %v4726_v24 = vpack.c.bf16 %v4293_v13, %v4283_v12  ;;  %v4244_v48 = vld [vmem:[%s8083_s4 + $0x390] sm:$0xff] }
  0x2d   : > { %733 = vmatprep.mubr.f32.mxu0 %v5450_v8  ;;  %810 = vmatprep.mubr.f32.mxu1 %v5450_v8  ;;  %v4666_v40 = vpack.c.bf16 %v436_v30, %v426_v29  ;;  %v4267_v26 = vld [vmem:[%s8083_s4 + $0x3f8] sm:$0xff]  ;;  %v4277_v27 = vld [vmem:[%s8083_s4 + $0x448] sm:$0xff]  ;;  %v4214_v30 = vld [vmem:[%s8083_s4 + $0x2a0] sm:$0xff] }
  0x2e   : > { %4631 = vmatprep.subr.bf16.mxu0 %v4630_v36  ;;  %4647 = vmatprep.subr.bf16.mxu1 %v4646_v37  ;;  %v425_v36 = vld [vmem:[%s8083_s4 + $0x40] sm:$0xff]  ;;  %v1325_v37 = vrot.slane %v5647_v56, 2  ;;  %v4228_v0 = vld [vmem:[%s8083_s4 + $0x310] sm:$0xff] }
  0x2f   : > { %4195 = vmatmul.mubr.msk.f32.gmra.mrb[6].mxu0 %vm504_vm8, %v5662_v62  ;;  %4197 = vmatmul.mubr.msk.f32.gmra.mrb[6].mxu1 %vm504_vm8, %v5662_v62  ;;  %v4668_v49 = vpack.c.bf16 %v435_v41, %v425_v36  ;;  %v4266_v36 = vld [vmem:[%s8083_s4 + $0x3f0] sm:$0xff]  ;;  %v4245_v41 = vld [vmem:[%s8083_s4 + $0x398] sm:$0xff] }
  0x30   : > { %4633 = vmatpush1.bf16.msra.mxu0 %v4632_v43  ;;  %4649 = vmatpush1.bf16.msra.mxu1 %v4648_v44  ;;  %v4226_v43 = vld [vmem:[%s8083_s4 + $0x300] sm:$0xff]  ;;  %v4698_v44 = vpack.c.bf16 %v4227_v32, %v4217_v31  ;;  %v1779_v31 = vrot.slane %v5647_v56, 3  ;;  %v6017_v32 = vrot.slane %v5649_v57, 3  ;;  %v4248_v13 = vld [vmem:[%s8083_s4 + $0x3b0] sm:$0xff] }
  0x31   : > { %881 = vmatprep.mubr.f32.mxu0 %v5450_v8  ;;  %4635 = vmatprep.subr.bf16.mxu0 %v4634_v46  ;;  %v456_v46 = vld [vmem:[%s8083_s4 + $0x138] sm:$0xff]  ;;  %v4700_v51 = vpack.c.bf16 %v4226_v43, %v4216_v42  ;;  %v4297_v43 = vld [vmem:[%s8083_s4 + $0x4e8] sm:$0xff] }
  0x32   : > { %1039 = vmatprep.mubr.f32.mxu1 %v5450_v8  ;;  %4659 = vmatprep.subr.bf16.mxu1 %v4658_v50  ;;  %v5920_v50 = vsel %vm1324_vm10, %v1325_v37, %v5889_v39  ;;  %v4670_v53 = vpack.c.bf16 %v456_v46, %v446_v45  ;;  %v4738_v37 = vpack.c.bf16 %v4277_v27, %v4267_v26  ;;  %v4287_v42 = vld [vmem:[%s8083_s4 + $0x498] sm:$0xff]  ;;  %v4270_v27 = vld [vmem:[%s8083_s4 + $0x410] sm:$0xff] }
  0x33   : > { %4198 = vmatmul.mubr.msk.f32.vlgmr.msra.gmra.mrb[8].mxu0 %vm504_vm8, %v5678_v5  ;;  %4202 = vmatmul.mubr.msk.f32.vlgmr.msra.gmra.mrb[0].mxu1 %vm504_vm8, %v5647_v56  ;;  %v4650_v5 = vpack.c.bf16 %v432_v3, %v422_v2  ;;  %v4210_v3 = vld [vmem:[%s8083_s4 + $0x280] sm:$0xff]  ;;  %v6047_v45 = vsel %vm1778_vm11, %v1779_v31, %v6017_v32  ;;  %v4281_v31 = vld [vmem:[%s8083_s4 + $0x468] sm:$0xff] }
  0x34   : > { %4637 = vmatpush1.bf16.msra.mxu0 %v4636_v55  ;;  %4661 = vmatpush1.bf16.msra.mxu1 %v4660_v58  ;;  %v4236_v55 = vld [vmem:[%s8083_s4 + $0x350] sm:$0xff]  ;;  %v4246_v58 = vld [vmem:[%s8083_s4 + $0x3a0] sm:$0xff] }
  0x35   : > { %887 = vmatprep.mubr.f32.mxu0 %v5450_v8  ;;  %4639 = vmatprep.subr.bf16.mxu0 %v4638_v60  ;;  %v4211_v60 = vld [vmem:[%s8083_s4 + $0x288] sm:$0xff]  ;;  %v4704_v2 = vpack.c.bf16 %v4246_v58, %v4236_v55  ;;  %v4313_v55 = vld [vmem:[%s8083_s4 + $0x518] sm:$0xff] }
  0x36   : > { %1045 = vmatprep.mubr.f32.mxu1 %v5450_v8  ;;  %4663 = vmatprep.subr.bf16.mxu1 %v4662_v1  ;;  %v4672_v1 = vpack.c.bf16 %v455_v54, %v445_v52  ;;  %v4674_v4 = vpack.c.bf16 %v4221_v61, %v4211_v60  ;;  %v4742_v52 = vpack.c.bf16 %v4297_v43, %v4287_v42  ;;  %v4229_v54 = vld [vmem:[%s8083_s4 + $0x318] sm:$0xff]  ;;  %v4323_v58 = vld [vmem:[%s8083_s4 + $0x568] sm:$0xff]  ;;  %v4218_v61 = vld [vmem:[%s8083_s4 + $0x2c0] sm:$0xff] }
  0x37   : > { %4199 = vmatmul.mubr.msk.f32.gmra.mrb[10].mxu0 %vm504_vm8, %v5662_v62  ;;  %4203 = vmatmul.mubr.msk.f32.gmra.mrb[2].mxu1 %vm504_vm8, %v5649_v57  ;;  %v4654_v62 = vpack.c.bf16 %v452_v18, %v442_v17  ;;  %v4230_v18 = vld [vmem:[%s8083_s4 + $0x320] sm:$0xff]  ;;  %v4290_v42 = vld [vmem:[%s8083_s4 + $0x4b0] sm:$0xff] }
  0x38   : > { %4641 = vmatpush1.bf16.msra.mxu0 %v4640_v7  ;;  %4665 = vmatpush1.bf16.msra.mxu1 %v4664_v9  ;;  %v4262_v7 = vld [vmem:[%s8083_s4 + $0x3d0] sm:$0xff]  ;;  %v4272_v9 = vld [vmem:[%s8083_s4 + $0x420] sm:$0xff] }
  0x39   : > { %962 = vmatprep.mubr.f32.mxu0 %v5450_v8  ;;  %4651 = vmatprep.subr.bf16.mxu0 %v4650_v5  ;;  %v4231_v5 = vld [vmem:[%s8083_s4 + $0x328] sm:$0xff]  ;;  %v4724_v17 = vpack.c.bf16 %v4272_v9, %v4262_v7  ;;  %v4333_v7 = vld [vmem:[%s8083_s4 + $0x5b8] sm:$0xff]  ;;  %v4336_v43 = vld [vmem:[%s8083_s4 + $0x5d0] sm:$0xff] }
  0x3a   : > { %1193 = vmatprep.mubr.f32.mxu1 %v5450_v8  ;;  %4683 = vmatprep.subr.bf16.mxu1 %v4682_v16  ;;  %v4676_v16 = vpack.c.bf16 %v4220_v6, %v4210_v3  ;;  %v4678_v19 = vpack.c.bf16 %v4241_v11, %v4231_v5  ;;  %v4762_v3 = vpack.c.bf16 %v4323_v58, %v4313_v55  ;;  %v4249_v6 = vld [vmem:[%s8083_s4 + $0x3b8] sm:$0xff]  ;;  %v4343_v9 = vld [vmem:[%s8083_s4 + $0x608] sm:$0xff]  ;;  %v4238_v11 = vld [vmem:[%s8083_s4 + $0x360] sm:$0xff] }
  0x3b   : > { %4200 = vmatmul.mubr.msk.f32.vlgmr.msra.gmra.mrb[0].mxu0 %vm504_vm8, %v5647_v56  ;;  %4206 = vmatmul.mubr.msk.f32.vlgmr.msra.gmra.mrb[4].mxu1 %vm504_vm8, %v5647_v56  ;;  %v4285_v55 = vld [vmem:[%s8083_s4 + $0x488] sm:$0xff]  ;;  %v4295_v58 = vld [vmem:[%s8083_s4 + $0x4d8] sm:$0xff] }
  0x3c   : > { %4653 = vmatpush1.bf16.msra.mxu0 %v4652_v21  ;;  %4685 = vmatpush1.bf16.msra.mxu1 %v4684_v23  ;;  %v4282_v21 = vld [vmem:[%s8083_s4 + $0x470] sm:$0xff]  ;;  %v4292_v23 = vld [vmem:[%s8083_s4 + $0x4c0] sm:$0xff] }
  0x3d   : > { %968 = vmatprep.mubr.f32.mxu0 %v5450_v8  ;;  %4655 = vmatprep.subr.bf16.mxu0 %v4654_v62  ;;  %v4215_v62 = vld [vmem:[%s8083_s4 + $0x2a8] sm:$0xff]  ;;  %v4728_v29 = vpack.c.bf16 %v4292_v23, %v4282_v21  ;;  %v4317_v21 = vld [vmem:[%s8083_s4 + $0x538] sm:$0xff] }
  0x3e   : > { %1199 = vmatprep.mubr.f32.mxu1 %v5450_v8  ;;  %4687 = vmatprep.subr.bf16.mxu1 %v4686_v28  ;;  %v4680_v28 = vpack.c.bf16 %v4240_v20, %v4230_v18  ;;  %v4766_v18 = vpack.c.bf16 %v4343_v9, %v4333_v7  ;;  %v4271_v20 = vld [vmem:[%s8083_s4 + $0x418] sm:$0xff]  ;;  %v4327_v23 = vld [vmem:[%s8083_s4 + $0x588] sm:$0xff]  ;;  %v2879_v7 = vld [vmem:[%s8085_s6 + $0x350] sm:$0xff] }
  0x3f   : > { %4201 = vmatmul.mubr.msk.f32.gmra.mrb[2].mxu0 %vm504_vm8, %v5649_v57  ;;  %4207 = vmatmul.mubr.msk.f32.gmra.mrb[6].mxu1 %vm504_vm8, %v5649_v57  ;;  %v2875_v9 = vld [vmem:[%s8085_s6 + $0x330] sm:$0xff] }
  0x40   : > { %4657 = vmatpush1.bf16.msra.mxu0 %v4656_v33  ;;  %4689 = vmatpush1.bf16.msra.mxu1 %v4688_v34  ;;  %v4690_v33 = vpack.c.bf16 %v4225_v25, %v4215_v62  ;;  %v4224_v34 = vld [vmem:[%s8083_s4 + $0x2f0] sm:$0xff]  ;;  %v4260_v25 = vld [vmem:[%s8083_s4 + $0x3c0] sm:$0xff] }
  0x41   : > { %1116 = vmatprep.mubr.f32.mxu0 %v5450_v8  ;;  %4667 = vmatprep.subr.bf16.mxu0 %v4666_v40  ;;  %v4235_v40 = vld [vmem:[%s8083_s4 + $0x348] sm:$0xff] }
  0x42   : > { %1473 = vmatprep.mubr.f32.mxu1 %v5450_v8  ;;  %4699 = vmatprep.subr.bf16.mxu1 %v4698_v44  ;;  %v4692_v44 = vpack.c.bf16 %v4224_v34, %v4214_v30  ;;  %v4694_v47 = vpack.c.bf16 %v4245_v41, %v4235_v40  ;;  %v4778_v30 = vpack.c.bf16 %v4327_v23, %v4317_v21  ;;  %v4337_v34 = vld [vmem:[%s8083_s4 + $0x5d8] sm:$0xff]  ;;  %v4280_v40 = vld [vmem:[%s8083_s4 + $0x460] sm:$0xff] }
  0x43   : > { %4204 = vmatmul.mubr.msk.f32.vlgmr.msra.gmra.mrb[4].mxu0 %vm504_vm8, %v5647_v56  ;;  %4252 = vmatmul.mubr.msk.f32.vlgmr.msra.gmra.mrb[0].mxu1 %vm504_vm8, %v5920_v50 }
  0x44   : > { %4669 = vmatpush1.bf16.msra.mxu0 %v4668_v49  ;;  %4701 = vmatpush1.bf16.msra.mxu1 %v4700_v51  ;;  %v4286_v49 = vld [vmem:[%s8083_s4 + $0x490] sm:$0xff]  ;;  %v4296_v51 = vld [vmem:[%s8083_s4 + $0x4e0] sm:$0xff] }
  0x45   : > { %1122 = vmatprep.mubr.f32.mxu0 %v5450_v8  ;;  %4671 = vmatprep.subr.bf16.mxu0 %v4670_v53  ;;  %v4219_v53 = vld [vmem:[%s8083_s4 + $0x2c8] sm:$0xff]  ;;  %v4744_v60 = vpack.c.bf16 %v4296_v51, %v4286_v49  ;;  %v2873_v49 = vld [vmem:[%s8085_s6 + $0x320] sm:$0xff]  ;;  %v4720_v51 = vpack.c.bf16 %v4290_v42, %v4280_v40 }
  0x46   : > { %1479 = vmatprep.mubr.f32.mxu1 %v5450_v8  ;;  %4703 = vmatprep.subr.bf16.mxu1 %v4702_v59  ;;  %v4706_v63 = vpack.c.bf16 %v4229_v54, %v4219_v53  ;;  %v4274_v54 = vld [vmem:[%s8083_s4 + $0x430] sm:$0xff]  ;;  %v2897_v42 = vld [vmem:[%s8085_s6 + $0x3e0] sm:$0xff] }
  0x47   : > { %4205 = vmatmul.mubr.msk.f32.gmra.mrb[6].mxu0 %vm504_vm8, %v5649_v57  ;;  %4253 = vmatmul.mubr.msk.f32.gmra.mrb[2].mxu1 %vm504_vm8, %v5889_v39 }
  0x48   : > { %4673 = vmatpush1.bf16.msra.mxu0 %v4672_v1  ;;  %4705 = vmatpush1.bf16.msra.mxu1 %v4704_v2  ;;  %v4312_v1 = vld [vmem:[%s8083_s4 + $0x510] sm:$0xff]  ;;  %v4322_v2 = vld [vmem:[%s8083_s4 + $0x560] sm:$0xff] }
  0x49   : > { %1270 = vmatprep.mubr.f32.mxu0 %v5450_v8  ;;  %4675 = vmatprep.subr.bf16.mxu0 %v4674_v4  ;;  %v4239_v4 = vld [vmem:[%s8083_s4 + $0x368] sm:$0xff]  ;;  %v4764_v5 = vpack.c.bf16 %v4322_v2, %v4312_v1  ;;  %v4294_v1 = vld [vmem:[%s8083_s4 + $0x4d0] sm:$0xff] }
  0x4a   : > { %1627 = vmatprep.mubr.f32.mxu1 %v5450_v8  ;;  %4723 = vmatprep.subr.bf16.mxu1 %v4722_v10  ;;  %v4708_v10 = vpack.c.bf16 %v4228_v0, %v4218_v61  ;;  %v4710_v12 = vpack.c.bf16 %v4249_v6, %v4239_v4  ;;  %v2872_v61 = vld [vmem:[%s8085_s6 + $0x318] sm:$0xff]  ;;  %v4734_v0 = vpack.c.bf16 %v4295_v58, %v4285_v55  ;;  %v4269_v2 = vld [vmem:[%s8083_s4 + $0x408] sm:$0xff]  ;;  %v4330_v58 = vld [vmem:[%s8083_s4 + $0x5a0] sm:$0xff] }
  0x4b   : > { %4208 = vmatmul.mubr.msk.f32.vlgmr.msra.gmra.mrb[8].mxu0 %vm504_vm8, %v5647_v56  ;;  %4256 = vmatmul.mubr.msk.f32.vlgmr.msra.gmra.mrb[4].mxu1 %vm504_vm8, %v5920_v50  ;;  %v4276_v56 = vld [vmem:[%s8083_s4 + $0x440] sm:$0xff]  ;;  %v2876_v6 = vld [vmem:[%s8085_s6 + $0x338] sm:$0xff] }
  0x4c   : > { %4677 = vmatpush1.bf16.msra.mxu0 %v4676_v16  ;;  %4725 = vmatpush1.bf16.msra.mxu1 %v4724_v17  ;;  %v4740_v46 = vpack.c.bf16 %v4276_v56, %v4266_v36  ;;  %v4332_v16 = vld [vmem:[%s8083_s4 + $0x5b0] sm:$0xff]  ;;  %v4342_v17 = vld [vmem:[%s8083_s4 + $0x600] sm:$0xff]  ;;  %v4347_v36 = vld [vmem:[%s8083_s4 + $0x628] sm:$0xff]  ;;  %v4716_v56 = vpack.c.bf16 %v4270_v27, %v4260_v25 }
  0x4d   : > { %1276 = vmatprep.mubr.f32.mxu0 %v5450_v8  ;;  %4679 = vmatprep.subr.bf16.mxu0 %v4678_v19  ;;  %v4261_v19 = vld [vmem:[%s8083_s4 + $0x3c8] sm:$0xff]  ;;  %v4768_v62 = vpack.c.bf16 %v4342_v17, %v4332_v16  ;;  %v4268_v16 = vld [vmem:[%s8083_s4 + $0x400] sm:$0xff]  ;;  %v4278_v17 = vld [vmem:[%s8083_s4 + $0x450] sm:$0xff] }
  0x4e   : > { %1633 = vmatprep.mubr.f32.mxu1 %v5450_v8  ;;  %4727 = vmatprep.subr.bf16.mxu1 %v4726_v24  ;;  %v4712_v24 = vpack.c.bf16 %v4248_v13, %v4238_v11  ;;  %v4714_v26 = vpack.c.bf16 %v4271_v20, %v4261_v19  ;;  %v2882_v11 = vld [vmem:[%s8085_s6 + $0x368] sm:$0xff]  ;;  %v4299_v20 = vld [vmem:[%s8083_s4 + $0x4f8] sm:$0xff]  ;;  %v4748_v25 = vpack.c.bf16 %v4278_v17, %v4268_v16  ;;  %v2891_v27 = vld [vmem:[%s8085_s6 + $0x3b0] sm:$0xff] }
  0x4f   : > { %4209 = vmatmul.mubr.msk.f32.gmra.mrb[10].mxu0 %vm504_vm8, %v5649_v57  ;;  %4257 = vmatmul.mubr.msk.f32.gmra.mrb[6].mxu1 %vm504_vm8, %v5889_v39  ;;  %v4234_v57 = vld [vmem:[%s8083_s4 + $0x340] sm:$0xff]  ;;  %v4289_v19 = vld [vmem:[%s8083_s4 + $0x4a8] sm:$0xff]  ;;  %v2912_v17 = vld [vmem:[%s8085_s6 + $0x458] sm:$0xff] }
  0x50   : > { %4681 = vmatpush1.bf16.msra.mxu0 %v4680_v28  ;;  %4729 = vmatpush1.bf16.msra.mxu1 %v4728_v29  ;;  %v4696_v59 = vpack.c.bf16 %v4244_v48, %v4234_v57  ;;  %v4316_v28 = vld [vmem:[%s8083_s4 + $0x530] sm:$0xff]  ;;  %v4326_v29 = vld [vmem:[%s8083_s4 + $0x580] sm:$0xff]  ;;  %v4265_v57 = vld [vmem:[%s8083_s4 + $0x3e8] sm:$0xff] }
  0x51   : > { %1396 = vmatprep.mubr.f32.mxu0 %v5450_v8  ;;  %4691 = vmatprep.subr.bf16.mxu0 %v4690_v33  ;;  %v4291_v33 = vld [vmem:[%s8083_s4 + $0x4b8] sm:$0xff]  ;;  %v2870_v48 = vld [vmem:[%s8085_s6 + $0x308] sm:$0xff] }
  0x52   : > { %1927 = vmatprep.mubr.f32.mxu1 %v5450_v8  ;;  %4739 = vmatprep.subr.bf16.mxu1 %v4738_v37  ;;  %v4780_v37 = vpack.c.bf16 %v4326_v29, %v4316_v28  ;;  %v4718_v41 = vpack.c.bf16 %v4291_v33, %v4281_v31  ;;  %v4750_v28 = vpack.c.bf16 %v4299_v20, %v4289_v19  ;;  %v4288_v29 = vld [vmem:[%s8083_s4 + $0x4a0] sm:$0xff]  ;;  %v4311_v31 = vld [vmem:[%s8083_s4 + $0x508] sm:$0xff]  ;;  %v4321_v33 = vld [vmem:[%s8083_s4 + $0x558] sm:$0xff] }
  0x53   : > { %4250 = vmatmul.mubr.msk.f32.vlgmr.msra.gmra.mrb[0].mxu0 %vm504_vm8, %v5920_v50  ;;  %4302 = vmatmul.mubr.msk.f32.vlgmr.msra.gmra.mrb[0].mxu1 %vm504_vm8, %v6047_v45  ;;  %v4334_v19 = vld [vmem:[%s8083_s4 + $0x5c0] sm:$0xff]  ;;  %v4344_v20 = vld [vmem:[%s8083_s4 + $0x610] sm:$0xff] }
  0x54   : > { %4693 = vmatpush1.bf16.msra.mxu0 %v4692_v44  ;;  %4741 = vmatpush1.bf16.msra.mxu1 %v4740_v46  ;;  %v4346_v44 = vld [vmem:[%s8083_s4 + $0x620] sm:$0xff]  ;;  %v4782_v46 = vpack.c.bf16 %v4347_v36, %v4337_v34 }
  0x55   : > { %1402 = vmatprep.mubr.f32.mxu0 %v5450_v8  ;;  %4695 = vmatprep.subr.bf16.mxu0 %v4694_v47  ;;  %v4275_v47 = vld [vmem:[%s8083_s4 + $0x438] sm:$0xff] }
  0x56   : > { %1933 = vmatprep.mubr.f32.mxu1 %v5450_v8  ;;  %4743 = vmatprep.subr.bf16.mxu1 %v4742_v52  ;;  %v4784_v52 = vpack.c.bf16 %v4346_v44, %v4336_v43  ;;  %v4730_v53 = vpack.c.bf16 %v4275_v47, %v4265_v57  ;;  %v4754_v43 = vpack.c.bf16 %v4321_v33, %v4311_v31  ;;  %v4310_v44 = vld [vmem:[%s8083_s4 + $0x500] sm:$0xff]  ;;  %v4331_v57 = vld [vmem:[%s8083_s4 + $0x5a8] sm:$0xff]  ;;  %v4341_v47 = vld [vmem:[%s8083_s4 + $0x5f8] sm:$0xff] }
  0x57   : > { %4251 = vmatmul.mubr.msk.f32.gmra.mrb[2].mxu0 %vm504_vm8, %v5889_v39  ;;  %4303 = vmatmul.mubr.msk.f32.gmra.mrb[2].mxu1 %vm504_vm8, %v6017_v32  ;;  %v4758_v55 = vpack.c.bf16 %v4341_v47, %v4331_v57  ;;  %v4318_v31 = vld [vmem:[%s8083_s4 + $0x540] sm:$0xff]  ;;  %v4328_v33 = vld [vmem:[%s8083_s4 + $0x590] sm:$0xff] }
  0x58   : > { %4697 = vmatpush1.bf16.msra.mxu0 %v4696_v59  ;;  %4745 = vmatpush1.bf16.msra.mxu1 %v4744_v60  ;;  %v4858_v59 = vpack.c.bf16 %v2873_v49, %v2870_v48  ;;  %v2869_v60 = vld [vmem:[%s8085_s6 + $0x300] sm:$0xff]  ;;  %v4348_v47 = vld [vmem:[%s8083_s4 + $0x630] sm:$0xff] }
  0x59   : > { %1550 = vmatprep.mubr.f32.mxu0 %v5450_v8  ;;  %4707 = vmatprep.subr.bf16.mxu0 %v4706_v63  ;;  %v4860_v4 = vpack.c.bf16 %v2872_v61, %v2869_v60  ;;  %v4315_v60 = vld [vmem:[%s8083_s4 + $0x528] sm:$0xff]  ;;  %v4325_v61 = vld [vmem:[%s8083_s4 + $0x578] sm:$0xff]  ;;  %v4338_v57 = vld [vmem:[%s8083_s4 + $0x5e0] sm:$0xff] }
  0x5a   : > { %2081 = vmatprep.mubr.f32.mxu1 %v5450_v8  ;;  %4763 = vmatprep.subr.bf16.mxu1 %v4762_v3  ;;  %v4279_v3 = vld [vmem:[%s8083_s4 + $0x458] sm:$0xff] }
  0x5b   : > { %4254 = vmatmul.mubr.msk.f32.vlgmr.msra.gmra.mrb[4].mxu0 %vm504_vm8, %v5920_v50  ;;  %4306 = vmatmul.mubr.msk.f32.vlgmr.msra.gmra.mrb[4].mxu1 %vm504_vm8, %v6047_v45  ;;  %v4746_v13 = vpack.c.bf16 %v4279_v3, %v4269_v2  ;;  %v2906_v3 = vld [vmem:[%s8085_s6 + $0x428] sm:$0xff] }
  0x5c   : > { %4709 = vmatpush1.bf16.msra.mxu0 %v4708_v10  ;;  %4765 = vmatpush1.bf16.msra.mxu1 %v4764_v5  ;;  %v2878_v10 = vld [vmem:[%s8085_s6 + $0x348] sm:$0xff] }
  0x5d   : > { %1556 = vmatprep.mubr.f32.mxu0 %v5450_v8  ;;  %4711 = vmatprep.subr.bf16.mxu0 %v4710_v12  ;;  %v2885_v12 = vld [vmem:[%s8085_s6 + $0x380] sm:$0xff]  ;;  %v4864_v21 = vpack.c.bf16 %v2878_v10, %v2875_v9  ;;  %v4335_v9 = vld [vmem:[%s8083_s4 + $0x5c8] sm:$0xff]  ;;  %v4345_v10 = vld [vmem:[%s8083_s4 + $0x618] sm:$0xff] }
  0x5e   : > { %2087 = vmatprep.mubr.f32.mxu1 %v5450_v8  ;;  %4767 = vmatprep.subr.bf16.mxu1 %v4766_v18  ;;  %v4862_v18 = vpack.c.bf16 %v2879_v7, %v2876_v6  ;;  %v4866_v23 = vpack.c.bf16 %v2885_v12, %v2882_v11  ;;  %v4314_v6 = vld [vmem:[%s8083_s4 + $0x520] sm:$0xff]  ;;  %v4324_v7 = vld [vmem:[%s8083_s4 + $0x570] sm:$0xff] }
  0x5f   : > { %4255 = vmatmul.mubr.msk.f32.gmra.mrb[6].mxu0 %vm504_vm8, %v5889_v39  ;;  %4307 = vmatmul.mubr.msk.f32.gmra.mrb[6].mxu1 %vm504_vm8, %v6017_v32  ;;  %v2905_v12 = vld [vmem:[%s8085_s6 + $0x420] sm:$0xff]  ;;  %v4772_v16 = vpack.c.bf16 %v4324_v7, %v4314_v6  ;;  %v2939_v6 = vld [vmem:[%s8085_s6 + $0x530] sm:$0xff] }
  0x60   : > { %4713 = vmatpush1.bf16.msra.mxu0 %v4712_v24  ;;  %4769 = vmatpush1.bf16.msra.mxu1 %v4768_v62  ;;  %v2881_v24 = vld [vmem:[%s8085_s6 + $0x360] sm:$0xff]  ;;  %v2884_v62 = vld [vmem:[%s8085_s6 + $0x378] sm:$0xff] }
  0x61   : > { %1704 = vmatprep.mubr.f32.mxu0 %v5450_v8  ;;  %4715 = vmatprep.subr.bf16.mxu0 %v4714_v26  ;;  %v2888_v26 = vld [vmem:[%s8085_s6 + $0x398] sm:$0xff]  ;;  %v4868_v34 = vpack.c.bf16 %v2884_v62, %v2881_v24 }
  0x62   : > { %2381 = vmatprep.mubr.f32.mxu1 %v5450_v8  ;;  %4779 = vmatprep.subr.bf16.mxu1 %v4778_v30  ;;  %v4298_v30 = vld [vmem:[%s8083_s4 + $0x4f0] sm:$0xff]  ;;  %v4870_v36 = vpack.c.bf16 %v2891_v27, %v2888_v26  ;;  %v2914_v26 = vld [vmem:[%s8085_s6 + $0x468] sm:$0xff]  ;;  %v4776_v27 = vpack.c.bf16 %v4344_v20, %v4334_v19  ;;  %v2785_v20 = vld [vmem:[%s8085_s6 + $0x60] sm:$0xff] }
  0x63   : > { %4258 = vmatmul.mubr.msk.f32.vlgmr.msra.gmra.mrb[8].mxu0 %vm504_vm8, %v5920_v50  ;;  %4352 = vmatmul.mubr.msk.f32.vlgmr.msra.gmra.mrb[0].mxu1 %vm504_vm8, %v5716_v22  ;;  %v4264_v50 = vld [vmem:[%s8083_s4 + $0x3e0] sm:$0xff]  ;;  %v4752_v40 = vpack.c.bf16 %v4298_v30, %v4288_v29 }
  0x64   : > { %4717 = vmatpush1.bf16.msra.mxu0 %v4716_v56  ;;  %4781 = vmatpush1.bf16.msra.mxu1 %v4780_v37  ;;  %v4732_v63 = vpack.c.bf16 %v4274_v54, %v4264_v50  ;;  %v2887_v56 = vld [vmem:[%s8085_s6 + $0x390] sm:$0xff]  ;;  %v2890_v37 = vld [vmem:[%s8085_s6 + $0x3a8] sm:$0xff]  ;;  %v2900_v50 = vld [vmem:[%s8085_s6 + $0x3f8] sm:$0xff] }
  0x65   : > { %1710 = vmatprep.mubr.f32.mxu0 %v5450_v8  ;;  %4719 = vmatprep.subr.bf16.mxu0 %v4718_v41  ;;  %v2894_v41 = vld [vmem:[%s8085_s6 + $0x3c8] sm:$0xff]  ;;  %v4872_v48 = vpack.c.bf16 %v2890_v37, %v2887_v56  ;;  %v2903_v54 = vld [vmem:[%s8085_s6 + $0x410] sm:$0xff]  ;;  %v2921_v29 = vld [vmem:[%s8085_s6 + $0x4a0] sm:$0xff] }
  0x66   : > { %2387 = vmatprep.mubr.f32.mxu1 %v5450_v8  ;;  %4783 = vmatprep.subr.bf16.mxu1 %v4782_v46  ;;  %v4320_v46 = vld [vmem:[%s8083_s4 + $0x550] sm:$0xff]  ;;  %v4874_v49 = vpack.c.bf16 %v2897_v42, %v2894_v41  ;;  %v2920_v41 = vld [vmem:[%s8085_s6 + $0x498] sm:$0xff]  ;;  %v4788_v42 = vpack.c.bf16 %v4328_v33, %v4318_v31  ;;  %v2794_v31 = vld [vmem:[%s8085_s6 + $0xa8] sm:$0xff] }
  0x67   : > { %4259 = vmatmul.mubr.msk.f32.gmra.mrb[10].mxu0 %vm504_vm8, %v5889_v39  ;;  %4353 = vmatmul.mubr.msk.f32.gmra.mrb[2].mxu1 %vm504_vm8, %v5698_v15  ;;  %v4284_v39 = vld [vmem:[%s8083_s4 + $0x480] sm:$0xff]  ;;  %v2798_v33 = vld [vmem:[%s8085_s6 + $0xc8] sm:$0xff] }
  0x68   : > { %4721 = vmatpush1.bf16.msra.mxu0 %v4720_v51  ;;  %4785 = vmatpush1.bf16.msra.mxu1 %v4784_v52  ;;  %v4736_v5 = vpack.c.bf16 %v4294_v1, %v4284_v39  ;;  %v2893_v51 = vld [vmem:[%s8085_s6 + $0x3c0] sm:$0xff]  ;;  %v2896_v52 = vld [vmem:[%s8085_s6 + $0x3d8] sm:$0xff]  ;;  %v2899_v39 = vld [vmem:[%s8085_s6 + $0x3f0] sm:$0xff] }
  0x69   : > { %1850 = vmatprep.mubr.f32.mxu0 %v5450_v8  ;;  %4731 = vmatprep.subr.bf16.mxu0 %v4730_v53  ;;  %v4756_v53 = vpack.c.bf16 %v4320_v46, %v4310_v44  ;;  %v2902_v1 = vld [vmem:[%s8085_s6 + $0x408] sm:$0xff]  ;;  %v2927_v44 = vld [vmem:[%s8085_s6 + $0x4d0] sm:$0xff] }
  0x6a   : > { %2535 = vmatprep.mubr.f32.mxu1 %v5450_v8  ;;  %4859 = vmatprep.subr.bf16.mxu1 %v4858_v59  ;;  %v4340_v59 = vld [vmem:[%s8083_s4 + $0x5f0] sm:$0xff] }
  0x6b   : > { %4300 = vmatmul.mubr.msk.f32.vlgmr.msra.gmra.mrb[0].mxu0 %vm504_vm8, %v6047_v45  ;;  %4356 = vmatmul.mubr.msk.f32.vlgmr.msra.gmra.mrb[4].mxu1 %vm504_vm8, %v5716_v22  ;;  %v4760_v2 = vpack.c.bf16 %v4340_v59, %v4330_v58  ;;  %v2933_v58 = vld [vmem:[%s8085_s6 + $0x500] sm:$0xff] }
  0x6c   : > { %4733 = vmatpush1.bf16.msra.mxu0 %v4732_v63  ;;  %1856 = vmatprep.mubr.f32.mxu0 %v5450_v8  ;;  %v4876_v63 = vpack.c.bf16 %v2896_v52, %v2893_v51 }
  0x6d   : > { %4735 = vmatprep.subr.bf16.mxu0 %v4734_v0  ;;  %2541 = vmatprep.mubr.f32.mxu1 %v5450_v8  ;;  %v4878_v0 = vpack.c.bf16 %v2903_v54, %v2900_v50  ;;  %v2926_v50 = vld [vmem:[%s8085_s6 + $0x4c8] sm:$0xff]  ;;  %v4792_v54 = vpack.c.bf16 %v4348_v47, %v4338_v57  ;;  %v2800_v57 = vld [vmem:[%s8085_s6 + $0xd8] sm:$0xff] }
  0x6e   : > { %4861 = vmatpush1.bf16.msra.mxu1 %v4860_v4  ;;  %v4770_v4 = vpack.c.bf16 %v4325_v61, %v4315_v60  ;;  %v2773_v60 = vld [vmem:[%s8085_s6] sm:$0xff]  ;;  %v2776_v61 = vld [vmem:[%s8085_s6 + $0x18] sm:$0xff] }
  0x6f   : > { %4301 = vmatmul.mubr.msk.f32.gmra.mrb[2].mxu0 %vm504_vm8, %v6017_v32  ;;  %4357 = vmatmul.mubr.msk.f32.gmra.mrb[6].mxu1 %vm504_vm8, %v5698_v15  ;;  %v2804_v47 = vld [vmem:[%s8085_s6 + $0xf8] sm:$0xff] }
  0x70   : > { %4737 = vmatpush1.bf16.msra.mxu0 %v4736_v5  ;;  %2004 = vmatprep.mubr.f32.mxu0 %v5450_v8  ;;  %v4880_v5 = vpack.c.bf16 %v2902_v1, %v2899_v39 }
  0x71   : > { %4747 = vmatprep.subr.bf16.mxu0 %v4746_v13  ;;  %4863 = vmatprep.subr.bf16.mxu1 %v4862_v18  ;;  %v2908_v13 = vld [vmem:[%s8085_s6 + $0x438] sm:$0xff]  ;;  %v4774_v18 = vpack.c.bf16 %v4345_v10, %v4335_v9  ;;  %v2779_v9 = vld [vmem:[%s8085_s6 + $0x30] sm:$0xff]  ;;  %v2782_v10 = vld [vmem:[%s8085_s6 + $0x48] sm:$0xff] }
  0x72   : > { %4865 = vmatpush1.bf16.msra.mxu1 %v4864_v21  ;;  %v4319_v21 = vld [vmem:[%s8083_s4 + $0x548] sm:$0xff]  ;;  %v4884_v24 = vpack.c.bf16 %v2908_v13, %v2905_v12 }
  0x73   : > { %4304 = vmatmul.mubr.msk.f32.vlgmr.msra.gmra.mrb[4].mxu0 %vm504_vm8, %v6047_v45  ;;  %4867 = vmatprep.subr.bf16.mxu1 %v4866_v23  ;;  %v4329_v23 = vld [vmem:[%s8083_s4 + $0x598] sm:$0xff] }
  0x74   : > { %4749 = vmatpush1.bf16.msra.mxu0 %v4748_v25  ;;  %2010 = vmatprep.mubr.f32.mxu0 %v5450_v8  ;;  %v2911_v25 = vld [vmem:[%s8085_s6 + $0x450] sm:$0xff]  ;;  %v4786_v30 = vpack.c.bf16 %v4329_v23, %v4319_v21  ;;  %v2792_v21 = vld [vmem:[%s8085_s6 + $0x98] sm:$0xff] }
  0x75   : > { %4751 = vmatprep.subr.bf16.mxu0 %v4750_v28  ;;  %v2918_v28 = vld [vmem:[%s8085_s6 + $0x488] sm:$0xff]  ;;  %v4888_v56 = vpack.c.bf16 %v2914_v26, %v2911_v25  ;;  %v2795_v23 = vld [vmem:[%s8085_s6 + $0xb0] sm:$0xff]  ;;  %v2941_v25 = vld [vmem:[%s8085_s6 + $0x540] sm:$0xff] }
  0x76   : > { %4869 = vmatpush1.bf16.msra.mxu1 %v4868_v34  ;;  %v4339_v34 = vld [vmem:[%s8083_s4 + $0x5e8] sm:$0xff]  ;;  %v4890_v37 = vpack.c.bf16 %v2921_v29, %v2918_v28  ;;  %v2944_v26 = vld [vmem:[%s8085_s6 + $0x558] sm:$0xff]  ;;  %v4806_v29 = vpack.c.bf16 %v2795_v23, %v2792_v21 }
  0x77   : > { %4305 = vmatmul.mubr.msk.f32.gmra.mrb[6].mxu0 %vm504_vm8, %v6017_v32  ;;  %4871 = vmatprep.subr.bf16.mxu1 %v4870_v36  ;;  %v4349_v36 = vld [vmem:[%s8083_s4 + $0x638] sm:$0xff] }
  0x78   : > { %4753 = vmatpush1.bf16.msra.mxu0 %v4752_v40  ;;  %2158 = vmatprep.mubr.f32.mxu0 %v5450_v8  ;;  %v2917_v40 = vld [vmem:[%s8085_s6 + $0x480] sm:$0xff]  ;;  %v4790_v46 = vpack.c.bf16 %v4349_v36, %v4339_v34  ;;  %v2948_v28 = vld [vmem:[%s8085_s6 + $0x578] sm:$0xff]  ;;  %v4908_v36 = vpack.c.bf16 %v2944_v26, %v2941_v25  ;;  %v2827_v26 = vld [vmem:[%s8085_s6 + $0x1b0] sm:$0xff] }
  0x79   : > { %4755 = vmatprep.subr.bf16.mxu0 %v4754_v43  ;;  %v2924_v43 = vld [vmem:[%s8085_s6 + $0x4b8] sm:$0xff]  ;;  %v4892_v51 = vpack.c.bf16 %v2920_v41, %v2917_v40  ;;  %v2801_v34 = vld [vmem:[%s8085_s6 + $0xe0] sm:$0xff]  ;;  %v2950_v40 = vld [vmem:[%s8085_s6 + $0x588] sm:$0xff] }
  0x7a   : > { %4873 = vmatpush1.bf16.msra.mxu1 %v4872_v48  ;;  %v2774_v48 = vld [vmem:[%s8085_s6 + $0x8] sm:$0xff]  ;;  %v4894_v52 = vpack.c.bf16 %v2927_v44, %v2924_v43  ;;  %v2957_v43 = vld [vmem:[%s8085_s6 + $0x5c0] sm:$0xff]  ;;  %v4810_v44 = vpack.c.bf16 %v2801_v34, %v2798_v33  ;;  %v2836_v33 = vld [vmem:[%s8085_s6 + $0x1f8] sm:$0xff] }
  0x7b   : > { %4308 = vmatmul.mubr.msk.f32.vlgmr.msra.gmra.mrb[8].mxu0 %vm504_vm8, %v6047_v45  ;;  %4875 = vmatprep.subr.bf16.mxu1 %v4874_v49  ;;  %v2909_v45 = vld [vmem:[%s8085_s6 + $0x440] sm:$0xff] }
  0x7c   : > { %4757 = vmatpush1.bf16.msra.mxu0 %v4756_v53  ;;  %2164 = vmatprep.mubr.f32.mxu0 %v5450_v8  ;;  %v4882_v11 = vpack.c.bf16 %v2909_v45, %v2906_v3  ;;  %v2777_v49 = vld [vmem:[%s8085_s6 + $0x20] sm:$0xff]  ;;  %v2923_v53 = vld [vmem:[%s8085_s6 + $0x4b0] sm:$0xff]  ;;  %v2932_v3 = vld [vmem:[%s8085_s6 + $0x4f8] sm:$0xff]  ;;  %v4796_v45 = vpack.c.bf16 %v2776_v61, %v2773_v60 }
  0x7d   : > { %4759 = vmatprep.subr.bf16.mxu0 %v4758_v55  ;;  %v2930_v55 = vld [vmem:[%s8085_s6 + $0x4e8] sm:$0xff]  ;;  %v4794_v59 = vpack.c.bf16 %v2777_v49, %v2774_v48  ;;  %v4896_v39 = vpack.c.bf16 %v2926_v50, %v2923_v53  ;;  %v2807_v48 = vld [vmem:[%s8085_s6 + $0x110] sm:$0xff]  ;;  %v2956_v53 = vld [vmem:[%s8085_s6 + $0x5b8] sm:$0xff] }
  0x7e   : > { %4877 = vmatpush1.bf16.msra.mxu1 %v4876_v63  ;;  %v2780_v63 = vld [vmem:[%s8085_s6 + $0x38] sm:$0xff]  ;;  %v4898_v1 = vpack.c.bf16 %v2933_v58, %v2930_v55  ;;  %v2803_v55 = vld [vmem:[%s8085_s6 + $0xf0] sm:$0xff]  ;;  %v2806_v58 = vld [vmem:[%s8085_s6 + $0x108] sm:$0xff] }
  0x7f   : > { %4309 = vmatmul.mubr.msk.f32.gmra.mrb[10].mxu0 %vm504_vm8, %v6017_v32  ;;  %4879 = vmatprep.subr.bf16.mxu1 %v4878_v0  ;;  %v2915_v32 = vld [vmem:[%s8085_s6 + $0x470] sm:$0xff]  ;;  %v2813_v60 = vld [vmem:[%s8085_s6 + $0x140] sm:$0xff] }
  0x80   : > { %4761 = vmatpush1.bf16.msra.mxu0 %v4760_v2  ;;  %2304 = vmatprep.mubr.f32.mxu0 %v5450_v8  ;;  %v4886_v62 = vpack.c.bf16 %v2915_v32, %v2912_v17  ;;  %v2783_v0 = vld [vmem:[%s8085_s6 + $0x50] sm:$0xff]  ;;  %v2929_v2 = vld [vmem:[%s8085_s6 + $0x4e0] sm:$0xff]  ;;  %v2938_v17 = vld [vmem:[%s8085_s6 + $0x528] sm:$0xff]  ;;  %v4800_v32 = vpack.c.bf16 %v2782_v10, %v2779_v9 }
  0x81   : > { %4771 = vmatprep.subr.bf16.mxu0 %v4770_v4  ;;  %v2936_v4 = vld [vmem:[%s8085_s6 + $0x518] sm:$0xff]  ;;  %v4798_v7 = vpack.c.bf16 %v2783_v0, %v2780_v63  ;;  %v4900_v12 = vpack.c.bf16 %v2932_v3, %v2929_v2  ;;  %v4816_v63 = vpack.c.bf16 %v2806_v58, %v2803_v55  ;;  %v2815_v9 = vld [vmem:[%s8085_s6 + $0x150] sm:$0xff]  ;;  %v2818_v10 = vld [vmem:[%s8085_s6 + $0x168] sm:$0xff] }
  0x82   : > { %4881 = vmatpush1.bf16.msra.mxu1 %v4880_v5  ;;  %v2786_v5 = vld [vmem:[%s8085_s6 + $0x68] sm:$0xff]  ;;  %v4902_v13 = vpack.c.bf16 %v2939_v6, %v2936_v4  ;;  %v2816_v3 = vld [vmem:[%s8085_s6 + $0x158] sm:$0xff]  ;;  %v2861_v58 = vld [vmem:[%s8085_s6 + $0x2c0] sm:$0xff] }
  0x83   : > { %4350 = vmatmul.mubr.msk.f32.vlgmr.msra.gmra.mrb[0].mxu0 %vm504_vm8, %v5716_v22  ;;  %4883 = vmatprep.subr.bf16.mxu1 %v4882_v11  ;;  %v2789_v11 = vld [vmem:[%s8085_s6 + $0x80] sm:$0xff]  ;;  %v2960_v4 = vld [vmem:[%s8085_s6 + $0x5d8] sm:$0xff]  ;;  %v2858_v55 = vld [vmem:[%s8085_s6 + $0x2a8] sm:$0xff] }
  0x84   : > { %4773 = vmatpush1.bf16.msra.mxu0 %v4772_v16  ;;  %2310 = vmatprep.mubr.f32.mxu0 %v5450_v8  ;;  %v2935_v16 = vld [vmem:[%s8085_s6 + $0x510] sm:$0xff]  ;;  %v4802_v19 = vpack.c.bf16 %v2789_v11, %v2786_v5  ;;  %v4824_v11 = vpack.c.bf16 %v2818_v10, %v2815_v9  ;;  %v2659_v9 = vsub.s32 2, %v5565_v14  ;;  %v6755_v10 = vld [vmem:[%s8084_s5] sm:$0xff] }
  0x85   : > { %4775 = vmatprep.subr.bf16.mxu0 %v4774_v18  ;;  %v2942_v18 = vld [vmem:[%s8085_s6 + $0x548] sm:$0xff] }
  0x86   : > { %4885 = vmatpush1.bf16.msra.mxu1 %v4884_v24  ;;  %v4904_v24 = vpack.c.bf16 %v2938_v17, %v2935_v16  ;;  %v2822_v17 = vld [vmem:[%s8085_s6 + $0x188] sm:$0xff] }
  0x87   : > { %4351 = vmatmul.mubr.msk.f32.gmra.mrb[2].mxu0 %vm504_vm8, %v5698_v15  ;;  %4887 = vmatprep.subr.bf16.mxu1 %v4886_v62 }
  0x88   : > { %4777 = vmatpush1.bf16.msra.mxu0 %v4776_v27  ;;  %2458 = vmatprep.mubr.f32.mxu0 %v5450_v8 }
  0x89   : > { %4787 = vmatprep.subr.bf16.mxu0 %v4786_v30  ;;  %v2791_v30 = vld [vmem:[%s8085_s6 + $0x90] sm:$0xff] }
  0x8a   : > { %4889 = vmatpush1.bf16.msra.mxu1 %v4888_v56  ;;  %v4808_v41 = vpack.c.bf16 %v2794_v31, %v2791_v30  ;;  %v2833_v31 = vld [vmem:[%s8085_s6 + $0x1e0] sm:$0xff] }
  0x8b   : > { %4354 = vmatmul.mubr.msk.f32.vlgmr.msra.gmra.mrb[4].mxu0 %vm504_vm8, %v5716_v22  ;;  %4891 = vmatprep.subr.bf16.mxu1 %v4890_v37  ;;  %v2947_v37 = vld [vmem:[%s8085_s6 + $0x570] sm:$0xff]  ;;  %v4836_v34 = vpack.c.bf16 %v2836_v33, %v2833_v31  ;;  %v2974_v31 = vld [vmem:[%s8085_s6 + $0x648] sm:$0xff] }
  0x8c   : > { %4789 = vmatpush1.bf16.msra.mxu0 %v4788_v42  ;;  %2464 = vmatprep.mubr.f32.mxu0 %v5450_v8  ;;  %v2954_v42 = vld [vmem:[%s8085_s6 + $0x5a8] sm:$0xff]  ;;  %v4912_v49 = vpack.c.bf16 %v2950_v40, %v2947_v37  ;;  %v2839_v40 = vld [vmem:[%s8085_s6 + $0x210] sm:$0xff] }
  0x8d   : > { %4791 = vmatprep.subr.bf16.mxu0 %v4790_v46  ;;  %v2797_v46 = vld [vmem:[%s8085_s6 + $0xc0] sm:$0xff] }
  0x8e   : > { %4893 = vmatpush1.bf16.msra.mxu1 %v4892_v51  ;;  %v4914_v51 = vpack.c.bf16 %v2957_v43, %v2954_v42  ;;  %v4812_v50 = vpack.c.bf16 %v2800_v57, %v2797_v46  ;;  %v2846_v43 = vld [vmem:[%s8085_s6 + $0x248] sm:$0xff]  ;;  %v2845_v57 = vld [vmem:[%s8085_s6 + $0x240] sm:$0xff] }
  0x8f   : > { %4355 = vmatmul.mubr.msk.f32.gmra.mrb[6].mxu0 %vm504_vm8, %v5698_v15  ;;  %4895 = vmatprep.subr.bf16.mxu1 %v4894_v52  ;;  %v2953_v52 = vld [vmem:[%s8085_s6 + $0x5a0] sm:$0xff] }
  0x90   : > { %4793 = vmatpush1.bf16.msra.mxu0 %v4792_v54  ;;  %2612 = vmatprep.mubr.f32.mxu0 %v5450_v8  ;;  %v4814_v54 = vpack.c.bf16 %v2807_v48, %v2804_v47  ;;  %v4916_v61 = vpack.c.bf16 %v2956_v53, %v2953_v52  ;;  %v2848_v47 = vld [vmem:[%s8085_s6 + $0x258] sm:$0xff]  ;;  %v2851_v53 = vld [vmem:[%s8085_s6 + $0x270] sm:$0xff] }
  0x91   : > { %4795 = vmatprep.subr.bf16.mxu0 %v4794_v59  ;;  %v2810_v59 = vld [vmem:[%s8085_s6 + $0x128] sm:$0xff]  ;;  %v4844_v48 = vpack.c.bf16 %v2848_v47, %v2845_v57  ;;  %v2977_v57 = vld [vmem:[%s8085_s6 + $0x660] sm:$0xff]  ;;  %v2980_v47 = vld [vmem:[%s8085_s6 + $0x678] sm:$0xff] }
  0x92   : > { %4897 = vmatpush1.bf16.msra.mxu1 %v4896_v39  ;;  %v4818_v0 = vpack.c.bf16 %v2813_v60, %v2810_v59  ;;  %v2809_v39 = vld [vmem:[%s8085_s6 + $0x120] sm:$0xff]  ;;  %v4850_v59 = vpack.c.bf16 %v2861_v58, %v2858_v55  ;;  %v2983_v58 = vld [vmem:[%s8085_s6 + $0x690] sm:$0xff] }
  0x93   : > { %4358 = vmatmul.mubr.msk.f32.vlgmr.msra.gmra.mrb[8].mxu0 %vm504_vm8, %v5716_v22  ;;  %4899 = vmatprep.subr.bf16.mxu1 %v4898_v1  ;;  %v2945_v22 = vld [vmem:[%s8085_s6 + $0x560] sm:$0xff]  ;;  %v2812_v1 = vld [vmem:[%s8085_s6 + $0x138] sm:$0xff] }
  0x94   : > { %2618 = vmatprep.mubr.f32.mxu0 %v5450_v8  ;;  %4797 = vmatpush1.bf16.msra.mxu0 %v4796_v45  ;;  %v2788_v8 = vld [vmem:[%s8085_s6 + $0x78] sm:$0xff]  ;;  %v4906_v62 = vpack.c.bf16 %v2945_v22, %v2942_v18  ;;  %v4820_v2 = vpack.c.bf16 %v2812_v1, %v2809_v39  ;;  %v2819_v45 = vld [vmem:[%s8085_s6 + $0x170] sm:$0xff]  ;;  %v2966_v18 = vld [vmem:[%s8085_s6 + $0x608] sm:$0xff] }
  0x95   : > { %4799 = vmatprep.subr.bf16.mxu0 %v4798_v7  ;;  %v4804_v27 = vpack.c.bf16 %v2788_v8, %v2785_v20  ;;  %v4822_v6 = vpack.c.bf16 %v2819_v45, %v2816_v3  ;;  %v2963_v7 = vld [vmem:[%s8085_s6 + $0x5f0] sm:$0xff]  ;;  %v2821_v20 = vld [vmem:[%s8085_s6 + $0x180] sm:$0xff]  ;;  %v2824_v8 = vld [vmem:[%s8085_s6 + $0x198] sm:$0xff] }
  0x96   : > { %4901 = vmatpush1.bf16.msra.mxu1 %v4900_v12  ;;  %v4918_v5 = vpack.c.bf16 %v2963_v7, %v2960_v4  ;;  %v2959_v12 = vld [vmem:[%s8085_s6 + $0x5d0] sm:$0xff]  ;;  %v4828_v23 = vpack.c.bf16 %v2824_v8, %v2821_v20  ;;  %v2857_v60 = vld [vmem:[%s8085_s6 + $0x2a0] sm:$0xff]  ;;  %v2866_v3 = vld [vmem:[%s8085_s6 + $0x2e8] sm:$0xff]  ;;  %v2679_v20 = vsub.s32 7, %v5565_v14 }
  0x97   : > { %4359 = vmatmul.mubr.msk.f32.gmra.mrb[10].mxu0 %vm504_vm8, %v5698_v15  ;;  %4903 = vmatprep.subr.bf16.mxu1 %v4902_v13  ;;  %v2951_v15 = vld [vmem:[%s8085_s6 + $0x590] sm:$0xff]  ;;  %v2962_v13 = vld [vmem:[%s8085_s6 + $0x5e8] sm:$0xff]  ;;  %v2972_v8 = vld [vmem:[%s8085_s6 + $0x638] sm:$0xff] }
  0x98   : > { %4801 = vmatpush1.bf16.msra.mxu0 %v4800_v32  ;;  %v4910_v56 = vpack.c.bf16 %v2951_v15, %v2948_v28  ;;  %v4920_v16 = vpack.c.bf16 %v2962_v13, %v2959_v12  ;;  %v2825_v32 = vld [vmem:[%s8085_s6 + $0x1a0] sm:$0xff]  ;;  %v2834_v15 = vld [vmem:[%s8085_s6 + $0x1e8] sm:$0xff]  ;;  %v2867_v39 = vld [vmem:[%s8085_s6 + $0x2f0] sm:$0xff]  ;;  %v2660_v12 = vrot.slane %v6755_v10, %v2659_v9 }
  0x99   : > { %4803 = vmatprep.subr.bf16.mxu0 %v4802_v19  ;;  %v4826_v22 = vpack.c.bf16 %v2825_v32, %v2822_v17  ;;  %v2969_v19 = vld [vmem:[%s8085_s6 + $0x620] sm:$0xff]  ;;  %v2823_v4 = vld [vmem:[%s8085_s6 + $0x190] sm:$0xff]  ;;  %v2998_v9 = vld [vmem:[%s8085_s6 + $0x708] sm:$0xff] }
  0x9a   : > { %4905 = vmatpush1.bf16.msra.mxu1 %v4904_v24  ;;  %v4922_v21 = vpack.c.bf16 %v2969_v19, %v2966_v18  ;;  %v2828_v24 = vld [vmem:[%s8085_s6 + $0x1b8] sm:$0xff]  ;;  %v2965_v18 = vld [vmem:[%s8085_s6 + $0x600] sm:$0xff] }
  0x9b   : > { %4907 = vmatprep.subr.bf16.mxu1 %v4906_v62  ;;  %v2831_v62 = vld [vmem:[%s8085_s6 + $0x1d0] sm:$0xff] }
  0x9c   : > { %4805 = vmatpush1.bf16.msra.mxu0 %v4804_v27  ;;  %v4830_v25 = vpack.c.bf16 %v2831_v62, %v2828_v24  ;;  %v2830_v27 = vld [vmem:[%s8085_s6 + $0x1c8] sm:$0xff] }
  0x9d   : > { %4807 = vmatprep.subr.bf16.mxu0 %v4806_v29  ;;  %v4832_v28 = vpack.c.bf16 %v2830_v27, %v2827_v26  ;;  %v2837_v29 = vld [vmem:[%s8085_s6 + $0x200] sm:$0xff] }
  0x9e   : > { %4909 = vmatpush1.bf16.msra.mxu1 %v4908_v36  ;;  %v4834_v30 = vpack.c.bf16 %v2837_v29, %v2834_v15  ;;  %v2840_v36 = vld [vmem:[%s8085_s6 + $0x218] sm:$0xff] }
  0x9f   : > { %4911 = vmatprep.subr.bf16.mxu1 %v4910_v56  ;;  %v2843_v56 = vld [vmem:[%s8085_s6 + $0x230] sm:$0xff] }
  0xa0   : > { %4809 = vmatpush1.bf16.msra.mxu0 %v4808_v41  ;;  %v4838_v37 = vpack.c.bf16 %v2843_v56, %v2840_v36  ;;  %v2842_v41 = vld [vmem:[%s8085_s6 + $0x228] sm:$0xff]  ;;  %v2981_v56 = vld [vmem:[%s8085_s6 + $0x680] sm:$0xff] }
  0xa1   : > { %4811 = vmatprep.subr.bf16.mxu0 %v4810_v44  ;;  %v4840_v42 = vpack.c.bf16 %v2842_v41, %v2839_v40  ;;  %v2849_v44 = vld [vmem:[%s8085_s6 + $0x260] sm:$0xff]  ;;  %v2978_v36 = vld [vmem:[%s8085_s6 + $0x668] sm:$0xff] }
  0xa2   : > { %4913 = vmatpush1.bf16.msra.mxu1 %v4912_v49  ;;  %v4842_v46 = vpack.c.bf16 %v2849_v44, %v2846_v43  ;;  %v2852_v49 = vld [vmem:[%s8085_s6 + $0x278] sm:$0xff]  ;;  %v4930_v38 = vpack.c.bf16 %v2981_v56, %v2978_v36  ;;  %v3013_v36 = vld [vmem:[%s8085_s6 + $0x780] sm:$0xff] }
  0xa3   : > { %4915 = vmatprep.subr.bf16.mxu1 %v4914_v51  ;;  %v2855_v51 = vld [vmem:[%s8085_s6 + $0x290] sm:$0xff]  ;;  %v3016_v56 = vld [vmem:[%s8085_s6 + $0x798] sm:$0xff] }
  0xa4   : > { %4813 = vmatpush1.bf16.msra.mxu0 %v4812_v50  ;;  %v4846_v52 = vpack.c.bf16 %v2855_v51, %v2852_v49  ;;  %v2854_v50 = vld [vmem:[%s8085_s6 + $0x288] sm:$0xff]  ;;  %v2984_v49 = vld [vmem:[%s8085_s6 + $0x698] sm:$0xff]  ;;  %v2987_v51 = vld [vmem:[%s8085_s6 + $0x6b0] sm:$0xff] }
  0xa5   : > { %4815 = vmatprep.subr.bf16.mxu0 %v4814_v54  ;;  %v4848_v54 = vpack.c.bf16 %v2854_v50, %v2851_v53  ;;  %v4932_v53 = vpack.c.bf16 %v2980_v47, %v2977_v57  ;;  %v4934_v55 = vpack.c.bf16 %v2987_v51, %v2984_v49  ;;  %v2775_v57 = vld [vmem:[%s8085_s6 + $0x10] sm:$0xff]  ;;  %v2778_v47 = vld [vmem:[%s8085_s6 + $0x28] sm:$0xff]  ;;  %v3020_v49 = vld [vmem:[%s8085_s6 + $0x7b8] sm:$0xff] }
  0xa6   : > { %4917 = vmatpush1.bf16.msra.mxu1 %v4916_v61  ;;  %v2860_v61 = vld [vmem:[%s8085_s6 + $0x2b8] sm:$0xff] }
  0xa7   : > { %4919 = vmatprep.subr.bf16.mxu1 %v4918_v5  ;;  %v2663_v5 = vsub.s32 3, %v5565_v14 }
  0xa8   : > { %4817 = vmatpush1.bf16.msra.mxu0 %v4816_v63  ;;  %v4852_v63 = vpack.c.bf16 %v2860_v61, %v2857_v60  ;;  %v2990_v61 = vld [vmem:[%s8085_s6 + $0x6c8] sm:$0xff] }
  0xa9   : > { %4819 = vmatprep.subr.bf16.mxu0 %v4818_v0  ;;  %v2864_v0 = vld [vmem:[%s8085_s6 + $0x2d8] sm:$0xff]  ;;  %v2664_v13 = vrot.slane %v6755_v10, %v2663_v5  ;;  %v3002_v5 = vld [vmem:[%s8085_s6 + $0x728] sm:$0xff] }
  0xaa   : > { %4921 = vmatpush1.bf16.msra.mxu1 %v4920_v16  ;;  %v4854_v1 = vpack.c.bf16 %v2867_v39, %v2864_v0 }
  0xab   : > { %4923 = vmatprep.subr.bf16.mxu1 %v4922_v21  ;;  %v2975_v21 = vld [vmem:[%s8085_s6 + $0x650] sm:$0xff] }
  0xac   : > { %4821 = vmatpush1.bf16.msra.mxu0 %v4820_v2  ;;  %v2863_v2 = vld [vmem:[%s8085_s6 + $0x2d0] sm:$0xff]  ;;  %v4926_v29 = vpack.c.bf16 %v2975_v21, %v2972_v8 }
  0xad   : > { %4823 = vmatprep.subr.bf16.mxu0 %v4822_v6  ;;  %v4856_v45 = vpack.c.bf16 %v2866_v3, %v2863_v2  ;;  %v2826_v6 = vld [vmem:[%s8085_s6 + $0x1a8] sm:$0xff]  ;;  %v2992_v2 = vld [vmem:[%s8085_s6 + $0x6d8] sm:$0xff] }
  0xae   : > { %v5114_v7 = vpack.c.bf16 %v2826_v6, %v2823_v4  ;;  %v2996_v3 = vld [vmem:[%s8085_s6 + $0x6f8] sm:$0xff] }
  0xb0   : > { %4825 = vmatpush1.bf16.msra.mxu0 %v4824_v11  ;;  %v2741_v11 = vadd.s32 %v2740_v35, %v5565_v14  ;;  %v2675_v35 = vsub.s32 6, %v5565_v14 }
  0xb1   : > { %4827 = vmatprep.subr.bf16.mxu0 %v4826_v22  ;;  %v2968_v22 = vld [vmem:[%s8085_s6 + $0x618] sm:$0xff] }
  0xb2   : > { %vm2743_vm12 = vcmp.ge.s32.totalorder %v2741_v11, 0  ;;  %vm2745_vm13 = vcmp.lt.s32.totalorder %v2741_v11, 16  ;;  %v2676_v15 = vrot.slane %v6755_v10, %v2675_v35  ;;  %v3005_v11 = vld [vmem:[%s8085_s6 + $0x740] sm:$0xff]  ;;  %v3008_v35 = vld [vmem:[%s8085_s6 + $0x758] sm:$0xff] }
  0xb3   : > { %vm6781_vm14 = vmand %vm2743_vm12, %vm2745_vm13 }
  0xb4   : > { %4829 = vmatpush1.bf16.msra.mxu0 %v4828_v23 }
  0xb5   : > { %4831 = vmatprep.subr.bf16.mxu0 %v4830_v25  ;;  %v4924_v25 = vpack.c.bf16 %v2968_v22, %v2965_v18  ;;  %v2651_v18 = vsub.s32 0, %v5565_v14  ;;  %v2655_v22 = vsub.s32 1, %v5565_v14 }
  0xb7   : > { %v2652_v21 = vrot.slane %v6755_v10, %v2651_v18 }
  0xb8   : > { %4833 = vmatpush1.bf16.msra.mxu0 %v4832_v28 }
  0xb9   : > { %4835 = vmatprep.subr.bf16.mxu0 %v4834_v30  ;;  %v2971_v30 = vld [vmem:[%s8085_s6 + $0x630] sm:$0xff] }
  0xbc   : > { %4837 = vmatpush1.bf16.msra.mxu0 %v4836_v34  ;;  %v2680_v34 = vrot.slane %v6755_v10, %v2679_v20  ;;  %v3011_v20 = vld [vmem:[%s8085_s6 + $0x770] sm:$0xff] }
  0xbd   : > { %4839 = vmatprep.subr.bf16.mxu0 %v4838_v37 }
  0xc0   : > { %4841 = vmatpush1.bf16.msra.mxu0 %v4840_v42  ;;  %v4928_v42 = vpack.c.bf16 %v2974_v31, %v2971_v30  ;;  %v3017_v30 = vld [vmem:[%s8085_s6 + $0x7a0] sm:$0xff] }
  0xc1   : > { %4843 = vmatprep.subr.bf16.mxu0 %v4842_v46 }
  0xc4   : > { %4845 = vmatpush1.bf16.msra.mxu0 %v4844_v48 }
  0xc5   : > { %4847 = vmatprep.subr.bf16.mxu0 %v4846_v52 }
  0xc8   : > { %4849 = vmatpush1.bf16.msra.mxu0 %v4848_v54 }
  0xc9   : > { %4851 = vmatprep.subr.bf16.mxu0 %v4850_v59  ;;  %v2986_v59 = vld [vmem:[%s8085_s6 + $0x6a8] sm:$0xff] }
  0xca   : > { %v4936_v0 = vpack.c.bf16 %v2986_v59, %v2983_v58 }
  0xcc   : > { %4853 = vmatpush1.bf16.msra.mxu0 %v4852_v63  ;;  %v2993_v63 = vld [vmem:[%s8085_s6 + $0x6e0] sm:$0xff] }
  0xcd   : > { %4855 = vmatprep.subr.bf16.mxu0 %v4854_v1  ;;  %v4938_v39 = vpack.c.bf16 %v2993_v63, %v2990_v61  ;;  %v2989_v1 = vld [vmem:[%s8085_s6 + $0x6c0] sm:$0xff]  ;;  %v4956_v61 = vpack.c.bf16 %v3016_v56, %v3013_v36  ;;  %v5116_v63 = vpack.c.bf16 %v2778_v47, %v2775_v57  ;;  %v3032_v36 = vld [vmem:[%s8085_s6 + $0x818] sm:$0xff] }
  0xce   : > { %v4940_v4 = vpack.c.bf16 %v2992_v2, %v2989_v1  ;;  %v2844_v57 = vld [vmem:[%s8085_s6 + $0x238] sm:$0xff] }
  0xd0   : > { %4857 = vmatpush1.bf16.msra.mxu0 %v4856_v45  ;;  %v2999_v45 = vld [vmem:[%s8085_s6 + $0x710] sm:$0xff] }
  0xd1   : > { %5115 = vmatprep.subr.bf16.mxu0 %v5114_v7  ;;  %v4942_v6 = vpack.c.bf16 %v2999_v45, %v2996_v3  ;;  %v2995_v7 = vld [vmem:[%s8085_s6 + $0x6f0] sm:$0xff] }
 0x136   : > { %v2383_v16 = vpop.f32.mrb[0].mxu1 }
 0x137   : > { %v6763_v17 = vadd.f32 %v2660_v12, %v2383_v16  ;;  %v2385_v32 = vpop.f32.mrb[1].mxu1  ;;  %v3001_v16 = vld [vmem:[%s8085_s6 + $0x720] sm:$0xff] }
 0x138   : > { %v6772_v19 = vadd.f32 %v2664_v13, %v2385_v32  ;;  %v3004_v32 = vld [vmem:[%s8085_s6 + $0x738] sm:$0xff] }
 0x139   : > { %v2721_v26 = vmax.f32 %v6763_v17, 0.0  ;;  %v4948_v8 = vpack.c.bf16 %v3004_v32, %v3001_v16  ;;  %v2835_v16 = vld [vmem:[%s8085_s6 + $0x1f0] sm:$0xff]  ;;  %v3124_v17 = vld [vmem:[%s8085_s6 + $0xaf8] sm:$0xff] }
 0x13a   : > { %v2722_v24 = vmax.f32 %v6772_v19, 0.0  ;;  %v2389_v62 = vpop.f32.mrb[2].mxu1 }
 0x13b   : > { %v6789_v27 = vadd.f32 %v2660_v12, %v2389_v62  ;;  %v2391_v28 = vpop.f32.mrb[3].mxu1  ;;  %v4944_v12 = vpack.c.bf16 %v2998_v9, %v2995_v7  ;;  %v4950_v62 = vpack.c.bf16 %v3011_v20, %v3008_v35  ;;  %v2781_v7 = vld [vmem:[%s8085_s6 + $0x40] sm:$0xff]  ;;  %v2784_v9 = vld [vmem:[%s8085_s6 + $0x58] sm:$0xff] }
 0x13c   : > { %v6798_v33 = vadd.f32 %v2664_v13, %v2391_v28  ;;  %4365 = vmatprep.mubr.msk.f32.mxu1 %vm6781_vm14, %v2722_v24  ;;  %v4946_v13 = vpack.c.bf16 %v3005_v11, %v3002_v5  ;;  %v3010_v28 = vld [vmem:[%s8085_s6 + $0x768] sm:$0xff] }
 0x13d   : > { %4366 = vmatmul.mubr.msk.f32.vlgmr.msra.gmra.mrb[8].mxu1 %vm6781_vm14, %v2721_v26  ;;  %v2731_v43 = vmax.f32 %v6789_v27, 0.0  ;;  %v3130_v27 = vld [vmem:[%s8085_s6 + $0xb28] sm:$0xff] }
 0x13e   : > { %v2732_v40 = vmax.f32 %v6798_v33, 0.0  ;;  %4925 = vmatpush1.bf16.msra.mxu1 %v4924_v25  ;;  %v2537_v41 = vpop.f32.mrb[4].mxu1  ;;  %v3007_v25 = vld [vmem:[%s8085_s6 + $0x750] sm:$0xff] }
 0x13f   : > { %v6825_v44 = vadd.f32 %v2676_v15, %v2537_v41  ;;  %v2539_v46 = vpop.f32.mrb[5].mxu1  ;;  %4927 = vmatprep.subr.bf16.mxu1 %v4926_v29  ;;  %v3014_v29 = vld [vmem:[%s8085_s6 + $0x788] sm:$0xff]  ;;  %v2667_v41 = vsub.s32 4, %v5565_v14 }
 0x140   : > { %v6833_v48 = vadd.f32 %v2680_v34, %v2539_v46  ;;  %4367 = vmatprep.mubr.msk.f32.mxu1 %vm6815_vm1, %v2732_v40 }
 0x141   : > { %4368 = vmatmul.mubr.msk.f32.gmra.mrb[10].mxu1 %vm6815_vm1, %v2731_v43 }
 0x142   : > { %4929 = vmatpush1.bf16.msra.mxu1 %v4928_v42  ;;  %v2543_v52 = vpop.f32.mrb[6].mxu1 }
 0x143   : > { %v6849_v50 = vadd.f32 %v2676_v15, %v2543_v52  ;;  %v2545_v54 = vpop.f32.mrb[7].mxu1  ;;  %4931 = vmatprep.subr.bf16.mxu1 %v4930_v38  ;;  %v2656_v15 = vrot.slane %v6755_v10, %v2655_v22  ;;  %v4954_v38 = vpack.c.bf16 %v3017_v30, %v3014_v29  ;;  %v2671_v52 = vsub.s32 5, %v5565_v14  ;;  %v3037_v14 = vld [vmem:[%s8085_s6 + $0x840] sm:$0xff] }
 0x144   : > { %v6857_v60 = vadd.f32 %v2680_v34, %v2545_v54  ;;  %v4952_v34 = vpack.c.bf16 %v3010_v28, %v3007_v25  ;;  %v2829_v54 = vld [vmem:[%s8085_s6 + $0x1c0] sm:$0xff]  ;;  %v2787_v25 = vld [vmem:[%s8085_s6 + $0x70] sm:$0xff] }
 0x145   : > { %v6973_v11 = vrot.slane %v6755_v10, %v2671_v52 }
 0x146   : > { %4933 = vmatpush1.bf16.msra.mxu1 %v4932_v53  ;;  %v3023_v53 = vld [vmem:[%s8085_s6 + $0x7d0] sm:$0xff] }
 0x147   : > { %4935 = vmatprep.subr.bf16.mxu1 %v4934_v55  ;;  %v2832_v55 = vld [vmem:[%s8085_s6 + $0x1d8] sm:$0xff]  ;;  %v4958_v45 = vpack.c.bf16 %v3023_v53, %v3020_v49 }
 0x14a   : > { %4937 = vmatpush1.bf16.msra.mxu1 %v4936_v0  ;;  %v2668_v0 = vrot.slane %v6755_v10, %v2667_v41  ;;  %v2838_v10 = vld [vmem:[%s8085_s6 + $0x208] sm:$0xff] }
 0x14b   : > { %4939 = vmatprep.subr.bf16.mxu1 %v4938_v39  ;;  %v3019_v39 = vld [vmem:[%s8085_s6 + $0x7b0] sm:$0xff]  ;;  %v5122_v41 = vpack.c.bf16 %v2838_v10, %v2835_v16 }
 0x14e   : > { %4941 = vmatpush1.bf16.msra.mxu1 %v4940_v4  ;;  %v5118_v4 = vpack.c.bf16 %v2832_v55, %v2829_v54  ;;  %v3031_v54 = vld [vmem:[%s8085_s6 + $0x810] sm:$0xff]  ;;  %v3034_v55 = vld [vmem:[%s8085_s6 + $0x828] sm:$0xff] }
 0x14f   : > { %4943 = vmatprep.subr.bf16.mxu1 %v4942_v6  ;;  %v3022_v6 = vld [vmem:[%s8085_s6 + $0x7c8] sm:$0xff] }
 0x150   : > { %v4960_v20 = vpack.c.bf16 %v3022_v6, %v3019_v39  ;;  %v2850_v6 = vld [vmem:[%s8085_s6 + $0x268] sm:$0xff] }
 0x152   : > { %4945 = vmatpush1.bf16.msra.mxu1 %v4944_v12  ;;  %v3026_v12 = vld [vmem:[%s8085_s6 + $0x7e8] sm:$0xff] }
 0x153   : > { %4947 = vmatprep.subr.bf16.mxu1 %v4946_v13  ;;  %v3029_v13 = vld [vmem:[%s8085_s6 + $0x800] sm:$0xff] }
 0x154   : > { %v4962_v30 = vpack.c.bf16 %v3029_v13, %v3026_v12 }
 0x156   : > { %4949 = vmatpush1.bf16.msra.mxu1 %v4948_v8  ;;  %v2306_v31 = vpop.f32.mrb[0].mxu0  ;;  %v5120_v8 = vpack.c.bf16 %v2784_v9, %v2781_v7  ;;  %v4968_v9 = vpack.c.bf16 %v3034_v55, %v3031_v54  ;;  %v2808_v54 = vld [vmem:[%s8085_s6 + $0x118] sm:$0xff]  ;;  %v3050_v55 = vld [vmem:[%s8085_s6 + $0x8a8] sm:$0xff] }
 0x157   : > { %v6928_v42 = vadd.f32 %v2652_v21, %v2306_v31  ;;  %v2308_v46 = vpop.f32.mrb[1].mxu0  ;;  %4951 = vmatprep.subr.bf16.mxu1 %v4950_v62  ;;  %v3028_v62 = vld [vmem:[%s8085_s6 + $0x7f8] sm:$0xff]  ;;  %v2790_v31 = vld [vmem:[%s8085_s6 + $0x88] sm:$0xff] }
 0x158   : > { %v6939_v51 = vadd.f32 %v2656_v15, %v2308_v46  ;;  %v3035_v46 = vld [vmem:[%s8085_s6 + $0x830] sm:$0xff]  ;;  %v5124_v52 = vpack.c.bf16 %v2790_v31, %v2787_v25 }
 0x159   : > { %v2719_v1 = vmax.f32 %v6928_v42, 0.0  ;;  %v3047_v25 = vld [vmem:[%s8085_s6 + $0x890] sm:$0xff] }
 0x15a   : > { %v2720_v58 = vmax.f32 %v6939_v51, 0.0  ;;  %4953 = vmatpush1.bf16.msra.mxu1 %v4952_v34  ;;  %v2312_v59 = vpop.f32.mrb[2].mxu0  ;;  %v2646_v34 = vld [vmem:[%s8084_s5 + $0x8] sm:$0x3] }
 0x15b   : > { %v6957_v2 = vadd.f32 %v2652_v21, %v2312_v59  ;;  %v2314_v3 = vpop.f32.mrb[3].mxu0  ;;  %4955 = vmatprep.subr.bf16.mxu1 %v4954_v38  ;;  %v3025_v21 = vld [vmem:[%s8085_s6 + $0x7e0] sm:$0xff]  ;;  %v2684_v53 = vrot.slane %v2646_v34, %v2651_v18 }
 0x15c   : > { %v6968_v5 = vadd.f32 %v2656_v15, %v2314_v3  ;;  %4361 = vmatprep.mubr.msk.f32.mxu0 %vm6781_vm14, %v2720_v58  ;;  %v2841_v38 = vld [vmem:[%s8085_s6 + $0x220] sm:$0xff]  ;;  %v4964_v51 = vpack.c.bf16 %v3028_v62, %v3025_v21  ;;  %v2796_v3 = vld [vmem:[%s8085_s6 + $0xb8] sm:$0xff] }
 0x15d   : > { %4362 = vmatmul.mubr.msk.f32.vlgmr.msra.gmra.mrb[12].mxu0 %vm6781_vm14, %v2719_v1  ;;  %v2729_v28 = vmax.f32 %v6957_v2, 0.0  ;;  %v5126_v39 = vpack.c.bf16 %v2844_v57, %v2841_v38  ;;  %v2793_v18 = vld [vmem:[%s8085_s6 + $0xa0] sm:$0xff]  ;;  %v3044_v21 = vld [vmem:[%s8085_s6 + $0x878] sm:$0xff] }
 0x15e   : > { %v2730_v32 = vmax.f32 %v6968_v5, 0.0  ;;  %4957 = vmatpush1.bf16.msra.mxu1 %v4956_v61  ;;  %5117 = vmatpush3.bf16.msra.mxu0 %v5116_v63  ;;  %v2460_v35 = vpop.f32.mrb[4].mxu0  ;;  %v4966_v63 = vpack.c.bf16 %v3035_v46, %v3032_v36  ;;  %v5128_v12 = vpack.c.bf16 %v2796_v3, %v2793_v18  ;;  %v3046_v46 = vld [vmem:[%s8085_s6 + $0x888] sm:$0xff] }
 0x15f   : > { %v7002_v15 = vadd.f32 %v2668_v0, %v2460_v35  ;;  %v2462_v29 = vpop.f32.mrb[5].mxu0  ;;  %4959 = vmatprep.subr.bf16.mxu1 %v4958_v45  ;;  %5119 = vmatprep.subr.bf16.mxu0 %v5118_v4  ;;  %v3041_v45 = vld [vmem:[%s8085_s6 + $0x860] sm:$0xff]  ;;  %v2847_v4 = vld [vmem:[%s8085_s6 + $0x250] sm:$0xff]  ;;  %v2862_v18 = vld [vmem:[%s8085_s6 + $0x2c8] sm:$0xff] }
 0x160   : > { %v7014_v56 = vadd.f32 %v6973_v11, %v2462_v29  ;;  %4363 = vmatprep.mubr.msk.f32.mxu0 %vm6815_vm1, %v2730_v32  ;;  %v5130_v35 = vpack.c.bf16 %v2850_v6, %v2847_v4  ;;  %v2853_v29 = vld [vmem:[%s8085_s6 + $0x280] sm:$0xff] }
 0x161   : > { %4364 = vmatmul.mubr.msk.f32.gmra.mrb[14].mxu0 %vm6815_vm1, %v2729_v28 }
 0x162   : > { %v2724_v47 = vmax.f32 %v7014_v56, 0.0  ;;  %4961 = vmatpush1.bf16.msra.mxu1 %v4960_v20  ;;  %5121 = vmatpush3.bf16.msra.mxu0 %v5120_v8  ;;  %v2466_v49 = vpop.f32.mrb[6].mxu0  ;;  %v2799_v20 = vld [vmem:[%s8085_s6 + $0xd0] sm:$0xff]  ;;  %v2802_v8 = vld [vmem:[%s8085_s6 + $0xe8] sm:$0xff] }
 0x163   : > { %v7042_v59 = vadd.f32 %v2668_v0, %v2466_v49  ;;  %4381 = vmatprep.mubr.msk.f32.mxu0 %vm6781_vm14, %v2720_v58  ;;  %v7046_v61 = vpop.f32.mrb[7].mxu0  ;;  %4963 = vmatprep.subr.bf16.mxu1 %v4962_v30  ;;  %v3038_v0 = vld [vmem:[%s8085_s6 + $0x848] sm:$0xff]  ;;  %v2688_v58 = vrot.slane %v2646_v34, %v2655_v22  ;;  %v3040_v22 = vld [vmem:[%s8085_s6 + $0x858] sm:$0xff]  ;;  %v5132_v36 = vpack.c.bf16 %v2802_v8, %v2799_v20  ;;  %v3055_v20 = vld [vmem:[%s8085_s6 + $0x8d0] sm:$0xff] }
 0x164   : > { %4369 = vmatprep.mubr.msk.f32.mxu1 %vm6781_vm14, %v2724_v47  ;;  %5123 = vmatprep.subr.bf16.mxu0 %v5122_v41  ;;  %v4970_v10 = vpack.c.bf16 %v3041_v45, %v3038_v0  ;;  %v2856_v30 = vld [vmem:[%s8085_s6 + $0x298] sm:$0xff]  ;;  %v4972_v34 = vpack.c.bf16 %v3040_v22, %v3037_v14  ;;  %v3043_v41 = vld [vmem:[%s8085_s6 + $0x870] sm:$0xff]  ;;  %v4974_v49 = vpack.c.bf16 %v3047_v25, %v3044_v21  ;;  %v2865_v22 = vld [vmem:[%s8085_s6 + $0x2e0] sm:$0xff] }
 0x165   : > { %v4976_v3 = vpack.c.bf16 %v3046_v46, %v3043_v41  ;;  %v3052_v45 = vld [vmem:[%s8085_s6 + $0x8b8] sm:$0xff]  ;;  %v3059_v14 = vld [vmem:[%s8085_s6 + $0x8f0] sm:$0xff]  ;;  %v3058_v8 = vld [vmem:[%s8085_s6 + $0x8e8] sm:$0xff] }
 0x166   : > { %4965 = vmatpush1.bf16.msra.mxu1 %v4964_v51  ;;  %5125 = vmatpush3.bf16.msra.mxu0 %v5124_v52  ;;  %v2614_v7 = vpop.f32.mrb[8].mxu0  ;;  %v5134_v51 = vpack.c.bf16 %v2856_v30, %v2853_v29  ;;  %v2805_v52 = vld [vmem:[%s8085_s6 + $0x100] sm:$0xff]  ;;  %v2820_v30 = vld [vmem:[%s8085_s6 + $0x178] sm:$0xff]  ;;  %v2922_v41 = vld [vmem:[%s8085_s6 + $0x4a8] sm:$0xff]  ;;  %v4984_v46 = vpack.c.bf16 %v3058_v8, %v3055_v20 }
 0x167   : > { %v7078_v13 = vadd.f32 %v2684_v53, %v2614_v7  ;;  %v2616_v16 = vpop.f32.mrb[9].mxu0  ;;  %4967 = vmatprep.subr.bf16.mxu1 %v4966_v63  ;;  %5127 = vmatprep.subr.bf16.mxu0 %v5126_v39  ;;  %v2859_v39 = vld [vmem:[%s8085_s6 + $0x2b0] sm:$0xff]  ;;  %v5136_v0 = vpack.c.bf16 %v2808_v54, %v2805_v52  ;;  %v2817_v29 = vld [vmem:[%s8085_s6 + $0x160] sm:$0xff]  ;;  %v3064_v54 = vld [vmem:[%s8085_s6 + $0x918] sm:$0xff] }
 0x168   : > { %v7089_v62 = vadd.f32 %v2688_v58, %v2616_v16  ;;  %v5138_v6 = vpack.c.bf16 %v2862_v18, %v2859_v39  ;;  %v2811_v7 = vld [vmem:[%s8085_s6 + $0x130] sm:$0xff]  ;;  %v2868_v16 = vld [vmem:[%s8085_s6 + $0x2f8] sm:$0xff]  ;;  %v3061_v52 = vld [vmem:[%s8085_s6 + $0x900] sm:$0xff] }
 0x169   : > { %v5142_v25 = vpack.c.bf16 %v2868_v16, %v2865_v22  ;;  %v2874_v39 = vld [vmem:[%s8085_s6 + $0x328] sm:$0xff]  ;;  %v3068_v18 = vld [vmem:[%s8085_s6 + $0x938] sm:$0xff] }
 0x16a   : > { %4969 = vmatpush1.bf16.msra.mxu1 %v4968_v9  ;;  %5129 = vmatpush3.bf16.msra.mxu0 %v5128_v12  ;;  %v2620_v31 = vpop.f32.mrb[10].mxu0  ;;  %v2814_v9 = vld [vmem:[%s8085_s6 + $0x148] sm:$0xff]  ;;  %v3056_v12 = vld [vmem:[%s8085_s6 + $0x8d8] sm:$0xff] }
 0x16b   : > { %v7106_v38 = vadd.f32 %v2684_v53, %v2620_v31  ;;  %v2622_v57 = vpop.f32.mrb[11].mxu0  ;;  %4971 = vmatprep.subr.bf16.mxu1 %v4970_v10  ;;  %5131 = vmatprep.subr.bf16.mxu0 %v5130_v35  ;;  %v3053_v53 = vld [vmem:[%s8085_s6 + $0x8c0] sm:$0xff]  ;;  %v5140_v35 = vpack.c.bf16 %v2814_v9, %v2811_v7  ;;  %v4982_v21 = vpack.c.bf16 %v3059_v14, %v3056_v12  ;;  %v3062_v31 = vld [vmem:[%s8085_s6 + $0x908] sm:$0xff]  ;;  %v2880_v22 = vld [vmem:[%s8085_s6 + $0x358] sm:$0xff] }
 0x16c   : > { %v7117_v63 = vadd.f32 %v2688_v58, %v2622_v57  ;;  %v3049_v58 = vld [vmem:[%s8085_s6 + $0x8a0] sm:$0xff]  ;;  %v4978_v4 = vpack.c.bf16 %v3053_v53, %v3050_v55  ;;  %v5144_v57 = vpack.c.bf16 %v2820_v30, %v2817_v29  ;;  %v7184_v55 = vadd.f32 %v6973_v11, %v7046_v61  ;;  %v2871_v53 = vld [vmem:[%s8085_s6 + $0x310] sm:$0xff]  ;;  %v2928_v61 = vld [vmem:[%s8085_s6 + $0x4d8] sm:$0xff] }
 0x16d   : > { %v4980_v10 = vpack.c.bf16 %v3052_v45, %v3049_v58  ;;  %v2925_v11 = vld [vmem:[%s8085_s6 + $0x4c0] sm:$0xff]  ;;  %v2723_v58 = vmax.f32 %v7002_v15, 0.0  ;;  %v5148_v45 = vpack.c.bf16 %v2874_v39, %v2871_v53  ;;  %v3074_v16 = vld [vmem:[%s8085_s6 + $0x968] sm:$0xff]  ;;  %v2883_v29 = vld [vmem:[%s8085_s6 + $0x370] sm:$0xff]  ;;  %v2726_v30 = vmax.f32 %v6833_v48, 0.0 }
 0x16e   : > { %4973 = vmatpush1.bf16.msra.mxu1 %v4972_v34  ;;  %5133 = vmatpush3.bf16.msra.mxu0 %v5132_v36  ;;  %v3065_v34 = vld [vmem:[%s8085_s6 + $0x920] sm:$0xff]  ;;  %v2919_v36 = vld [vmem:[%s8085_s6 + $0x490] sm:$0xff]  ;;  %v2734_v7 = vmax.f32 %v7184_v55, 0.0  ;;  %v5150_v12 = vpack.c.bf16 %v2928_v61, %v2925_v11  ;;  %v2934_v20 = vld [vmem:[%s8085_s6 + $0x508] sm:$0xff] }
 0x16f   : > { %4975 = vmatprep.subr.bf16.mxu1 %v4974_v49  ;;  %5135 = vmatprep.subr.bf16.mxu0 %v5134_v51  ;;  %v4986_v49 = vpack.c.bf16 %v3065_v34, %v3062_v31  ;;  %v5146_v51 = vpack.c.bf16 %v2922_v41, %v2919_v36  ;;  %v2877_v14 = vld [vmem:[%s8085_s6 + $0x340] sm:$0xff]  ;;  %v2886_v31 = vld [vmem:[%s8085_s6 + $0x388] sm:$0xff]  ;;  %v3080_v34 = vld [vmem:[%s8085_s6 + $0x998] sm:$0xff] }
 0x170   : > { %v5152_v8 = vpack.c.bf16 %v2880_v22, %v2877_v14  ;;  %v3083_v36 = vld [vmem:[%s8085_s6 + $0x9b0] sm:$0xff]  ;;  %v2937_v41 = vld [vmem:[%s8085_s6 + $0x520] sm:$0xff]  ;;  %v5156_v2 = vpack.c.bf16 %v2886_v31, %v2883_v29  ;;  %v2904_v29 = vld [vmem:[%s8085_s6 + $0x418] sm:$0xff] }
 0x171   : > { %v3089_v53 = vld [vmem:[%s8085_s6 + $0x9e0] sm:$0xff]  ;;  %v2943_v39 = vld [vmem:[%s8085_s6 + $0x550] sm:$0xff] }
 0x172   : > { %4977 = vmatpush1.bf16.msra.mxu1 %v4976_v3  ;;  %5137 = vmatpush3.bf16.msra.mxu0 %v5136_v0  ;;  %v3071_v3 = vld [vmem:[%s8085_s6 + $0x950] sm:$0xff]  ;;  %v4988_v0 = vpack.c.bf16 %v3064_v54, %v3061_v52  ;;  %v2889_v52 = vld [vmem:[%s8085_s6 + $0x3a0] sm:$0xff]  ;;  %v3086_v54 = vld [vmem:[%s8085_s6 + $0x9c8] sm:$0xff] }
 0x173   : > { %4979 = vmatprep.subr.bf16.mxu1 %v4978_v4  ;;  %5139 = vmatprep.subr.bf16.mxu0 %v5138_v6  ;;  %v3067_v4 = vld [vmem:[%s8085_s6 + $0x930] sm:$0xff]  ;;  %v3070_v6 = vld [vmem:[%s8085_s6 + $0x948] sm:$0xff]  ;;  %v4990_v9 = vpack.c.bf16 %v3071_v3, %v3068_v18  ;;  %v5002_v61 = vpack.c.bf16 %v3089_v53, %v3086_v54  ;;  %v2949_v22 = vld [vmem:[%s8085_s6 + $0x580] sm:$0xff] }
 0x174   : > { %v4992_v42 = vpack.c.bf16 %v3070_v6, %v3067_v4  ;;  %v2946_v18 = vld [vmem:[%s8085_s6 + $0x568] sm:$0xff]  ;;  %v2895_v4 = vld [vmem:[%s8085_s6 + $0x3d0] sm:$0xff]  ;;  %v2964_v54 = vld [vmem:[%s8085_s6 + $0x5f8] sm:$0xff] }
 0x175   : > { %v5162_v6 = vpack.c.bf16 %v2946_v18, %v2943_v39  ;;  %v3095_v14 = vld [vmem:[%s8085_s6 + $0xa10] sm:$0xff]  ;;  %v3081_v48 = vld [vmem:[%s8085_s6 + $0x9a0] sm:$0xff] }
 0x176   : > { %4981 = vmatpush1.bf16.msra.mxu1 %v4980_v10  ;;  %5141 = vmatpush3.bf16.msra.mxu0 %v5140_v35  ;;  %v3077_v10 = vld [vmem:[%s8085_s6 + $0x980] sm:$0xff]  ;;  %v2931_v35 = vld [vmem:[%s8085_s6 + $0x4f0] sm:$0xff] }
 0x177   : > { %4983 = vmatprep.subr.bf16.mxu1 %v4982_v21  ;;  %5143 = vmatprep.subr.bf16.mxu0 %v5142_v25  ;;  %v3073_v21 = vld [vmem:[%s8085_s6 + $0x960] sm:$0xff]  ;;  %v3076_v25 = vld [vmem:[%s8085_s6 + $0x978] sm:$0xff]  ;;  %v4994_v5 = vpack.c.bf16 %v3077_v10, %v3074_v16  ;;  %v2955_v31 = vld [vmem:[%s8085_s6 + $0x5b0] sm:$0xff] }
 0x178   : > { %v2952_v16 = vld [vmem:[%s8085_s6 + $0x598] sm:$0xff]  ;;  %v3075_v55 = vld [vmem:[%s8085_s6 + $0x970] sm:$0xff] }
 0x17a   : > { %4985 = vmatpush1.bf16.msra.mxu1 %v4984_v46  ;;  %5145 = vmatpush3.bf16.msra.mxu0 %v5144_v57  ;;  %v2940_v46 = vld [vmem:[%s8085_s6 + $0x538] sm:$0xff]  ;;  %v4996_v57 = vpack.c.bf16 %v3076_v25, %v3073_v21  ;;  %v2901_v21 = vld [vmem:[%s8085_s6 + $0x400] sm:$0xff]  ;;  %v5166_v25 = vpack.c.bf16 %v2952_v16, %v2949_v22 }
 0x17b   : > { %4987 = vmatprep.subr.bf16.mxu1 %v4986_v49  ;;  %5147 = vmatprep.subr.bf16.mxu0 %v5146_v51  ;;  %v3079_v49 = vld [vmem:[%s8085_s6 + $0x990] sm:$0xff]  ;;  %v3082_v51 = vld [vmem:[%s8085_s6 + $0x9a8] sm:$0xff]  ;;  %v5158_v19 = vpack.c.bf16 %v2940_v46, %v2937_v41  ;;  %v5168_v41 = vpack.c.bf16 %v2904_v29, %v2901_v21  ;;  %v3116_v21 = vld [vmem:[%s8085_s6 + $0xab8] sm:$0xff] }
 0x17c   : > { %v5000_v3 = vpack.c.bf16 %v3082_v51, %v3079_v49  ;;  %v2910_v51 = vld [vmem:[%s8085_s6 + $0x448] sm:$0xff]  ;;  %v3021_v29 = vld [vmem:[%s8085_s6 + $0x7c0] sm:$0xff] }
 0x17d   : > { %4370 = vmatmul.mubr.msk.f32.vlgmr.msra.gmra.mrb[8].mxu1 %vm6781_vm14, %v2723_v58  ;;  %4382 = vmatmul.mubr.msk.f32.vlgmr.msra.gmra.mrb[16].mxu0 %vm6781_vm14, %v2719_v1  ;;  %v2733_v1 = vmax.f32 %v7042_v59, 0.0 }
 0x17e   : > { %4371 = vmatprep.mubr.msk.f32.mxu1 %vm6815_vm1, %v2734_v7  ;;  %4989 = vmatpush1.bf16.msra.mxu1 %v4988_v0  ;;  %v3085_v0 = vld [vmem:[%s8085_s6 + $0x9c0] sm:$0xff] }
 0x17f   : > { %4383 = vmatprep.mubr.msk.f32.mxu0 %vm6815_vm1, %v2730_v32  ;;  %5149 = vmatpush3.bf16.msra.mxu0 %v5148_v45  ;;  %v5154_v32 = vpack.c.bf16 %v2934_v20, %v2931_v35  ;;  %v3088_v45 = vld [vmem:[%s8085_s6 + $0x9d8] sm:$0xff] }
 0x180   : > { %4991 = vmatprep.subr.bf16.mxu1 %v4990_v9  ;;  %5151 = vmatprep.subr.bf16.mxu0 %v5150_v12  ;;  %v2898_v9 = vld [vmem:[%s8085_s6 + $0x3e8] sm:$0xff]  ;;  %v3092_v12 = vld [vmem:[%s8085_s6 + $0x9f8] sm:$0xff]  ;;  %v5004_v10 = vpack.c.bf16 %v3088_v45, %v3085_v0 }
 0x181   : > { %4372 = vmatmul.mubr.msk.f32.gmra.mrb[10].mxu1 %vm6815_vm1, %v2733_v1  ;;  %4384 = vmatmul.mubr.msk.f32.gmra.mrb[18].mxu0 %vm6815_vm1, %v2729_v28  ;;  %v4998_v28 = vpack.c.bf16 %v3083_v36, %v3080_v34  ;;  %v5164_v35 = vpack.c.bf16 %v2898_v9, %v2895_v4  ;;  %v5006_v20 = vpack.c.bf16 %v3095_v14, %v3092_v12  ;;  %v2958_v34 = vld [vmem:[%s8085_s6 + $0x5c8] sm:$0xff]  ;;  %v2916_v45 = vld [vmem:[%s8085_s6 + $0x478] sm:$0xff]  ;;  %v3015_v9 = vld [vmem:[%s8085_s6 + $0x790] sm:$0xff] }
 0x182   : > { %4993 = vmatpush1.bf16.msra.mxu1 %v4992_v42  ;;  %4373 = vmatprep.mubr.msk.f32.mxu1 %vm6781_vm14, %v2726_v30  ;;  %v3091_v42 = vld [vmem:[%s8085_s6 + $0x9f0] sm:$0xff]  ;;  %v5170_v49 = vpack.c.bf16 %v2958_v34, %v2955_v31  ;;  %v3110_v4 = vld [vmem:[%s8085_s6 + $0xa88] sm:$0xff] }
 0x183   : > { %5153 = vmatpush3.bf16.msra.mxu0 %v5152_v8  ;;  %4385 = vmatprep.mubr.msk.f32.mxu0 %vm6781_vm14, %v2722_v24  ;;  %v2892_v24 = vld [vmem:[%s8085_s6 + $0x3b8] sm:$0xff]  ;;  %v3094_v8 = vld [vmem:[%s8085_s6 + $0xa08] sm:$0xff]  ;;  %v3115_v34 = vld [vmem:[%s8085_s6 + $0xab0] sm:$0xff] }
 0x184   : > { %4995 = vmatprep.subr.bf16.mxu1 %v4994_v5  ;;  %5155 = vmatprep.subr.bf16.mxu0 %v5154_v32  ;;  %v5160_v11 = vpack.c.bf16 %v2892_v24, %v2889_v52  ;;  %v3098_v5 = vld [vmem:[%s8085_s6 + $0xa28] sm:$0xff]  ;;  %v3101_v32 = vld [vmem:[%s8085_s6 + $0xa40] sm:$0xff]  ;;  %v5008_v36 = vpack.c.bf16 %v3094_v8, %v3091_v42  ;;  %v3104_v52 = vld [vmem:[%s8085_s6 + $0xa58] sm:$0xff] }
 0x185   : > { %v5010_v46 = vpack.c.bf16 %v3101_v32, %v3098_v5  ;;  %v2961_v24 = vld [vmem:[%s8085_s6 + $0x5e0] sm:$0xff]  ;;  %v3018_v12 = vld [vmem:[%s8085_s6 + $0x7a8] sm:$0xff]  ;;  %v2967_v42 = vld [vmem:[%s8085_s6 + $0x610] sm:$0xff] }
 0x186   : > { %4997 = vmatpush1.bf16.msra.mxu1 %v4996_v57  ;;  %v3097_v57 = vld [vmem:[%s8085_s6 + $0xa20] sm:$0xff]  ;;  %v5174_v0 = vpack.c.bf16 %v2964_v54, %v2961_v24  ;;  %v2970_v8 = vld [vmem:[%s8085_s6 + $0x628] sm:$0xff]  ;;  %v3024_v5 = vld [vmem:[%s8085_s6 + $0x7d8] sm:$0xff] }
 0x187   : > { %5157 = vmatpush3.bf16.msra.mxu0 %v5156_v2  ;;  %4999 = vmatprep.subr.bf16.mxu1 %v4998_v28  ;;  %v3100_v2 = vld [vmem:[%s8085_s6 + $0xa38] sm:$0xff]  ;;  %v2907_v28 = vld [vmem:[%s8085_s6 + $0x430] sm:$0xff]  ;;  %v5180_v31 = vpack.c.bf16 %v2970_v8, %v2967_v42  ;;  %v3121_v54 = vld [vmem:[%s8085_s6 + $0xae0] sm:$0xff] }
 0x188   : > { %5159 = vmatprep.subr.bf16.mxu0 %v5158_v19  ;;  %v3107_v19 = vld [vmem:[%s8085_s6 + $0xa70] sm:$0xff]  ;;  %v5012_v53 = vpack.c.bf16 %v3100_v2, %v3097_v57  ;;  %v5172_v39 = vpack.c.bf16 %v2910_v51, %v2907_v28  ;;  %v2973_v57 = vld [vmem:[%s8085_s6 + $0x640] sm:$0xff]  ;;  %v2976_v2 = vld [vmem:[%s8085_s6 + $0x658] sm:$0xff] }
 0x189   : > { %v5014_v18 = vpack.c.bf16 %v3107_v19, %v3104_v52  ;;  %v3122_v28 = vld [vmem:[%s8085_s6 + $0xae8] sm:$0xff]  ;;  %v3027_v51 = vld [vmem:[%s8085_s6 + $0x7f0] sm:$0xff]  ;;  %v5184_v24 = vpack.c.bf16 %v2976_v2, %v2973_v57  ;;  %v2997_v57 = vld [vmem:[%s8085_s6 + $0x700] sm:$0xff] }
 0x18a   : > { %5001 = vmatpush1.bf16.msra.mxu1 %v5000_v3  ;;  %v3103_v3 = vld [vmem:[%s8085_s6 + $0xa50] sm:$0xff]  ;;  %v3030_v52 = vld [vmem:[%s8085_s6 + $0x808] sm:$0xff] }
 0x18b   : > { %5161 = vmatpush3.bf16.msra.mxu0 %v5160_v11  ;;  %5003 = vmatprep.subr.bf16.mxu1 %v5002_v61  ;;  %v3106_v11 = vld [vmem:[%s8085_s6 + $0xa68] sm:$0xff]  ;;  %v2913_v61 = vld [vmem:[%s8085_s6 + $0x460] sm:$0xff]  ;;  %v2991_v42 = vld [vmem:[%s8085_s6 + $0x6d0] sm:$0xff] }
 0x18c   : > { %5163 = vmatprep.subr.bf16.mxu0 %v5162_v6  ;;  %v3113_v6 = vld [vmem:[%s8085_s6 + $0xaa0] sm:$0xff]  ;;  %v5016_v14 = vpack.c.bf16 %v3106_v11, %v3103_v3  ;;  %v5176_v22 = vpack.c.bf16 %v2916_v45, %v2913_v61  ;;  %v3036_v11 = vld [vmem:[%s8085_s6 + $0x838] sm:$0xff]  ;;  %v5028_v61 = vpack.c.bf16 %v3124_v17, %v3121_v54 }
 0x18d   : > { %v5018_v16 = vpack.c.bf16 %v3113_v6, %v3110_v4  ;;  %v3033_v3 = vld [vmem:[%s8085_s6 + $0x820] sm:$0xff]  ;;  %v3127_v4 = vld [vmem:[%s8085_s6 + $0xb10] sm:$0xff]  ;;  %v3134_v6 = vld [vmem:[%s8085_s6 + $0xb48] sm:$0xff] }
 0x18e   : > { %5005 = vmatpush1.bf16.msra.mxu1 %v5004_v10  ;;  %v3109_v10 = vld [vmem:[%s8085_s6 + $0xa80] sm:$0xff]  ;;  %v5190_v56 = vpack.c.bf16 %v3036_v11, %v3033_v3  ;;  %v3155_v3 = vld [vmem:[%s8085_s6 + $0xbf0] sm:$0xff] }
 0x18f   : > { %5165 = vmatpush3.bf16.msra.mxu0 %v5164_v35  ;;  %5007 = vmatprep.subr.bf16.mxu1 %v5006_v20  ;;  %v3112_v35 = vld [vmem:[%s8085_s6 + $0xa98] sm:$0xff]  ;;  %v5178_v20 = vpack.c.bf16 %v3018_v12, %v3015_v9  ;;  %v3137_v9 = vld [vmem:[%s8085_s6 + $0xb60] sm:$0xff]  ;;  %v3039_v12 = vld [vmem:[%s8085_s6 + $0x850] sm:$0xff] }
 0x190   : > { %5167 = vmatprep.subr.bf16.mxu0 %v5166_v25  ;;  %v3119_v25 = vld [vmem:[%s8085_s6 + $0xad0] sm:$0xff]  ;;  %v5020_v32 = vpack.c.bf16 %v3112_v35, %v3109_v10  ;;  %v5034_v10 = vpack.c.bf16 %v3137_v9, %v3134_v6  ;;  %v3133_v35 = vld [vmem:[%s8085_s6 + $0xb40] sm:$0xff]  ;;  %v3012_v6 = vld [vmem:[%s8085_s6 + $0x778] sm:$0xff] }
 0x191   : > { %v3057_v11 = vld [vmem:[%s8085_s6 + $0x8e0] sm:$0xff]  ;;  %v3158_v9 = vld [vmem:[%s8085_s6 + $0xc08] sm:$0xff] }
 0x192   : > { %5009 = vmatpush1.bf16.msra.mxu1 %v5008_v36  ;;  %v3118_v36 = vld [vmem:[%s8085_s6 + $0xac8] sm:$0xff] }
 0x193   : > { %5169 = vmatpush3.bf16.msra.mxu0 %v5168_v41  ;;  %5011 = vmatprep.subr.bf16.mxu1 %v5010_v46  ;;  %v5022_v41 = vpack.c.bf16 %v3119_v25, %v3116_v21  ;;  %v5182_v46 = vpack.c.bf16 %v3024_v5, %v3021_v29  ;;  %v5024_v19 = vpack.c.bf16 %v3118_v36, %v3115_v34  ;;  %v2994_v21 = vld [vmem:[%s8085_s6 + $0x6e8] sm:$0xff]  ;;  %v3140_v25 = vld [vmem:[%s8085_s6 + $0xb78] sm:$0xff]  ;;  %v3143_v29 = vld [vmem:[%s8085_s6 + $0xb90] sm:$0xff] }
 0x194   : > { %5171 = vmatprep.subr.bf16.mxu0 %v5170_v49  ;;  %v3125_v49 = vld [vmem:[%s8085_s6 + $0xb00] sm:$0xff]  ;;  %v5196_v34 = vpack.c.bf16 %v2994_v21, %v2991_v42  ;;  %v5038_v36 = vpack.c.bf16 %v3143_v29, %v3140_v25  ;;  %v3063_v21 = vld [vmem:[%s8085_s6 + $0x910] sm:$0xff]  ;;  %v3066_v25 = vld [vmem:[%s8085_s6 + $0x928] sm:$0xff] }
 0x195   : > { %v5026_v33 = vpack.c.bf16 %v3125_v49, %v3122_v28  ;;  %v3045_v5 = vld [vmem:[%s8085_s6 + $0x880] sm:$0xff]  ;;  %v3000_v28 = vld [vmem:[%s8085_s6 + $0x718] sm:$0xff]  ;;  %v3146_v49 = vld [vmem:[%s8085_s6 + $0xba8] sm:$0xff] }
 0x196   : > { %5013 = vmatpush1.bf16.msra.mxu1 %v5012_v53  ;;  %v5186_v53 = vpack.c.bf16 %v3030_v52, %v3027_v51  ;;  %v3149_v51 = vld [vmem:[%s8085_s6 + $0xbc0] sm:$0xff]  ;;  %v3051_v52 = vld [vmem:[%s8085_s6 + $0x8b0] sm:$0xff]  ;;  %v5200_v54 = vpack.c.bf16 %v3000_v28, %v2997_v57  ;;  %v3164_v29 = vld [vmem:[%s8085_s6 + $0xc38] sm:$0xff] }
 0x197   : > { %5173 = vmatpush3.bf16.msra.mxu0 %v5172_v39  ;;  %5015 = vmatprep.subr.bf16.mxu1 %v5014_v18  ;;  %v3128_v39 = vld [vmem:[%s8085_s6 + $0xb18] sm:$0xff]  ;;  %v3131_v18 = vld [vmem:[%s8085_s6 + $0xb30] sm:$0xff]  ;;  %v5042_v17 = vpack.c.bf16 %v3149_v51, %v3146_v49  ;;  %v3157_v42 = vld [vmem:[%s8085_s6 + $0xc00] sm:$0xff] }
 0x198   : > { %5175 = vmatprep.subr.bf16.mxu0 %v5174_v0  ;;  %v5030_v45 = vpack.c.bf16 %v3131_v18, %v3128_v39  ;;  %v3006_v39 = vld [vmem:[%s8085_s6 + $0x748] sm:$0xff]  ;;  %v3152_v18 = vld [vmem:[%s8085_s6 + $0xbd8] sm:$0xff]  ;;  %v3069_v49 = vld [vmem:[%s8085_s6 + $0x940] sm:$0xff] }
 0x199   : > { %v3166_v28 = vld [vmem:[%s8085_s6 + $0xc48] sm:$0xff] }
 0x19a   : > { %5017 = vmatpush1.bf16.msra.mxu1 %v5016_v14  ;;  %v3042_v14 = vld [vmem:[%s8085_s6 + $0x868] sm:$0xff] }
 0x19b   : > { %5177 = vmatpush3.bf16.msra.mxu0 %v5176_v22  ;;  %5019 = vmatprep.subr.bf16.mxu1 %v5018_v16  ;;  %v5032_v22 = vpack.c.bf16 %v3130_v27, %v3127_v4  ;;  %v5194_v8 = vpack.c.bf16 %v3042_v14, %v3039_v12  ;;  %v5046_v4 = vpack.c.bf16 %v3155_v3, %v3152_v18  ;;  %v3151_v27 = vld [vmem:[%s8085_s6 + $0xbd0] sm:$0xff]  ;;  %v3161_v12 = vld [vmem:[%s8085_s6 + $0xc20] sm:$0xff]  ;;  %v3078_v18 = vld [vmem:[%s8085_s6 + $0x988] sm:$0xff] }
 0x19c   : > { %5179 = vmatprep.subr.bf16.mxu0 %v5178_v20  ;;  %v3136_v20 = vld [vmem:[%s8085_s6 + $0xb58] sm:$0xff]  ;;  %v3111_v14 = vld [vmem:[%s8085_s6 + $0xa90] sm:$0xff] }
 0x19d   : > { %v3176_v3 = vld [vmem:[%s8085_s6 + $0xc98] sm:$0xff] }
 0x19e   : > { %4386 = vmatmul.mubr.msk.f32.vlgmr.msra.gmra.mrb[20].mxu0 %vm6781_vm14, %v2721_v26  ;;  %5021 = vmatpush1.bf16.msra.mxu1 %v5020_v32  ;;  %v2979_v26 = vld [vmem:[%s8085_s6 + $0x670] sm:$0xff]  ;;  %v3048_v32 = vld [vmem:[%s8085_s6 + $0x898] sm:$0xff] }
 0x19f   : > { %4387 = vmatprep.mubr.msk.f32.mxu0 %vm6815_vm1, %v2732_v40  ;;  %5181 = vmatpush3.bf16.msra.mxu0 %v5180_v31  ;;  %v2982_v40 = vld [vmem:[%s8085_s6 + $0x688] sm:$0xff]  ;;  %v5036_v31 = vpack.c.bf16 %v3136_v20, %v3133_v35  ;;  %v5198_v2 = vpack.c.bf16 %v3048_v32, %v3045_v5  ;;  %v5050_v35 = vpack.c.bf16 %v3161_v12, %v3158_v9  ;;  %v3167_v5 = vld [vmem:[%s8085_s6 + $0xc50] sm:$0xff]  ;;  %v3117_v32 = vld [vmem:[%s8085_s6 + $0xac0] sm:$0xff] }
 0x1a0   : > { %5023 = vmatprep.subr.bf16.mxu1 %v5022_v41  ;;  %5183 = vmatprep.subr.bf16.mxu0 %v5182_v46  ;;  %v5188_v0 = vpack.c.bf16 %v2982_v40, %v2979_v26  ;;  %v3139_v41 = vld [vmem:[%s8085_s6 + $0xb70] sm:$0xff]  ;;  %v3142_v46 = vld [vmem:[%s8085_s6 + $0xb88] sm:$0xff]  ;;  %v3145_v26 = vld [vmem:[%s8085_s6 + $0xba0] sm:$0xff]  ;;  %v5054_v57 = vpack.c.bf16 %v3167_v5, %v3164_v29 }
 0x1a1   : > { %v3138_v9 = vld [vmem:[%s8085_s6 + $0xb68] sm:$0xff]  ;;  %v3144_v29 = vld [vmem:[%s8085_s6 + $0xb98] sm:$0xff] }
 0x1a2   : > { %4388 = vmatmul.mubr.msk.f32.gmra.mrb[22].mxu0 %vm6815_vm1, %v2731_v43  ;;  %5025 = vmatpush1.bf16.msra.mxu1 %v5024_v19  ;;  %v2985_v43 = vld [vmem:[%s8085_s6 + $0x6a0] sm:$0xff]  ;;  %v3054_v19 = vld [vmem:[%s8085_s6 + $0x8c8] sm:$0xff] }
 0x1a3   : > { %5185 = vmatpush3.bf16.msra.mxu0 %v5184_v24  ;;  %4389 = vmatprep.mubr.msk.f32.mxu0 %vm6781_vm14, %v2724_v47  ;;  %v2988_v47 = vld [vmem:[%s8085_s6 + $0x6b8] sm:$0xff]  ;;  %v5040_v24 = vpack.c.bf16 %v3142_v46, %v3139_v41  ;;  %v5202_v40 = vpack.c.bf16 %v3054_v19, %v3051_v52  ;;  %v2736_v41 = vmax.f32 %v6857_v60, 0.0  ;;  %v5212_v46 = vpack.c.bf16 %v3066_v25, %v3063_v21  ;;  %v3170_v19 = vld [vmem:[%s8085_s6 + $0xc68] sm:$0xff]  ;;  %v3191_v21 = vld [vmem:[%s8085_s6 + $0xd10] sm:$0xff] }
 0x1a4   : > { %5027 = vmatprep.subr.bf16.mxu1 %v5026_v33  ;;  %5187 = vmatprep.subr.bf16.mxu0 %v5186_v53  ;;  %v5192_v16 = vpack.c.bf16 %v2988_v47, %v2985_v43  ;;  %v3148_v33 = vld [vmem:[%s8085_s6 + $0xbb8] sm:$0xff]  ;;  %v3003_v53 = vld [vmem:[%s8085_s6 + $0x730] sm:$0xff]  ;;  %v3154_v43 = vld [vmem:[%s8085_s6 + $0xbe8] sm:$0xff] }
 0x1a5   : > { %v3072_v52 = vld [vmem:[%s8085_s6 + $0x958] sm:$0xff]  ;;  %v3141_v25 = vld [vmem:[%s8085_s6 + $0xb80] sm:$0xff] }
 0x1a6   : > { %5029 = vmatpush1.bf16.msra.mxu1 %v5028_v61  ;;  %v3060_v61 = vld [vmem:[%s8085_s6 + $0x8f8] sm:$0xff] }
 0x1a7   : > { %5189 = vmatpush3.bf16.msra.mxu0 %v5188_v0  ;;  %5031 = vmatprep.subr.bf16.mxu1 %v5030_v45  ;;  %v5044_v0 = vpack.c.bf16 %v3148_v33, %v3145_v26  ;;  %v5204_v45 = vpack.c.bf16 %v3006_v39, %v3003_v53  ;;  %v5206_v47 = vpack.c.bf16 %v3060_v61, %v3057_v11  ;;  %v2735_v26 = vmax.f32 %v6849_v50, 0.0  ;;  %v3172_v39 = vld [vmem:[%s8085_s6 + $0xc78] sm:$0xff]  ;;  %v3179_v11 = vld [vmem:[%s8085_s6 + $0xcb0] sm:$0xff]  ;;  %v3129_v61 = vld [vmem:[%s8085_s6 + $0xb20] sm:$0xff] }
 0x1a8   : > { %5191 = vmatprep.subr.bf16.mxu0 %v5190_v56  ;;  %v3009_v56 = vld [vmem:[%s8085_s6 + $0x760] sm:$0xff]  ;;  %v5216_v33 = vpack.c.bf16 %v3072_v52, %v3069_v49  ;;  %v3194_v49 = vld [vmem:[%s8085_s6 + $0xd28] sm:$0xff]  ;;  %v3147_v52 = vld [vmem:[%s8085_s6 + $0xbb0] sm:$0xff] }
 0x1a9   : > { %v3226_v50 = vld [vmem:[%s8085_s6 + $0xe28] sm:$0xff] }
 0x1aa   : > { %5033 = vmatpush1.bf16.msra.mxu1 %v5032_v22  ;;  %v3114_v22 = vld [vmem:[%s8085_s6 + $0xaa8] sm:$0xff] }
 0x1ab   : > { %5193 = vmatpush3.bf16.msra.mxu0 %v5192_v16  ;;  %5035 = vmatprep.subr.bf16.mxu1 %v5034_v10  ;;  %v5048_v16 = vpack.c.bf16 %v3154_v43, %v3151_v27  ;;  %v5208_v10 = vpack.c.bf16 %v3012_v6, %v3009_v56  ;;  %v5210_v20 = vpack.c.bf16 %v3114_v22, %v3111_v14  ;;  %v3178_v27 = vld [vmem:[%s8085_s6 + $0xca8] sm:$0xff]  ;;  %v3135_v6 = vld [vmem:[%s8085_s6 + $0xb50] sm:$0xff] }
 0x1ac   : > { %5195 = vmatprep.subr.bf16.mxu0 %v5194_v8  ;;  %v3160_v8 = vld [vmem:[%s8085_s6 + $0xc18] sm:$0xff]  ;;  %v3182_v56 = vld [vmem:[%s8085_s6 + $0xcc8] sm:$0xff] }
 0x1ae   : > { %5037 = vmatpush1.bf16.msra.mxu1 %v5036_v31  ;;  %v3120_v31 = vld [vmem:[%s8085_s6 + $0xad8] sm:$0xff] }
 0x1af   : > { %5197 = vmatpush3.bf16.msra.mxu0 %v5196_v34  ;;  %5039 = vmatprep.subr.bf16.mxu1 %v5038_v36  ;;  %v2725_v34 = vmax.f32 %v6825_v44, 0.0  ;;  %v5052_v36 = vpack.c.bf16 %v3160_v8, %v3157_v42  ;;  %v5214_v51 = vpack.c.bf16 %v3120_v31, %v3117_v32  ;;  %v3090_v42 = vld [vmem:[%s8085_s6 + $0x9e8] sm:$0xff]  ;;  %v3188_v8 = vld [vmem:[%s8085_s6 + $0xcf8] sm:$0xff] }
 0x1b0   : > { %5199 = vmatprep.subr.bf16.mxu0 %v5198_v2  ;;  %v3163_v2 = vld [vmem:[%s8085_s6 + $0xc30] sm:$0xff]  ;;  %v5070_v31 = vpack.c.bf16 %v3191_v21, %v3188_v8  ;;  %v3216_v8 = vld [vmem:[%s8085_s6 + $0xdd8] sm:$0xff] }
 0x1b1   : > { %v5056_v15 = vpack.c.bf16 %v3166_v28, %v3163_v2  ;;  %v5230_v2 = vpack.c.bf16 %v3144_v29, %v3141_v25  ;;  %v3096_v28 = vld [vmem:[%s8085_s6 + $0xa18] sm:$0xff]  ;;  %v3211_v29 = vld [vmem:[%s8085_s6 + $0xdb0] sm:$0xff] }
 0x1b2   : > { %5041 = vmatpush1.bf16.msra.mxu1 %v5040_v24  ;;  %v3173_v24 = vld [vmem:[%s8085_s6 + $0xc80] sm:$0xff]  ;;  %v3220_v44 = vld [vmem:[%s8085_s6 + $0xdf8] sm:$0xff] }
 0x1b3   : > { %5201 = vmatpush3.bf16.msra.mxu0 %v5200_v54  ;;  %5043 = vmatprep.subr.bf16.mxu1 %v5042_v17  ;;  %v3123_v54 = vld [vmem:[%s8085_s6 + $0xaf0] sm:$0xff]  ;;  %v3126_v17 = vld [vmem:[%s8085_s6 + $0xb08] sm:$0xff]  ;;  %v5058_v53 = vpack.c.bf16 %v3173_v24, %v3170_v19 }
 0x1b4   : > { %5203 = vmatprep.subr.bf16.mxu0 %v5202_v40  ;;  %v3169_v40 = vld [vmem:[%s8085_s6 + $0xc60] sm:$0xff]  ;;  %v3150_v19 = vld [vmem:[%s8085_s6 + $0xbc8] sm:$0xff] }
 0x1b5   : > { %v5060_v59 = vpack.c.bf16 %v3172_v39, %v3169_v40  ;;  %v5234_v40 = vpack.c.bf16 %v3150_v19, %v3147_v52  ;;  %v3102_v39 = vld [vmem:[%s8085_s6 + $0xa48] sm:$0xff]  ;;  %v3217_v19 = vld [vmem:[%s8085_s6 + $0xde0] sm:$0xff] }
 0x1b6   : > { %5045 = vmatpush1.bf16.msra.mxu1 %v5044_v0  ;;  %v3132_v0 = vld [vmem:[%s8085_s6 + $0xb38] sm:$0xff] }
 0x1b7   : > { %5205 = vmatpush3.bf16.msra.mxu0 %v5204_v45  ;;  %5047 = vmatprep.subr.bf16.mxu1 %v5046_v4  ;;  %v5062_v45 = vpack.c.bf16 %v3179_v11, %v3176_v3  ;;  %v3175_v4 = vld [vmem:[%s8085_s6 + $0xc90] sm:$0xff]  ;;  %v5222_v43 = vpack.c.bf16 %v3132_v0, %v3129_v61  ;;  %v3156_v3 = vld [vmem:[%s8085_s6 + $0xbf8] sm:$0xff] }
 0x1b8   : > { %5207 = vmatprep.subr.bf16.mxu0 %v5206_v47  ;;  %v3185_v47 = vld [vmem:[%s8085_s6 + $0xce0] sm:$0xff]  ;;  %v5064_v12 = vpack.c.bf16 %v3178_v27, %v3175_v4  ;;  %v3108_v27 = vld [vmem:[%s8085_s6 + $0xa78] sm:$0xff] }
 0x1b9   : > { %v5066_v22 = vpack.c.bf16 %v3185_v47, %v3182_v56  ;;  %v3210_v56 = vld [vmem:[%s8085_s6 + $0xda8] sm:$0xff] }
 0x1ba   : > { %5049 = vmatpush1.bf16.msra.mxu1 %v5048_v16  ;;  %v3181_v16 = vld [vmem:[%s8085_s6 + $0xcc0] sm:$0xff] }
 0x1bb   : > { %5209 = vmatpush3.bf16.msra.mxu0 %v5208_v10  ;;  %5051 = vmatprep.subr.bf16.mxu1 %v5050_v35  ;;  %v3184_v10 = vld [vmem:[%s8085_s6 + $0xcd8] sm:$0xff]  ;;  %v3087_v35 = vld [vmem:[%s8085_s6 + $0x9d0] sm:$0xff] }
 0x1bc   : > { %5211 = vmatprep.subr.bf16.mxu0 %v5210_v20  ;;  %v5226_v20 = vpack.c.bf16 %v3138_v9, %v3135_v6  ;;  %v5068_v5 = vpack.c.bf16 %v3184_v10, %v3181_v16  ;;  %v5228_v32 = vpack.c.bf16 %v3090_v42, %v3087_v35  ;;  %v3159_v16 = vld [vmem:[%s8085_s6 + $0xc10] sm:$0xff]  ;;  %v3162_v10 = vld [vmem:[%s8085_s6 + $0xc28] sm:$0xff]  ;;  %v3212_v35 = vld [vmem:[%s8085_s6 + $0xdb8] sm:$0xff] }
 0x1bd   : > { %4374 = vmatmul.mubr.msk.f32.vlgmr.msra.gmra.mrb[8].mxu1 %vm6781_vm14, %v2725_v34  ;;  %v3213_v42 = vld [vmem:[%s8085_s6 + $0xdc0] sm:$0xff]  ;;  %v5244_v25 = vpack.c.bf16 %v3162_v10, %v3159_v16 }
 0x1be   : > { %4390 = vmatmul.mubr.msk.f32.vlgmr.msra.gmra.mrb[24].mxu0 %vm6781_vm14, %v2723_v58  ;;  %4375 = vmatprep.mubr.msk.f32.mxu1 %vm6815_vm1, %v2736_v41  ;;  %v2728_v58 = vmax.f32 %v7089_v62, 0.0  ;;  %v3189_v16 = vld [vmem:[%s8085_s6 + $0xd00] sm:$0xff] }
 0x1bf   : > { %5053 = vmatpush1.bf16.msra.mxu1 %v5052_v36  ;;  %4391 = vmatprep.mubr.msk.f32.mxu0 %vm6815_vm1, %v2734_v7  ;;  %v5218_v7 = vpack.c.bf16 %v3126_v17, %v3123_v54  ;;  %v3187_v36 = vld [vmem:[%s8085_s6 + $0xcf0] sm:$0xff] }
 0x1c0   : > { %5213 = vmatpush3.bf16.msra.mxu0 %v5212_v46  ;;  %5055 = vmatprep.subr.bf16.mxu1 %v5054_v57  ;;  %v3190_v46 = vld [vmem:[%s8085_s6 + $0xd08] sm:$0xff]  ;;  %v3093_v57 = vld [vmem:[%s8085_s6 + $0xa00] sm:$0xff] }
 0x1c1   : > { %4376 = vmatmul.mubr.msk.f32.gmra.mrb[10].mxu1 %vm6815_vm1, %v2735_v26  ;;  %5215 = vmatprep.subr.bf16.mxu0 %v5214_v51  ;;  %v3197_v51 = vld [vmem:[%s8085_s6 + $0xd40] sm:$0xff]  ;;  %v5072_v24 = vpack.c.bf16 %v3190_v46, %v3187_v36  ;;  %v5232_v54 = vpack.c.bf16 %v3096_v28, %v3093_v57  ;;  %v3168_v46 = vld [vmem:[%s8085_s6 + $0xc58] sm:$0xff]  ;;  %v3218_v57 = vld [vmem:[%s8085_s6 + $0xde8] sm:$0xff] }
 0x1c2   : > { %4392 = vmatmul.mubr.msk.f32.gmra.mrb[26].mxu0 %vm6815_vm1, %v2733_v1  ;;  %4377 = vmatprep.mubr.msk.f32.mxu1 %vm6781_vm14, %v2728_v58  ;;  %v5220_v1 = vpack.c.bf16 %v3078_v18, %v3075_v55  ;;  %v5074_v17 = vpack.c.bf16 %v3197_v51, %v3194_v49  ;;  %v3200_v55 = vld [vmem:[%s8085_s6 + $0xd58] sm:$0xff]  ;;  %v3153_v18 = vld [vmem:[%s8085_s6 + $0xbe0] sm:$0xff]  ;;  %v3219_v28 = vld [vmem:[%s8085_s6 + $0xdf0] sm:$0xff] }
 0x1c3   : > { %5057 = vmatpush1.bf16.msra.mxu1 %v5056_v15  ;;  %4393 = vmatprep.mubr.msk.f32.mxu0 %vm6781_vm14, %v2726_v30  ;;  %v3084_v30 = vld [vmem:[%s8085_s6 + $0x9b8] sm:$0xff]  ;;  %v3193_v15 = vld [vmem:[%s8085_s6 + $0xd20] sm:$0xff]  ;;  %v5238_v4 = vpack.c.bf16 %v3156_v3, %v3153_v18  ;;  %v3222_v49 = vld [vmem:[%s8085_s6 + $0xe08] sm:$0xff] }
 0x1c4   : > { %5217 = vmatpush3.bf16.msra.mxu0 %v5216_v33  ;;  %5059 = vmatprep.subr.bf16.mxu1 %v5058_v53  ;;  %v5224_v14 = vpack.c.bf16 %v3084_v30, %v3081_v48  ;;  %v3196_v33 = vld [vmem:[%s8085_s6 + $0xd38] sm:$0xff]  ;;  %v3099_v53 = vld [vmem:[%s8085_s6 + $0xa30] sm:$0xff]  ;;  %v3206_v48 = vld [vmem:[%s8085_s6 + $0xd88] sm:$0xff] }
 0x1c5   : > { %5219 = vmatprep.subr.bf16.mxu0 %v5218_v7  ;;  %v3203_v7 = vld [vmem:[%s8085_s6 + $0xd70] sm:$0xff]  ;;  %v5076_v11 = vpack.c.bf16 %v3196_v33, %v3193_v15  ;;  %v5236_v61 = vpack.c.bf16 %v3102_v39, %v3099_v53  ;;  %v3165_v36 = vld [vmem:[%s8085_s6 + $0xc40] sm:$0xff]  ;;  %v3228_v33 = vld [vmem:[%s8085_s6 + $0xe38] sm:$0xff]  ;;  %v5092_v53 = vpack.c.bf16 %v3220_v44, %v3217_v19 }
 0x1c6   : > { %v5078_v0 = vpack.c.bf16 %v3203_v7, %v3200_v55  ;;  %v3207_v30 = vld [vmem:[%s8085_s6 + $0xd90] sm:$0xff]  ;;  %v5248_v52 = vpack.c.bf16 %v3168_v46, %v3165_v36  ;;  %v3225_v15 = vld [vmem:[%s8085_s6 + $0xe20] sm:$0xff]  ;;  %v3230_v7 = vld [vmem:[%s8085_s6 + $0xe48] sm:$0xff] }
 0x1c7   : > { %5061 = vmatpush1.bf16.msra.mxu1 %v5060_v59  ;;  %v3199_v59 = vld [vmem:[%s8085_s6 + $0xd50] sm:$0xff]  ;;  %v5254_v62 = vpack.c.bf16 %v3228_v33, %v3225_v15  ;;  %v3233_v18 = vld [vmem:[%s8085_s6 + $0xe60] sm:$0xff]  ;;  %v2727_v33 = vmax.f32 %v7078_v13, 0.0 }
 0x1c8   : > { %5221 = vmatpush3.bf16.msra.mxu0 %v5220_v1  ;;  %5063 = vmatprep.subr.bf16.mxu1 %v5062_v45  ;;  %v3202_v1 = vld [vmem:[%s8085_s6 + $0xd68] sm:$0xff]  ;;  %v3105_v45 = vld [vmem:[%s8085_s6 + $0xa60] sm:$0xff]  ;;  %v3223_v55 = vld [vmem:[%s8085_s6 + $0xe10] sm:$0xff] }
 0x1c9   : > { %5223 = vmatprep.subr.bf16.mxu0 %v5222_v43  ;;  %v3209_v43 = vld [vmem:[%s8085_s6 + $0xda0] sm:$0xff]  ;;  %v5080_v47 = vpack.c.bf16 %v3202_v1, %v3199_v59  ;;  %v5240_v6 = vpack.c.bf16 %v3108_v27, %v3105_v45  ;;  %v3231_v3 = vld [vmem:[%s8085_s6 + $0xe50] sm:$0xff]  ;;  %v5098_v59 = vpack.c.bf16 %v3233_v18, %v3230_v7  ;;  %v3232_v45 = vld [vmem:[%s8085_s6 + $0xe58] sm:$0xff] }
 0x1ca   : > { %v5082_v9 = vpack.c.bf16 %v3209_v43, %v3206_v48  ;;  %v3229_v1 = vld [vmem:[%s8085_s6 + $0xe40] sm:$0xff]  ;;  %v3186_v48 = vld [vmem:[%s8085_s6 + $0xce8] sm:$0xff]  ;;  %v3236_v43 = vld [vmem:[%s8085_s6 + $0xe78] sm:$0xff] }
 0x1cb   : > { %5065 = vmatpush1.bf16.msra.mxu1 %v5064_v12  ;;  %v3205_v12 = vld [vmem:[%s8085_s6 + $0xd80] sm:$0xff]  ;;  %v3195_v36 = vld [vmem:[%s8085_s6 + $0xd30] sm:$0xff] }
 0x1cc   : > { %5225 = vmatpush3.bf16.msra.mxu0 %v5224_v14  ;;  %5067 = vmatprep.subr.bf16.mxu1 %v5066_v22  ;;  %v3208_v14 = vld [vmem:[%s8085_s6 + $0xd98] sm:$0xff]  ;;  %v5242_v22 = vpack.c.bf16 %v3210_v56, %v3207_v30  ;;  %v3239_v30 = vld [vmem:[%s8085_s6 + $0xe90] sm:$0xff]  ;;  %v3237_v56 = vld [vmem:[%s8085_s6 + $0xe80] sm:$0xff] }
 0x1cd   : > { %5227 = vmatprep.subr.bf16.mxu0 %v5226_v20  ;;  %v3215_v20 = vld [vmem:[%s8085_s6 + $0xdd0] sm:$0xff]  ;;  %v5084_v21 = vpack.c.bf16 %v3208_v14, %v3205_v12  ;;  %v5102_v12 = vpack.c.bf16 %v3239_v30, %v3236_v43 }
 0x1ce   : > { %v3235_v14 = vld [vmem:[%s8085_s6 + $0xe70] sm:$0xff] }
 0x1cf   : > { %5069 = vmatpush1.bf16.msra.mxu1 %v5068_v5  ;;  %v3214_v5 = vld [vmem:[%s8085_s6 + $0xdc8] sm:$0xff] }
 0x1d0   : > { %5229 = vmatpush3.bf16.msra.mxu0 %v5228_v32  ;;  %5071 = vmatprep.subr.bf16.mxu1 %v5070_v31  ;;  %v5086_v32 = vpack.c.bf16 %v3215_v20, %v3212_v35  ;;  %v5246_v31 = vpack.c.bf16 %v3216_v8, %v3213_v42  ;;  %v5088_v51 = vpack.c.bf16 %v3214_v5, %v3211_v29  ;;  %v3192_v35 = vld [vmem:[%s8085_s6 + $0xd18] sm:$0xff]  ;;  %v3242_v20 = vld [vmem:[%s8085_s6 + $0xea8] sm:$0xff]  ;;  %v3245_v42 = vld [vmem:[%s8085_s6 + $0xec0] sm:$0xff] }
 0x1d1   : > { %5231 = vmatprep.subr.bf16.mxu0 %v5230_v2  ;;  %v3221_v2 = vld [vmem:[%s8085_s6 + $0xe00] sm:$0xff]  ;;  %v3243_v8 = vld [vmem:[%s8085_s6 + $0xeb0] sm:$0xff]  ;;  %v5264_v29 = vpack.c.bf16 %v3192_v35, %v3189_v16  ;;  %v5106_v5 = vpack.c.bf16 %v3245_v42, %v3242_v20 }
 0x1d2   : > { %v5090_v60 = vpack.c.bf16 %v3221_v2, %v3218_v57  ;;  %v3198_v57 = vld [vmem:[%s8085_s6 + $0xd48] sm:$0xff]  ;;  %v3248_v2 = vld [vmem:[%s8085_s6 + $0xed8] sm:$0xff] }
 0x1d3   : > { %5073 = vmatpush1.bf16.msra.mxu1 %v5072_v24  ;;  %v5250_v24 = vpack.c.bf16 %v3222_v49, %v3219_v28  ;;  %v3251_v28 = vld [vmem:[%s8085_s6 + $0xef0] sm:$0xff]  ;;  %v3249_v49 = vld [vmem:[%s8085_s6 + $0xee0] sm:$0xff]  ;;  %v5268_v19 = vpack.c.bf16 %v3198_v57, %v3195_v36 }
 0x1d4   : > { %5233 = vmatpush3.bf16.msra.mxu0 %v5232_v54  ;;  %5075 = vmatprep.subr.bf16.mxu1 %v5074_v17  ;;  %v3224_v54 = vld [vmem:[%s8085_s6 + $0xe18] sm:$0xff]  ;;  %v3227_v17 = vld [vmem:[%s8085_s6 + $0xe30] sm:$0xff]  ;;  %v5110_v44 = vpack.c.bf16 %v3251_v28, %v3248_v2 }
 0x1d5   : > { %5235 = vmatprep.subr.bf16.mxu0 %v5234_v40  ;;  %v5094_v39 = vpack.c.bf16 %v3227_v17, %v3224_v54  ;;  %v3204_v54 = vld [vmem:[%s8085_s6 + $0xd78] sm:$0xff] }
 0x1d7   : > { %5077 = vmatpush1.bf16.msra.mxu1 %v5076_v11  ;;  %v3234_v11 = vld [vmem:[%s8085_s6 + $0xe68] sm:$0xff] }
 0x1d8   : > { %5237 = vmatpush3.bf16.msra.mxu0 %v5236_v61  ;;  %5079 = vmatprep.subr.bf16.mxu1 %v5078_v0  ;;  %v5096_v61 = vpack.c.bf16 %v3226_v50, %v3223_v55  ;;  %v5258_v27 = vpack.c.bf16 %v3234_v11, %v3231_v3 }
 0x1d9   : > { %5239 = vmatprep.subr.bf16.mxu0 %v5238_v4  ;;  %v3183_v4 = vld [vmem:[%s8085_s6 + $0xcd0] sm:$0xff] }
 0x1db   : > { %5081 = vmatpush1.bf16.msra.mxu1 %v5080_v47  ;;  %v3240_v47 = vld [vmem:[%s8085_s6 + $0xe98] sm:$0xff] }
 0x1dc   : > { %5241 = vmatpush3.bf16.msra.mxu0 %v5240_v6  ;;  %5083 = vmatprep.subr.bf16.mxu1 %v5082_v9  ;;  %v5100_v6 = vpack.c.bf16 %v3232_v45, %v3229_v1  ;;  %v5260_v9 = vpack.c.bf16 %v3186_v48, %v3183_v4  ;;  %v5262_v10 = vpack.c.bf16 %v3240_v47, %v3237_v56 }
 0x1dd   : > { %5243 = vmatprep.subr.bf16.mxu0 %v5242_v22  ;;  %v3238_v22 = vld [vmem:[%s8085_s6 + $0xe88] sm:$0xff] }
 0x1df   : > { %4394 = vmatmul.mubr.msk.f32.vlgmr.msra.gmra.mrb[28].mxu0 %vm6781_vm14, %v2725_v34  ;;  %5085 = vmatpush1.bf16.msra.mxu1 %v5084_v21  ;;  %v3171_v34 = vld [vmem:[%s8085_s6 + $0xc70] sm:$0xff]  ;;  %v3246_v21 = vld [vmem:[%s8085_s6 + $0xec8] sm:$0xff] }
 0x1e0   : > { %4395 = vmatprep.mubr.msk.f32.mxu0 %vm6815_vm1, %v2736_v41  ;;  %5245 = vmatpush3.bf16.msra.mxu0 %v5244_v25  ;;  %v3174_v41 = vld [vmem:[%s8085_s6 + $0xc88] sm:$0xff]  ;;  %v5104_v25 = vpack.c.bf16 %v3238_v22, %v3235_v14  ;;  %v5266_v46 = vpack.c.bf16 %v3246_v21, %v3243_v8 }
 0x1e1   : > { %5087 = vmatprep.subr.bf16.mxu1 %v5086_v32  ;;  %5247 = vmatprep.subr.bf16.mxu0 %v5246_v31  ;;  %v5252_v40 = vpack.c.bf16 %v3174_v41, %v3171_v34  ;;  %v3241_v32 = vld [vmem:[%s8085_s6 + $0xea0] sm:$0xff]  ;;  %v3244_v31 = vld [vmem:[%s8085_s6 + $0xeb8] sm:$0xff]  ;;  %v3247_v34 = vld [vmem:[%s8085_s6 + $0xed0] sm:$0xff] }
 0x1e2   : > { %v3201_v41 = vld [vmem:[%s8085_s6 + $0xd60] sm:$0xff] }
 0x1e3   : > { %4396 = vmatmul.mubr.msk.f32.gmra.mrb[30].mxu0 %vm6815_vm1, %v2735_v26  ;;  %5089 = vmatpush1.bf16.msra.mxu1 %v5088_v51  ;;  %v3177_v26 = vld [vmem:[%s8085_s6 + $0xca0] sm:$0xff]  ;;  %v3252_v51 = vld [vmem:[%s8085_s6 + $0xef8] sm:$0xff]  ;;  %v5272_v15 = vpack.c.bf16 %v3204_v54, %v3201_v41 }
 0x1e4   : > { %5249 = vmatpush3.bf16.msra.mxu0 %v5248_v52  ;;  %4397 = vmatprep.mubr.msk.f32.mxu0 %vm6781_vm14, %v2728_v58  ;;  %v3180_v58 = vld [vmem:[%s8085_s6 + $0xcb8] sm:$0xff]  ;;  %v5108_v52 = vpack.c.bf16 %v3244_v31, %v3241_v32 }
 0x1e5   : > { %5091 = vmatprep.subr.bf16.mxu1 %v5090_v60  ;;  %5251 = vmatprep.subr.bf16.mxu0 %v5250_v24  ;;  %v5256_v0 = vpack.c.bf16 %v3180_v58, %v3177_v26  ;;  %v3250_v60 = vld [vmem:[%s8085_s6 + $0xee8] sm:$0xff]  ;;  %v5270_v24 = vpack.c.bf16 %v3252_v51, %v3249_v49 }
 0x1e6   : > { %v5112_v17 = vpack.c.bf16 %v3250_v60, %v3247_v34 }
 0x1e7   : > { %5093 = vmatpush1.bf16.msra.mxu1 %v5092_v53  ;;  %v2738_v53 = vmax.f32 %v7117_v63, 0.0 }
 0x1e8   : > { %5253 = vmatpush3.bf16.msra.mxu0 %v5252_v40  ;;  %5095 = vmatprep.subr.bf16.mxu1 %v5094_v39  ;;  %v2737_v40 = vmax.f32 %v7106_v38, 0.0 }
 0x1e9   : > { %5255 = vmatprep.subr.bf16.mxu0 %v5254_v62 }
 0x1eb   : > { %5097 = vmatpush1.bf16.msra.mxu1 %v5096_v61 }
 0x1ec   : > { %5257 = vmatpush3.bf16.msra.mxu0 %v5256_v0  ;;  %5099 = vmatprep.subr.bf16.mxu1 %v5098_v59 }
 0x1ed   : > { %5259 = vmatprep.subr.bf16.mxu0 %v5258_v27 }
 0x1ef   : > { %5101 = vmatpush1.bf16.msra.mxu1 %v5100_v6 }
 0x1f0   : > { %5261 = vmatpush3.bf16.msra.mxu0 %v5260_v9  ;;  %5103 = vmatprep.subr.bf16.mxu1 %v5102_v12 }
 0x1f1   : > { %5263 = vmatprep.subr.bf16.mxu0 %v5262_v10 }
 0x1f3   : > { %5105 = vmatpush1.bf16.msra.mxu1 %v5104_v25 }
 0x1f4   : > { %5265 = vmatpush3.bf16.msra.mxu0 %v5264_v29  ;;  %5107 = vmatprep.subr.bf16.mxu1 %v5106_v5 }
 0x1f5   : > { %5267 = vmatprep.subr.bf16.mxu0 %v5266_v46 }
 0x1f7   : > { %5109 = vmatpush1.bf16.msra.mxu1 %v5108_v52 }
 0x1f8   : > { %5269 = vmatpush3.bf16.msra.mxu0 %v5268_v19  ;;  %5111 = vmatprep.subr.bf16.mxu1 %v5110_v44 }
 0x1f9   : > { %5271 = vmatprep.subr.bf16.mxu0 %v5270_v24  ;;  %v4401_v24 = vld [vmem:[%s8086_s7] ss:$0 sm:$0xff] }
 0x1fb   : > { %5113 = vmatpush1.bf16.msra.mxu1 %v5112_v17 }
 0x1fc   : > { %5273 = vmatpush3.bf16.msra.mxu0 %v5272_v15 }
 0x1fe   : > { %4378 = vmatmul.mubr.msk.f32.vlgmr.msra.gmra.mrb[8].mxu1 %vm6781_vm14, %v2727_v33 }
 0x1ff   : > { %4398 = vmatmul.mubr.msk.f32.vlgmr.msra.gmra.mrb[32].mxu0 %vm6781_vm14, %v2727_v33  ;;  %4379 = vmatprep.mubr.msk.f32.mxu1 %vm6815_vm1, %v2738_v53 }
 0x200   : > { %4399 = vmatprep.mubr.msk.f32.mxu0 %vm6815_vm1, %v2738_v53 }
 0x202   : > { %4380 = vmatmul.mubr.msk.f32.gmra.mrb[10].mxu1 %vm6815_vm1, %v2737_v40 }
 0x203   : > { %4400 = vmatmul.mubr.msk.f32.gmra.mrb[34].mxu0 %vm6815_vm1, %v2737_v40 }
 0x230   : > { %v3319_v13 = vpop.f32.mrb[12].mxu0 }
 0x231   : > { %v3321_v63 = vpop.f32.mrb[13].mxu0 }
 0x234   : > { %v3325_v39 = vpop.f32.mrb[14].mxu0 }
 0x235   : > { %v3326_v55 = vpop.f32.mrb[15].mxu0 }
 0x250   : > { %v4436_v23 = vpop.f32.mrb[16].mxu0 }
 0x251   : > { %v4437_v50 = vpop.f32.mrb[17].mxu0 }
 0x252   : > { %v4438_v26 = vadd.f32 %v4437_v50, %v4436_v23 }
 0x254   : > { %v4439_v62 = vpop.f32.mrb[18].mxu0 }
 0x255   : > { %v4440_v58 = vpop.f32.mrb[19].mxu0 }
 0x256   : > { %v4441_v7 = vadd.f32 %v4440_v58, %v4439_v62 }
 0x271   : > { %v4474_v38 = vpop.f32.mrb[20].mxu0 }
 0x272   : > { %v4475_v18 = vpop.f32.mrb[21].mxu0 }
 0x273   : > { %v4476_v3 = vadd.f32 %v4475_v18, %v4474_v38 }
 0x275   : > { %v3775_v11 = vadd.f32 %v4476_v3, %v4438_v26  ;;  %v4477_v61 = vpop.f32.mrb[22].mxu0 }
 0x276   : > { %v4478_v0 = vpop.f32.mrb[23].mxu0 }
 0x277   : > { %v4479_v59 = vadd.f32 %v4478_v0, %v4477_v61 }
 0x279   : > { %v3780_v1 = vadd.f32 %v4479_v59, %v4441_v7 }
 0x291   : > { %v4512_v37 = vpop.f32.mrb[24].mxu0 }
 0x292   : > { %v4513_v45 = vpop.f32.mrb[25].mxu0 }
 0x293   : > { %v4514_v4 = vadd.f32 %v4513_v45, %v4512_v37 }
 0x295   : > { %v3850_v27 = vadd.f32 %v4514_v4, %v3775_v11  ;;  %v4515_v48 = vpop.f32.mrb[26].mxu0 }
 0x296   : > { %v4516_v43 = vpop.f32.mrb[27].mxu0 }
 0x297   : > { %v4517_v30 = vadd.f32 %v4516_v43, %v4515_v48 }
 0x299   : > { %v3855_v56 = vadd.f32 %v4517_v30, %v3780_v1 }
 0x2b2   : > { %v4550_v47 = vpop.f32.mrb[28].mxu0 }
 0x2b3   : > { %v4551_v6 = vpop.f32.mrb[29].mxu0 }
 0x2b4   : > { %v4552_v9 = vadd.f32 %v4551_v6, %v4550_v47 }
 0x2b6   : > { %v3925_v12 = vadd.f32 %v4552_v9, %v3850_v27  ;;  %v4553_v14 = vpop.f32.mrb[30].mxu0 }
 0x2b7   : > { %v4554_v22 = vpop.f32.mrb[31].mxu0 }
 0x2b8   : > { %v4555_v16 = vadd.f32 %v4554_v22, %v4553_v14 }
 0x2ba   : > { %v3930_v10 = vadd.f32 %v4555_v16, %v3855_v56 }
 0x2d1   : > { %v3623_v35 = vpop.f32.mrb[8].mxu1 }
 0x2d2   : > { %v5274_v20 = vadd.f32 %v3623_v35, %v3319_v13  ;;  %v4588_v42 = vpop.f32.mrb[32].mxu0  ;;  %v3625_v8 = vpop.f32.mrb[9].mxu1 }
 0x2d3   : > { %v5275_v21 = vadd.f32 %v3625_v8, %v3321_v63  ;;  %v4589_v25 = vpop.f32.mrb[33].mxu0 }
 0x2d4   : > { %v4590_v29 = vadd.f32 %v4589_v25, %v4588_v42 }
 0x2d5   : > { %v3629_v5 = vpop.f32.mrb[10].mxu1  ;;  %v4010_v28 = vrot.slane %v5275_v21, 1 }
 0x2d6   : > { %v4000_v32 = vadd.f32 %v4590_v29, %v3925_v12  ;;  %v4591_v31 = vpop.f32.mrb[34].mxu0  ;;  %v3630_v36 = vpop.f32.mrb[11].mxu1 }
 0x2d7   : > { %v5276_v46 = vadd.f32 %v3630_v36, %v3326_v55  ;;  %v4592_v57 = vpop.f32.mrb[35].mxu0 }
 0x2d8   : > { %v4593_v2 = vadd.f32 %v4592_v57, %v4591_v31  ;;  %v4017_v19 = vrot.slane %v4000_v32, 2 }
 0x2d9   : > { %v4011_v49 = vrot.slane %v5276_v46, 1 }
 0x2da   : > { %v4005_v51 = vadd.f32 %v4593_v2, %v3930_v10 }
 0x2db   : > { %v4012_v52 = vsel %vm500_vm7, %v4010_v28, %v4011_v49 }
 0x2dc   : > { %v4014_v44 = vadd.f32 %v5274_v20, %v4012_v52  ;;  %v4018_v34 = vrot.slane %v4005_v51, 2 }
 0x2de   : > { %v4019_v60 = vsel %vm1324_vm10, %v4017_v19, %v4018_v34 }
 0x2df   : > { %v4021_v41 = vadd.f32 %v4019_v60, %v4014_v44 }
 0x2e1   : > { %v4029_v54 = vadd.f32 %v4401_v24, %v4021_v41 }
 0x2e3   : > { %4030 = vst [vmem:[%s367_s16] sm:$0xff] %v4029_v54 }
 0x2e4 PF: > { %s18_s9 = sadd.s32 1, %s5448_s9   ;;  %s8092_s27 = smov %s5440_s29 }
 0x2e5   : > { %p15_p7 = scmp.ge.s32.totalorder %s18_s9, 6   ;;  %s8093_s28 = smov %s5444_s30 }
 0x2e6   : > { %s8094_s29 = smov %s8097_s10  ;;  %s8095_s30 = smov %s8101_s11 }
 0x2e7   :  { %17 = sbr.rel (!%p15_p7) target bundleno = 3 (0x3), region = 89 }

</bundles_post_ra>
